<compile_context>
chip_gen: v5e
topology: v5e:2x2
jax: 0.10.0
libtpu: 0.0.40
codegen_flags: <defaults>
</compile_context>

<pallas_src>
import math

import jax
import jax.numpy as jnp
from jax.experimental import pallas as pl
from jax.experimental.pallas import tpu as pltpu

# ---- model hyper-parameters (small synthetic BERT) ----
VOCAB = 100
MAX_POS = 16
HIDDEN = 32
NUM_HEADS = 2
HEAD_DIM = HIDDEN // NUM_HEADS
FFN = 64
NUM_LAYERS = 4
OUT_DIM = 128          # fc out_features; 128 keeps the kernel's output lane-dense
LN_EPS = 1e-12


def _layer_norm(x, g, b, eps=LN_EPS):
    mu = jnp.mean(x, axis=-1, keepdims=True)
    var = jnp.mean((x - mu) ** 2, axis=-1, keepdims=True)
    return (x - mu) * jax.lax.rsqrt(var + eps) * g + b


def _gelu(x):
    # TODO(synk): HF BERT uses exact erf GELU; tanh approximation (EUP-friendly) used here.
    c = 0.7978845608028654  # sqrt(2/pi)
    return 0.5 * x * (1.0 + jnp.tanh(c * (x + 0.044715 * x * x * x)))


def text_embedding_kernel(ids_ref, bias_ref, pos_type_ref,
                          word_ref, eln_g_ref, eln_b_ref,
                          wqkv_ref, bqkv_ref, wo_ref, bo_ref,
                          ln1g_ref, ln1b_ref, w1_ref, b1_ref,
                          w2_ref, b2_ref, ln2g_ref, ln2b_ref,
                          fcw_ref, fcb_ref, out_ref):
    BS = ids_ref.shape[0]                 # B*S (batch folded into matmul M dim)
    B, _, S = bias_ref.shape
    H = word_ref.shape[1]
    scale = 1.0 / math.sqrt(HEAD_DIM)

    # ---- embedding lookup as a one-hot matmul (stays on the MXU, no HBM h0 round trip) ----
    ids = ids_ref[...]                                                    # [BS, 1] i32
    vocab_iota = jax.lax.broadcasted_iota(jnp.int32, (BS, VOCAB), 1)
    onehot = jnp.where(ids == vocab_iota, 1.0, 0.0).astype(jnp.bfloat16)  # [BS, VOCAB]
    hid = jnp.dot(onehot, word_ref[...], preferred_element_type=jnp.float32)
    hid = hid + pos_type_ref[...]                                         # + position + token-type
    x = _layer_norm(hid, eln_g_ref[...], eln_b_ref[...])                  # [BS, H] f32

    # additive attention bias, broadcast once (hoisted out of layer/head loops)
    bias_sq = jnp.broadcast_to(bias_ref[...], (B, S, S))                  # [B, S, S]

    # ---- encoder layers: activations stay VMEM/vreg-resident across the static loop ----
    for l in range(NUM_LAYERS):
        # packed QKV projection: one [BS,H] x [H,3H] matmul
        qkv = jnp.dot(x.astype(jnp.bfloat16), wqkv_ref[l],
                      preferred_element_type=jnp.float32) + bqkv_ref[l]   # [BS, 3H]
        qkv3 = qkv.reshape(B, S, 3 * H)                                   # tile-boundary reshape
        q = qkv3[..., 0:H]
        k = qkv3[..., H:2 * H]
        v = qkv3[..., 2 * H:3 * H]

        ctx_heads = []
        for hh in range(NUM_HEADS):                                       # static head unroll
            sl = slice(hh * HEAD_DIM, (hh + 1) * HEAD_DIM)
            qh = q[..., sl].astype(jnp.bfloat16)                          # [B, S, dh]
            kh = k[..., sl].astype(jnp.bfloat16)
            vh = v[..., sl].astype(jnp.bfloat16)
            scores = jnp.einsum('bqd,bkd->bqk', qh, kh,
                                preferred_element_type=jnp.float32) * scale + bias_sq
            scores = scores - jnp.max(scores, axis=-1, keepdims=True)
            p = jnp.exp(scores)
            p = p * pl.reciprocal(jnp.sum(p, axis=-1, keepdims=True), approx=True)
            ctx_heads.append(jnp.einsum('bqk,bkd->bqd', p.astype(jnp.bfloat16), vh,
                                        preferred_element_type=jnp.float32))
        ctx = jnp.concatenate(ctx_heads, axis=-1).reshape(BS, H)          # [BS, H]

        attn = jnp.dot(ctx.astype(jnp.bfloat16), wo_ref[l],
                       preferred_element_type=jnp.float32) + bo_ref[l]
        h1 = _layer_norm(x + attn, ln1g_ref[l], ln1b_ref[l])

        ffn = _gelu(jnp.dot(h1.astype(jnp.bfloat16), w1_ref[l],
                            preferred_element_type=jnp.float32) + b1_ref[l])
        ffn = jnp.dot(ffn.astype(jnp.bfloat16), w2_ref[l],
                      preferred_element_type=jnp.float32) + b2_ref[l]
        x = _layer_norm(h1 + ffn, ln2g_ref[l], ln2b_ref[l])

    # ---- CLS token per batch (row b*S) via a tiny selection matmul, then fc projection ----
    col = jax.lax.broadcasted_iota(jnp.int32, (B, BS), 1)
    row = jax.lax.broadcasted_iota(jnp.int32, (B, BS), 0)
    sel = jnp.where(col == row * S, 1.0, 0.0).astype(jnp.bfloat16)        # [B, BS]
    cls = jnp.dot(sel, x.astype(jnp.bfloat16),
                  preferred_element_type=jnp.float32)                     # [B, H]
    out_ref[...] = jnp.dot(cls.astype(jnp.bfloat16), fcw_ref[...],
                           preferred_element_type=jnp.float32) + fcb_ref[...]   # [B, OUT_DIM]


def text_embedding_forward(input_ids, attention_mask, params):
    """Mirrors TextEmbedding.forward: fc(BERT(input_ids, mask).last_hidden_state[:, 0, :])."""
    B, S = input_ids.shape
    if attention_mask is None:
        attention_mask = jnp.ones((B, S), jnp.int32)

    ids = input_ids.reshape(B * S, 1).astype(jnp.int32)
    # BERT-style additive key mask, broadcast over the query axis: (1 - mask) * -10000.
    mask_bias = ((1.0 - attention_mask.astype(jnp.float32)) * -1e4)[:, None, :]   # [B, 1, S]
    # position + token-type(0) embeddings, tiled to [B*S, H] (tiny, input-independent glue).
    pos_type = jnp.tile(params["pos"][:S] + params["type"][0][None, :], (B, 1))

    inputs = (ids, mask_bias, pos_type,
              params["word"], params["eln_g"], params["eln_b"],
              params["wqkv"], params["bqkv"], params["wo"], params["bo"],
              params["ln1g"], params["ln1b"], params["w1"], params["b1"],
              params["w2"], params["b2"], params["ln2g"], params["ln2b"],
              params["fc_w"], params["fc_b"])

    # Single grid-less pallas_call; total working set (~100 KiB) trivially fits VMEM on v5e/v6e/v7x.
    # TODO(synk): at real BERT-base shapes (H=768, FFN=3072) this must be re-tiled per generation
    # (v7x has only 64 MiB VMEM) with K/N BlockSpecs and an explicit vmem_limit_bytes.
    return pl.pallas_call(
        text_embedding_kernel,
        out_shape=jax.ShapeDtypeStruct((B, params["fc_w"].shape[1]), jnp.float32),
        in_specs=[pl.BlockSpec(memory_space=pltpu.MemorySpace.VMEM) for _ in inputs],
        out_specs=pl.BlockSpec(memory_space=pltpu.MemorySpace.VMEM),
    )(*inputs)


def init_params(key, out_dim=OUT_DIM):
    """Deterministic synthetic BERT-ish weights (stacked per-layer, bf16 matmul weights)."""
    def w(k, shape):  # bf16 matmul weights
        return (0.02 * jax.random.normal(k, shape)).astype(jnp.bfloat16)

    def b(k, shape):  # f32 biases
        return (0.02 * jax.random.normal(k, shape)).astype(jnp.float32)

    ks = jax.random.split(key, 12)
    L, H = NUM_LAYERS, HIDDEN
    return {
        "word": w(ks[0], (VOCAB, H)),
        "pos": (0.02 * jax.random.normal(ks[1], (MAX_POS, H))).astype(jnp.float32),
        "type": (0.02 * jax.random.normal(ks[2], (2, H))).astype(jnp.float32),
        "eln_g": jnp.ones((1, H), jnp.float32),
        "eln_b": jnp.zeros((1, H), jnp.float32),
        "wqkv": w(ks[3], (L, H, 3 * H)),
        "bqkv": b(ks[4], (L, 1, 3 * H)),
        "wo": w(ks[5], (L, H, H)),
        "bo": b(ks[6], (L, 1, H)),
        "ln1g": jnp.ones((L, 1, H), jnp.float32),
        "ln1b": jnp.zeros((L, 1, H), jnp.float32),
        "w1": w(ks[7], (L, H, FFN)),
        "b1": b(ks[8], (L, 1, FFN)),
        "w2": w(ks[9], (L, FFN, H)),
        "b2": b(ks[10], (L, 1, H)),
        "ln2g": jnp.ones((L, 1, H), jnp.float32),
        "ln2b": jnp.zeros((L, 1, H), jnp.float32),
        "fc_w": w(ks[11], (H, out_dim)),     # nn.Linear(hidden, out_dim), stored [in, out]
        "fc_b": jnp.zeros((1, out_dim), jnp.float32),
    }


if __name__ == "__main__":
    key = jax.random.PRNGKey(0)
    k_ids, k_params = jax.random.split(key)

    B, S = 2, 8
    input_ids = jax.random.randint(k_ids, (B, S), 0, VOCAB, dtype=jnp.int32)
    attention_mask = jnp.ones((B, S), jnp.int32).at[1, 6:].set(0)  # exercise padding mask

    params = init_params(k_params)
    out = jax.jit(text_embedding_forward)(input_ids, attention_mask, params)
    out = jax.block_until_ready(out)

    assert out.shape == (B, OUT_DIM), out.shape
    assert bool(jnp.all(jnp.isfinite(out)))
    print("KERNEL_OK")
</pallas_src>

<mosaic_0001>
module attributes {stable_mosaic.version = 11 : i64} {
  func.func @text_embedding_kernel(%arg0: memref<16x1xi32, #tpu.memory_space<vmem>>, %arg1: memref<2x1x8xf32, #tpu.memory_space<vmem>>, %arg2: memref<16x32xf32, #tpu.memory_space<vmem>>, %arg3: memref<100x32xbf16, #tpu.memory_space<vmem>>, %arg4: memref<1x32xf32, #tpu.memory_space<vmem>>, %arg5: memref<1x32xf32, #tpu.memory_space<vmem>>, %arg6: memref<4x32x96xbf16, #tpu.memory_space<vmem>>, %arg7: memref<4x1x96xf32, #tpu.memory_space<vmem>>, %arg8: memref<4x32x32xbf16, #tpu.memory_space<vmem>>, %arg9: memref<4x1x32xf32, #tpu.memory_space<vmem>>, %arg10: memref<4x1x32xf32, #tpu.memory_space<vmem>>, %arg11: memref<4x1x32xf32, #tpu.memory_space<vmem>>, %arg12: memref<4x32x64xbf16, #tpu.memory_space<vmem>>, %arg13: memref<4x1x64xf32, #tpu.memory_space<vmem>>, %arg14: memref<4x64x32xbf16, #tpu.memory_space<vmem>>, %arg15: memref<4x1x32xf32, #tpu.memory_space<vmem>>, %arg16: memref<4x1x32xf32, #tpu.memory_space<vmem>>, %arg17: memref<4x1x32xf32, #tpu.memory_space<vmem>>, %arg18: memref<32x128xbf16, #tpu.memory_space<vmem>>, %arg19: memref<1x128xf32, #tpu.memory_space<vmem>>, %arg20: memref<2x128xf32, #tpu.memory_space<vmem>>) attributes {dimension_semantics = [], scalar_prefetch = 0 : i64, scratch_operands = 0 : i64, tpu.core_type = #tpu.core_type<tc>} {
    %c0 = arith.constant 0 : index
    %c0_0 = arith.constant 0 : index
    %0 = vector.load %arg0[%c0, %c0_0] : memref<16x1xi32, #tpu.memory_space<vmem>>, vector<16x1xi32>
    %1 = tpu.iota {dimensions = array<i32: 1>} : vector<16x100xi32>
    %2 = vector.broadcast %0 : vector<16x1xi32> to vector<16x100xi32>
    %3 = arith.cmpi eq, %2, %1 : vector<16x100xi32>
    %cst = arith.constant 1.000000e+00 : f32
    %cst_1 = arith.constant 0.000000e+00 : f32
    %4 = vector.broadcast %cst : f32 to vector<16x100xf32>
    %5 = vector.broadcast %cst_1 : f32 to vector<16x100xf32>
    %6 = arith.select %3, %4, %5 : vector<16x100xi1>, vector<16x100xf32>
    %7 = arith.truncf %6 : vector<16x100xf32> to vector<16x100xbf16>
    %c0_2 = arith.constant 0 : index
    %c0_3 = arith.constant 0 : index
    %8 = vector.load %arg3[%c0_2, %c0_3] : memref<100x32xbf16, #tpu.memory_space<vmem>>, vector<100x32xbf16>
    %cst_4 = arith.constant dense<0.000000e+00> : vector<16x32xf32>
    %9 = tpu.matmul %7, %8, %cst_4 {dimension_numbers = #tpu.dot_dimension_numbers<[1], [0], [0], [1], [0, 0, 1, 1], [], []>} : vector<16x100xbf16>, vector<100x32xbf16>, vector<16x32xf32> -> vector<16x32xf32>
    %c0_5 = arith.constant 0 : index
    %c0_6 = arith.constant 0 : index
    %10 = vector.load %arg2[%c0_5, %c0_6] : memref<16x32xf32, #tpu.memory_space<vmem>>, vector<16x32xf32>
    %11 = arith.addf %9, %10 : vector<16x32xf32>
    %c0_7 = arith.constant 0 : index
    %c0_8 = arith.constant 0 : index
    %12 = vector.load %arg4[%c0_7, %c0_8] : memref<1x32xf32, #tpu.memory_space<vmem>>, vector<1x32xf32>
    %c0_9 = arith.constant 0 : index
    %c0_10 = arith.constant 0 : index
    %13 = vector.load %arg5[%c0_9, %c0_10] : memref<1x32xf32, #tpu.memory_space<vmem>>, vector<1x32xf32>
    %cst_11 = arith.constant dense<0.000000e+00> : vector<16xf32>
    %14 = vector.multi_reduction <add>, %11, %cst_11 [1] : vector<16x32xf32> to vector<16xf32>
    %15 = vector.shape_cast %14 : vector<16xf32> to vector<16x1xf32>
    %cst_12 = arith.constant 3.200000e+01 : f32
    %16 = vector.broadcast %cst_12 : f32 to vector<16x1xf32>
    %17 = arith.divf %15, %16 : vector<16x1xf32>
    %18 = vector.broadcast %17 : vector<16x1xf32> to vector<16x32xf32>
    %19 = arith.subf %11, %18 : vector<16x32xf32>
    %20 = arith.mulf %19, %19 : vector<16x32xf32>
    %cst_13 = arith.constant dense<0.000000e+00> : vector<16xf32>
    %21 = vector.multi_reduction <add>, %20, %cst_13 [1] : vector<16x32xf32> to vector<16xf32>
    %22 = vector.shape_cast %21 : vector<16xf32> to vector<16x1xf32>
    %cst_14 = arith.constant 3.200000e+01 : f32
    %23 = vector.broadcast %cst_14 : f32 to vector<16x1xf32>
    %24 = arith.divf %22, %23 : vector<16x1xf32>
    %25 = vector.broadcast %17 : vector<16x1xf32> to vector<16x32xf32>
    %26 = arith.subf %11, %25 : vector<16x32xf32>
    %cst_15 = arith.constant 9.99999996E-13 : f32
    %27 = vector.broadcast %cst_15 : f32 to vector<16x1xf32>
    %28 = arith.addf %24, %27 : vector<16x1xf32>
    %29 = math.rsqrt %28 : vector<16x1xf32>
    %30 = vector.broadcast %29 : vector<16x1xf32> to vector<16x32xf32>
    %31 = arith.mulf %26, %30 : vector<16x32xf32>
    %32 = vector.broadcast %12 : vector<1x32xf32> to vector<16x32xf32>
    %33 = arith.mulf %31, %32 : vector<16x32xf32>
    %34 = vector.broadcast %13 : vector<1x32xf32> to vector<16x32xf32>
    %35 = arith.addf %33, %34 : vector<16x32xf32>
    %c0_16 = arith.constant 0 : index
    %c0_17 = arith.constant 0 : index
    %c0_18 = arith.constant 0 : index
    %36 = vector.load %arg1[%c0_16, %c0_17, %c0_18] : memref<2x1x8xf32, #tpu.memory_space<vmem>>, vector<2x1x8xf32>
    %37 = vector.shape_cast %36 : vector<2x1x8xf32> to vector<2x1x8xf32>
    %38 = vector.broadcast %37 : vector<2x1x8xf32> to vector<2x8x8xf32>
    %39 = arith.truncf %35 : vector<16x32xf32> to vector<16x32xbf16>
    %c0_19 = arith.constant 0 : index
    %c0_20 = arith.constant 0 : index
    %c0_21 = arith.constant 0 : index
    %40 = vector.load %arg6[%c0_19, %c0_20, %c0_21] : memref<4x32x96xbf16, #tpu.memory_space<vmem>>, vector<1x32x96xbf16>
    %41 = vector.shape_cast %40 : vector<1x32x96xbf16> to vector<32x96xbf16>
    %cst_22 = arith.constant dense<0.000000e+00> : vector<16x96xf32>
    %42 = tpu.matmul %39, %41, %cst_22 {dimension_numbers = #tpu.dot_dimension_numbers<[1], [0], [0], [1], [0, 0, 1, 1], [], []>} : vector<16x32xbf16>, vector<32x96xbf16>, vector<16x96xf32> -> vector<16x96xf32>
    %c0_23 = arith.constant 0 : index
    %c0_24 = arith.constant 0 : index
    %c0_25 = arith.constant 0 : index
    %43 = vector.load %arg7[%c0_23, %c0_24, %c0_25] : memref<4x1x96xf32, #tpu.memory_space<vmem>>, vector<1x1x96xf32>
    %44 = vector.shape_cast %43 : vector<1x1x96xf32> to vector<1x96xf32>
    %45 = vector.broadcast %44 : vector<1x96xf32> to vector<16x96xf32>
    %46 = arith.addf %42, %45 : vector<16x96xf32>
    %47 = vector.shape_cast %46 : vector<16x96xf32> to vector<2x8x96xf32>
    %48 = vector.extract_strided_slice %47 {offsets = [0, 0, 0], sizes = [2, 8, 32], strides = [1, 1, 1]} : vector<2x8x96xf32> to vector<2x8x32xf32>
    %49 = vector.extract_strided_slice %47 {offsets = [0, 0, 32], sizes = [2, 8, 32], strides = [1, 1, 1]} : vector<2x8x96xf32> to vector<2x8x32xf32>
    %50 = vector.extract_strided_slice %47 {offsets = [0, 0, 64], sizes = [2, 8, 32], strides = [1, 1, 1]} : vector<2x8x96xf32> to vector<2x8x32xf32>
    %51 = vector.extract_strided_slice %48 {offsets = [0, 0, 0], sizes = [2, 8, 16], strides = [1, 1, 1]} : vector<2x8x32xf32> to vector<2x8x16xf32>
    %52 = arith.truncf %51 : vector<2x8x16xf32> to vector<2x8x16xbf16>
    %53 = vector.extract_strided_slice %49 {offsets = [0, 0, 0], sizes = [2, 8, 16], strides = [1, 1, 1]} : vector<2x8x32xf32> to vector<2x8x16xf32>
    %54 = arith.truncf %53 : vector<2x8x16xf32> to vector<2x8x16xbf16>
    %55 = vector.extract_strided_slice %50 {offsets = [0, 0, 0], sizes = [2, 8, 16], strides = [1, 1, 1]} : vector<2x8x32xf32> to vector<2x8x16xf32>
    %56 = arith.truncf %55 : vector<2x8x16xf32> to vector<2x8x16xbf16>
    "tpu.trace_start"() <{level = 10 : i32, message = "bqd,bkd->bqk"}> : () -> ()
    %cst_26 = arith.constant dense<0.000000e+00> : vector<2x8x8xf32>
    %57 = tpu.matmul %52, %54, %cst_26 {dimension_numbers = #tpu.dot_dimension_numbers<[2], [2], [1], [1], [0, 0, 0, 1, 1, 1], [0], [0]>} : vector<2x8x16xbf16>, vector<2x8x16xbf16>, vector<2x8x8xf32> -> vector<2x8x8xf32>
    "tpu.trace_stop"() : () -> ()
    %cst_27 = arith.constant 2.500000e-01 : f32
    %58 = vector.broadcast %cst_27 : f32 to vector<2x8x8xf32>
    %59 = arith.mulf %57, %58 : vector<2x8x8xf32>
    %60 = arith.addf %59, %38 : vector<2x8x8xf32>
    %cst_28 = arith.constant dense<0xFF800000> : vector<2x8xf32>
    %61 = vector.multi_reduction <maximumf>, %60, %cst_28 [2] : vector<2x8x8xf32> to vector<2x8xf32>
    %62 = vector.shape_cast %61 : vector<2x8xf32> to vector<2x8x1xf32>
    %63 = vector.broadcast %62 : vector<2x8x1xf32> to vector<2x8x8xf32>
    %64 = arith.subf %60, %63 : vector<2x8x8xf32>
    %65 = math.exp %64 : vector<2x8x8xf32>
    %cst_29 = arith.constant dense<0.000000e+00> : vector<2x8xf32>
    %66 = vector.multi_reduction <add>, %65, %cst_29 [2] : vector<2x8x8xf32> to vector<2x8xf32>
    %67 = vector.shape_cast %66 : vector<2x8xf32> to vector<2x8x1xf32>
    %68 = tpu.reciprocal %67 {approx = true} : vector<2x8x1xf32> -> vector<2x8x1xf32>
    %69 = vector.broadcast %68 : vector<2x8x1xf32> to vector<2x8x8xf32>
    %70 = arith.mulf %65, %69 : vector<2x8x8xf32>
    %71 = arith.truncf %70 : vector<2x8x8xf32> to vector<2x8x8xbf16>
    "tpu.trace_start"() <{level = 10 : i32, message = "bqk,bkd->bqd"}> : () -> ()
    %cst_30 = arith.constant dense<0.000000e+00> : vector<2x8x16xf32>
    %72 = tpu.matmul %71, %56, %cst_30 {dimension_numbers = #tpu.dot_dimension_numbers<[2], [1], [1], [2], [0, 0, 0, 1, 1, 2], [0], [0]>} : vector<2x8x8xbf16>, vector<2x8x16xbf16>, vector<2x8x16xf32> -> vector<2x8x16xf32>
    "tpu.trace_stop"() : () -> ()
    %73 = vector.extract_strided_slice %48 {offsets = [0, 0, 16], sizes = [2, 8, 16], strides = [1, 1, 1]} : vector<2x8x32xf32> to vector<2x8x16xf32>
    %74 = arith.truncf %73 : vector<2x8x16xf32> to vector<2x8x16xbf16>
    %75 = vector.extract_strided_slice %49 {offsets = [0, 0, 16], sizes = [2, 8, 16], strides = [1, 1, 1]} : vector<2x8x32xf32> to vector<2x8x16xf32>
    %76 = arith.truncf %75 : vector<2x8x16xf32> to vector<2x8x16xbf16>
    %77 = vector.extract_strided_slice %50 {offsets = [0, 0, 16], sizes = [2, 8, 16], strides = [1, 1, 1]} : vector<2x8x32xf32> to vector<2x8x16xf32>
    %78 = arith.truncf %77 : vector<2x8x16xf32> to vector<2x8x16xbf16>
    "tpu.trace_start"() <{level = 10 : i32, message = "bqd,bkd->bqk"}> : () -> ()
    %cst_31 = arith.constant dense<0.000000e+00> : vector<2x8x8xf32>
    %79 = tpu.matmul %74, %76, %cst_31 {dimension_numbers = #tpu.dot_dimension_numbers<[2], [2], [1], [1], [0, 0, 0, 1, 1, 1], [0], [0]>} : vector<2x8x16xbf16>, vector<2x8x16xbf16>, vector<2x8x8xf32> -> vector<2x8x8xf32>
    "tpu.trace_stop"() : () -> ()
    %cst_32 = arith.constant 2.500000e-01 : f32
    %80 = vector.broadcast %cst_32 : f32 to vector<2x8x8xf32>
    %81 = arith.mulf %79, %80 : vector<2x8x8xf32>
    %82 = arith.addf %81, %38 : vector<2x8x8xf32>
    %cst_33 = arith.constant dense<0xFF800000> : vector<2x8xf32>
    %83 = vector.multi_reduction <maximumf>, %82, %cst_33 [2] : vector<2x8x8xf32> to vector<2x8xf32>
    %84 = vector.shape_cast %83 : vector<2x8xf32> to vector<2x8x1xf32>
    %85 = vector.broadcast %84 : vector<2x8x1xf32> to vector<2x8x8xf32>
    %86 = arith.subf %82, %85 : vector<2x8x8xf32>
    %87 = math.exp %86 : vector<2x8x8xf32>
    %cst_34 = arith.constant dense<0.000000e+00> : vector<2x8xf32>
    %88 = vector.multi_reduction <add>, %87, %cst_34 [2] : vector<2x8x8xf32> to vector<2x8xf32>
    %89 = vector.shape_cast %88 : vector<2x8xf32> to vector<2x8x1xf32>
    %90 = tpu.reciprocal %89 {approx = true} : vector<2x8x1xf32> -> vector<2x8x1xf32>
    %91 = vector.broadcast %90 : vector<2x8x1xf32> to vector<2x8x8xf32>
    %92 = arith.mulf %87, %91 : vector<2x8x8xf32>
    %93 = arith.truncf %92 : vector<2x8x8xf32> to vector<2x8x8xbf16>
    "tpu.trace_start"() <{level = 10 : i32, message = "bqk,bkd->bqd"}> : () -> ()
    %cst_35 = arith.constant dense<0.000000e+00> : vector<2x8x16xf32>
    %94 = tpu.matmul %93, %78, %cst_35 {dimension_numbers = #tpu.dot_dimension_numbers<[2], [1], [1], [2], [0, 0, 0, 1, 1, 2], [0], [0]>} : vector<2x8x8xbf16>, vector<2x8x16xbf16>, vector<2x8x16xf32> -> vector<2x8x16xf32>
    "tpu.trace_stop"() : () -> ()
    %95 = tpu.concatenate %72, %94 in 2 : vector<2x8x16xf32>, vector<2x8x16xf32> -> vector<2x8x32xf32>
    %96 = vector.shape_cast %95 : vector<2x8x32xf32> to vector<16x32xf32>
    %97 = arith.truncf %96 : vector<16x32xf32> to vector<16x32xbf16>
    %c0_36 = arith.constant 0 : index
    %c0_37 = arith.constant 0 : index
    %c0_38 = arith.constant 0 : index
    %98 = vector.load %arg8[%c0_36, %c0_37, %c0_38] : memref<4x32x32xbf16, #tpu.memory_space<vmem>>, vector<1x32x32xbf16>
    %99 = vector.shape_cast %98 : vector<1x32x32xbf16> to vector<32x32xbf16>
    %cst_39 = arith.constant dense<0.000000e+00> : vector<16x32xf32>
    %100 = tpu.matmul %97, %99, %cst_39 {dimension_numbers = #tpu.dot_dimension_numbers<[1], [0], [0], [1], [0, 0, 1, 1], [], []>} : vector<16x32xbf16>, vector<32x32xbf16>, vector<16x32xf32> -> vector<16x32xf32>
    %c0_40 = arith.constant 0 : index
    %c0_41 = arith.constant 0 : index
    %c0_42 = arith.constant 0 : index
    %101 = vector.load %arg9[%c0_40, %c0_41, %c0_42] : memref<4x1x32xf32, #tpu.memory_space<vmem>>, vector<1x1x32xf32>
    %102 = vector.shape_cast %101 : vector<1x1x32xf32> to vector<1x32xf32>
    %103 = vector.broadcast %102 : vector<1x32xf32> to vector<16x32xf32>
    %104 = arith.addf %100, %103 : vector<16x32xf32>
    %105 = arith.addf %35, %104 : vector<16x32xf32>
    %c0_43 = arith.constant 0 : index
    %c0_44 = arith.constant 0 : index
    %c0_45 = arith.constant 0 : index
    %106 = vector.load %arg10[%c0_43, %c0_44, %c0_45] : memref<4x1x32xf32, #tpu.memory_space<vmem>>, vector<1x1x32xf32>
    %107 = vector.shape_cast %106 : vector<1x1x32xf32> to vector<1x32xf32>
    %c0_46 = arith.constant 0 : index
    %c0_47 = arith.constant 0 : index
    %c0_48 = arith.constant 0 : index
    %108 = vector.load %arg11[%c0_46, %c0_47, %c0_48] : memref<4x1x32xf32, #tpu.memory_space<vmem>>, vector<1x1x32xf32>
    %109 = vector.shape_cast %108 : vector<1x1x32xf32> to vector<1x32xf32>
    %cst_49 = arith.constant dense<0.000000e+00> : vector<16xf32>
    %110 = vector.multi_reduction <add>, %105, %cst_49 [1] : vector<16x32xf32> to vector<16xf32>
    %111 = vector.shape_cast %110 : vector<16xf32> to vector<16x1xf32>
    %cst_50 = arith.constant 3.200000e+01 : f32
    %112 = vector.broadcast %cst_50 : f32 to vector<16x1xf32>
    %113 = arith.divf %111, %112 : vector<16x1xf32>
    %114 = vector.broadcast %113 : vector<16x1xf32> to vector<16x32xf32>
    %115 = arith.subf %105, %114 : vector<16x32xf32>
    %116 = arith.mulf %115, %115 : vector<16x32xf32>
    %cst_51 = arith.constant dense<0.000000e+00> : vector<16xf32>
    %117 = vector.multi_reduction <add>, %116, %cst_51 [1] : vector<16x32xf32> to vector<16xf32>
    %118 = vector.shape_cast %117 : vector<16xf32> to vector<16x1xf32>
    %cst_52 = arith.constant 3.200000e+01 : f32
    %119 = vector.broadcast %cst_52 : f32 to vector<16x1xf32>
    %120 = arith.divf %118, %119 : vector<16x1xf32>
    %121 = vector.broadcast %113 : vector<16x1xf32> to vector<16x32xf32>
    %122 = arith.subf %105, %121 : vector<16x32xf32>
    %cst_53 = arith.constant 9.99999996E-13 : f32
    %123 = vector.broadcast %cst_53 : f32 to vector<16x1xf32>
    %124 = arith.addf %120, %123 : vector<16x1xf32>
    %125 = math.rsqrt %124 : vector<16x1xf32>
    %126 = vector.broadcast %125 : vector<16x1xf32> to vector<16x32xf32>
    %127 = arith.mulf %122, %126 : vector<16x32xf32>
    %128 = vector.broadcast %107 : vector<1x32xf32> to vector<16x32xf32>
    %129 = arith.mulf %127, %128 : vector<16x32xf32>
    %130 = vector.broadcast %109 : vector<1x32xf32> to vector<16x32xf32>
    %131 = arith.addf %129, %130 : vector<16x32xf32>
    %132 = arith.truncf %131 : vector<16x32xf32> to vector<16x32xbf16>
    %c0_54 = arith.constant 0 : index
    %c0_55 = arith.constant 0 : index
    %c0_56 = arith.constant 0 : index
    %133 = vector.load %arg12[%c0_54, %c0_55, %c0_56] : memref<4x32x64xbf16, #tpu.memory_space<vmem>>, vector<1x32x64xbf16>
    %134 = vector.shape_cast %133 : vector<1x32x64xbf16> to vector<32x64xbf16>
    %cst_57 = arith.constant dense<0.000000e+00> : vector<16x64xf32>
    %135 = tpu.matmul %132, %134, %cst_57 {dimension_numbers = #tpu.dot_dimension_numbers<[1], [0], [0], [1], [0, 0, 1, 1], [], []>} : vector<16x32xbf16>, vector<32x64xbf16>, vector<16x64xf32> -> vector<16x64xf32>
    %c0_58 = arith.constant 0 : index
    %c0_59 = arith.constant 0 : index
    %c0_60 = arith.constant 0 : index
    %136 = vector.load %arg13[%c0_58, %c0_59, %c0_60] : memref<4x1x64xf32, #tpu.memory_space<vmem>>, vector<1x1x64xf32>
    %137 = vector.shape_cast %136 : vector<1x1x64xf32> to vector<1x64xf32>
    %138 = vector.broadcast %137 : vector<1x64xf32> to vector<16x64xf32>
    %139 = arith.addf %135, %138 : vector<16x64xf32>
    %cst_61 = arith.constant 5.000000e-01 : f32
    %140 = vector.broadcast %cst_61 : f32 to vector<16x64xf32>
    %141 = arith.mulf %140, %139 : vector<16x64xf32>
    %cst_62 = arith.constant 4.471500e-02 : f32
    %142 = vector.broadcast %cst_62 : f32 to vector<16x64xf32>
    %143 = arith.mulf %142, %139 : vector<16x64xf32>
    %144 = arith.mulf %143, %139 : vector<16x64xf32>
    %145 = arith.mulf %144, %139 : vector<16x64xf32>
    %146 = arith.addf %139, %145 : vector<16x64xf32>
    %cst_63 = arith.constant 0.797884583 : f32
    %147 = vector.broadcast %cst_63 : f32 to vector<16x64xf32>
    %148 = arith.mulf %147, %146 : vector<16x64xf32>
    %149 = math.tanh %148 : vector<16x64xf32>
    %cst_64 = arith.constant 1.000000e+00 : f32
    %150 = vector.broadcast %cst_64 : f32 to vector<16x64xf32>
    %151 = arith.addf %150, %149 : vector<16x64xf32>
    %152 = arith.mulf %141, %151 : vector<16x64xf32>
    %153 = arith.truncf %152 : vector<16x64xf32> to vector<16x64xbf16>
    %c0_65 = arith.constant 0 : index
    %c0_66 = arith.constant 0 : index
    %c0_67 = arith.constant 0 : index
    %154 = vector.load %arg14[%c0_65, %c0_66, %c0_67] : memref<4x64x32xbf16, #tpu.memory_space<vmem>>, vector<1x64x32xbf16>
    %155 = vector.shape_cast %154 : vector<1x64x32xbf16> to vector<64x32xbf16>
    %cst_68 = arith.constant dense<0.000000e+00> : vector<16x32xf32>
    %156 = tpu.matmul %153, %155, %cst_68 {dimension_numbers = #tpu.dot_dimension_numbers<[1], [0], [0], [1], [0, 0, 1, 1], [], []>} : vector<16x64xbf16>, vector<64x32xbf16>, vector<16x32xf32> -> vector<16x32xf32>
    %c0_69 = arith.constant 0 : index
    %c0_70 = arith.constant 0 : index
    %c0_71 = arith.constant 0 : index
    %157 = vector.load %arg15[%c0_69, %c0_70, %c0_71] : memref<4x1x32xf32, #tpu.memory_space<vmem>>, vector<1x1x32xf32>
    %158 = vector.shape_cast %157 : vector<1x1x32xf32> to vector<1x32xf32>
    %159 = vector.broadcast %158 : vector<1x32xf32> to vector<16x32xf32>
    %160 = arith.addf %156, %159 : vector<16x32xf32>
    %161 = arith.addf %131, %160 : vector<16x32xf32>
    %c0_72 = arith.constant 0 : index
    %c0_73 = arith.constant 0 : index
    %c0_74 = arith.constant 0 : index
    %162 = vector.load %arg16[%c0_72, %c0_73, %c0_74] : memref<4x1x32xf32, #tpu.memory_space<vmem>>, vector<1x1x32xf32>
    %163 = vector.shape_cast %162 : vector<1x1x32xf32> to vector<1x32xf32>
    %c0_75 = arith.constant 0 : index
    %c0_76 = arith.constant 0 : index
    %c0_77 = arith.constant 0 : index
    %164 = vector.load %arg17[%c0_75, %c0_76, %c0_77] : memref<4x1x32xf32, #tpu.memory_space<vmem>>, vector<1x1x32xf32>
    %165 = vector.shape_cast %164 : vector<1x1x32xf32> to vector<1x32xf32>
    %cst_78 = arith.constant dense<0.000000e+00> : vector<16xf32>
    %166 = vector.multi_reduction <add>, %161, %cst_78 [1] : vector<16x32xf32> to vector<16xf32>
    %167 = vector.shape_cast %166 : vector<16xf32> to vector<16x1xf32>
    %cst_79 = arith.constant 3.200000e+01 : f32
    %168 = vector.broadcast %cst_79 : f32 to vector<16x1xf32>
    %169 = arith.divf %167, %168 : vector<16x1xf32>
    %170 = vector.broadcast %169 : vector<16x1xf32> to vector<16x32xf32>
    %171 = arith.subf %161, %170 : vector<16x32xf32>
    %172 = arith.mulf %171, %171 : vector<16x32xf32>
    %cst_80 = arith.constant dense<0.000000e+00> : vector<16xf32>
    %173 = vector.multi_reduction <add>, %172, %cst_80 [1] : vector<16x32xf32> to vector<16xf32>
    %174 = vector.shape_cast %173 : vector<16xf32> to vector<16x1xf32>
    %cst_81 = arith.constant 3.200000e+01 : f32
    %175 = vector.broadcast %cst_81 : f32 to vector<16x1xf32>
    %176 = arith.divf %174, %175 : vector<16x1xf32>
    %177 = vector.broadcast %169 : vector<16x1xf32> to vector<16x32xf32>
    %178 = arith.subf %161, %177 : vector<16x32xf32>
    %cst_82 = arith.constant 9.99999996E-13 : f32
    %179 = vector.broadcast %cst_82 : f32 to vector<16x1xf32>
    %180 = arith.addf %176, %179 : vector<16x1xf32>
    %181 = math.rsqrt %180 : vector<16x1xf32>
    %182 = vector.broadcast %181 : vector<16x1xf32> to vector<16x32xf32>
    %183 = arith.mulf %178, %182 : vector<16x32xf32>
    %184 = vector.broadcast %163 : vector<1x32xf32> to vector<16x32xf32>
    %185 = arith.mulf %183, %184 : vector<16x32xf32>
    %186 = vector.broadcast %165 : vector<1x32xf32> to vector<16x32xf32>
    %187 = arith.addf %185, %186 : vector<16x32xf32>
    %188 = arith.truncf %187 : vector<16x32xf32> to vector<16x32xbf16>
    %c1 = arith.constant 1 : index
    %c0_83 = arith.constant 0 : index
    %c0_84 = arith.constant 0 : index
    %189 = vector.load %arg6[%c1, %c0_83, %c0_84] : memref<4x32x96xbf16, #tpu.memory_space<vmem>>, vector<1x32x96xbf16>
    %190 = vector.shape_cast %189 : vector<1x32x96xbf16> to vector<32x96xbf16>
    %cst_85 = arith.constant dense<0.000000e+00> : vector<16x96xf32>
    %191 = tpu.matmul %188, %190, %cst_85 {dimension_numbers = #tpu.dot_dimension_numbers<[1], [0], [0], [1], [0, 0, 1, 1], [], []>} : vector<16x32xbf16>, vector<32x96xbf16>, vector<16x96xf32> -> vector<16x96xf32>
    %c1_86 = arith.constant 1 : index
    %c0_87 = arith.constant 0 : index
    %c0_88 = arith.constant 0 : index
    %192 = vector.load %arg7[%c1_86, %c0_87, %c0_88] : memref<4x1x96xf32, #tpu.memory_space<vmem>>, vector<1x1x96xf32>
    %193 = vector.shape_cast %192 : vector<1x1x96xf32> to vector<1x96xf32>
    %194 = vector.broadcast %193 : vector<1x96xf32> to vector<16x96xf32>
    %195 = arith.addf %191, %194 : vector<16x96xf32>
    %196 = vector.shape_cast %195 : vector<16x96xf32> to vector<2x8x96xf32>
    %197 = vector.extract_strided_slice %196 {offsets = [0, 0, 0], sizes = [2, 8, 32], strides = [1, 1, 1]} : vector<2x8x96xf32> to vector<2x8x32xf32>
    %198 = vector.extract_strided_slice %196 {offsets = [0, 0, 32], sizes = [2, 8, 32], strides = [1, 1, 1]} : vector<2x8x96xf32> to vector<2x8x32xf32>
    %199 = vector.extract_strided_slice %196 {offsets = [0, 0, 64], sizes = [2, 8, 32], strides = [1, 1, 1]} : vector<2x8x96xf32> to vector<2x8x32xf32>
    %200 = vector.extract_strided_slice %197 {offsets = [0, 0, 0], sizes = [2, 8, 16], strides = [1, 1, 1]} : vector<2x8x32xf32> to vector<2x8x16xf32>
    %201 = arith.truncf %200 : vector<2x8x16xf32> to vector<2x8x16xbf16>
    %202 = vector.extract_strided_slice %198 {offsets = [0, 0, 0], sizes = [2, 8, 16], strides = [1, 1, 1]} : vector<2x8x32xf32> to vector<2x8x16xf32>
    %203 = arith.truncf %202 : vector<2x8x16xf32> to vector<2x8x16xbf16>
    %204 = vector.extract_strided_slice %199 {offsets = [0, 0, 0], sizes = [2, 8, 16], strides = [1, 1, 1]} : vector<2x8x32xf32> to vector<2x8x16xf32>
    %205 = arith.truncf %204 : vector<2x8x16xf32> to vector<2x8x16xbf16>
    "tpu.trace_start"() <{level = 10 : i32, message = "bqd,bkd->bqk"}> : () -> ()
    %cst_89 = arith.constant dense<0.000000e+00> : vector<2x8x8xf32>
    %206 = tpu.matmul %201, %203, %cst_89 {dimension_numbers = #tpu.dot_dimension_numbers<[2], [2], [1], [1], [0, 0, 0, 1, 1, 1], [0], [0]>} : vector<2x8x16xbf16>, vector<2x8x16xbf16>, vector<2x8x8xf32> -> vector<2x8x8xf32>
    "tpu.trace_stop"() : () -> ()
    %cst_90 = arith.constant 2.500000e-01 : f32
    %207 = vector.broadcast %cst_90 : f32 to vector<2x8x8xf32>
    %208 = arith.mulf %206, %207 : vector<2x8x8xf32>
    %209 = arith.addf %208, %38 : vector<2x8x8xf32>
    %cst_91 = arith.constant dense<0xFF800000> : vector<2x8xf32>
    %210 = vector.multi_reduction <maximumf>, %209, %cst_91 [2] : vector<2x8x8xf32> to vector<2x8xf32>
    %211 = vector.shape_cast %210 : vector<2x8xf32> to vector<2x8x1xf32>
    %212 = vector.broadcast %211 : vector<2x8x1xf32> to vector<2x8x8xf32>
    %213 = arith.subf %209, %212 : vector<2x8x8xf32>
    %214 = math.exp %213 : vector<2x8x8xf32>
    %cst_92 = arith.constant dense<0.000000e+00> : vector<2x8xf32>
    %215 = vector.multi_reduction <add>, %214, %cst_92 [2] : vector<2x8x8xf32> to vector<2x8xf32>
    %216 = vector.shape_cast %215 : vector<2x8xf32> to vector<2x8x1xf32>
    %217 = tpu.reciprocal %216 {approx = true} : vector<2x8x1xf32> -> vector<2x8x1xf32>
    %218 = vector.broadcast %217 : vector<2x8x1xf32> to vector<2x8x8xf32>
    %219 = arith.mulf %214, %218 : vector<2x8x8xf32>
    %220 = arith.truncf %219 : vector<2x8x8xf32> to vector<2x8x8xbf16>
    "tpu.trace_start"() <{level = 10 : i32, message = "bqk,bkd->bqd"}> : () -> ()
    %cst_93 = arith.constant dense<0.000000e+00> : vector<2x8x16xf32>
    %221 = tpu.matmul %220, %205, %cst_93 {dimension_numbers = #tpu.dot_dimension_numbers<[2], [1], [1], [2], [0, 0, 0, 1, 1, 2], [0], [0]>} : vector<2x8x8xbf16>, vector<2x8x16xbf16>, vector<2x8x16xf32> -> vector<2x8x16xf32>
    "tpu.trace_stop"() : () -> ()
    %222 = vector.extract_strided_slice %197 {offsets = [0, 0, 16], sizes = [2, 8, 16], strides = [1, 1, 1]} : vector<2x8x32xf32> to vector<2x8x16xf32>
    %223 = arith.truncf %222 : vector<2x8x16xf32> to vector<2x8x16xbf16>
    %224 = vector.extract_strided_slice %198 {offsets = [0, 0, 16], sizes = [2, 8, 16], strides = [1, 1, 1]} : vector<2x8x32xf32> to vector<2x8x16xf32>
    %225 = arith.truncf %224 : vector<2x8x16xf32> to vector<2x8x16xbf16>
    %226 = vector.extract_strided_slice %199 {offsets = [0, 0, 16], sizes = [2, 8, 16], strides = [1, 1, 1]} : vector<2x8x32xf32> to vector<2x8x16xf32>
    %227 = arith.truncf %226 : vector<2x8x16xf32> to vector<2x8x16xbf16>
    "tpu.trace_start"() <{level = 10 : i32, message = "bqd,bkd->bqk"}> : () -> ()
    %cst_94 = arith.constant dense<0.000000e+00> : vector<2x8x8xf32>
    %228 = tpu.matmul %223, %225, %cst_94 {dimension_numbers = #tpu.dot_dimension_numbers<[2], [2], [1], [1], [0, 0, 0, 1, 1, 1], [0], [0]>} : vector<2x8x16xbf16>, vector<2x8x16xbf16>, vector<2x8x8xf32> -> vector<2x8x8xf32>
    "tpu.trace_stop"() : () -> ()
    %cst_95 = arith.constant 2.500000e-01 : f32
    %229 = vector.broadcast %cst_95 : f32 to vector<2x8x8xf32>
    %230 = arith.mulf %228, %229 : vector<2x8x8xf32>
    %231 = arith.addf %230, %38 : vector<2x8x8xf32>
    %cst_96 = arith.constant dense<0xFF800000> : vector<2x8xf32>
    %232 = vector.multi_reduction <maximumf>, %231, %cst_96 [2] : vector<2x8x8xf32> to vector<2x8xf32>
    %233 = vector.shape_cast %232 : vector<2x8xf32> to vector<2x8x1xf32>
    %234 = vector.broadcast %233 : vector<2x8x1xf32> to vector<2x8x8xf32>
    %235 = arith.subf %231, %234 : vector<2x8x8xf32>
    %236 = math.exp %235 : vector<2x8x8xf32>
    %cst_97 = arith.constant dense<0.000000e+00> : vector<2x8xf32>
    %237 = vector.multi_reduction <add>, %236, %cst_97 [2] : vector<2x8x8xf32> to vector<2x8xf32>
    %238 = vector.shape_cast %237 : vector<2x8xf32> to vector<2x8x1xf32>
    %239 = tpu.reciprocal %238 {approx = true} : vector<2x8x1xf32> -> vector<2x8x1xf32>
    %240 = vector.broadcast %239 : vector<2x8x1xf32> to vector<2x8x8xf32>
    %241 = arith.mulf %236, %240 : vector<2x8x8xf32>
    %242 = arith.truncf %241 : vector<2x8x8xf32> to vector<2x8x8xbf16>
    "tpu.trace_start"() <{level = 10 : i32, message = "bqk,bkd->bqd"}> : () -> ()
    %cst_98 = arith.constant dense<0.000000e+00> : vector<2x8x16xf32>
    %243 = tpu.matmul %242, %227, %cst_98 {dimension_numbers = #tpu.dot_dimension_numbers<[2], [1], [1], [2], [0, 0, 0, 1, 1, 2], [0], [0]>} : vector<2x8x8xbf16>, vector<2x8x16xbf16>, vector<2x8x16xf32> -> vector<2x8x16xf32>
    "tpu.trace_stop"() : () -> ()
    %244 = tpu.concatenate %221, %243 in 2 : vector<2x8x16xf32>, vector<2x8x16xf32> -> vector<2x8x32xf32>
    %245 = vector.shape_cast %244 : vector<2x8x32xf32> to vector<16x32xf32>
    %246 = arith.truncf %245 : vector<16x32xf32> to vector<16x32xbf16>
    %c1_99 = arith.constant 1 : index
    %c0_100 = arith.constant 0 : index
    %c0_101 = arith.constant 0 : index
    %247 = vector.load %arg8[%c1_99, %c0_100, %c0_101] : memref<4x32x32xbf16, #tpu.memory_space<vmem>>, vector<1x32x32xbf16>
    %248 = vector.shape_cast %247 : vector<1x32x32xbf16> to vector<32x32xbf16>
    %cst_102 = arith.constant dense<0.000000e+00> : vector<16x32xf32>
    %249 = tpu.matmul %246, %248, %cst_102 {dimension_numbers = #tpu.dot_dimension_numbers<[1], [0], [0], [1], [0, 0, 1, 1], [], []>} : vector<16x32xbf16>, vector<32x32xbf16>, vector<16x32xf32> -> vector<16x32xf32>
    %c1_103 = arith.constant 1 : index
    %c0_104 = arith.constant 0 : index
    %c0_105 = arith.constant 0 : index
    %250 = vector.load %arg9[%c1_103, %c0_104, %c0_105] : memref<4x1x32xf32, #tpu.memory_space<vmem>>, vector<1x1x32xf32>
    %251 = vector.shape_cast %250 : vector<1x1x32xf32> to vector<1x32xf32>
    %252 = vector.broadcast %251 : vector<1x32xf32> to vector<16x32xf32>
    %253 = arith.addf %249, %252 : vector<16x32xf32>
    %254 = arith.addf %187, %253 : vector<16x32xf32>
    %c1_106 = arith.constant 1 : index
    %c0_107 = arith.constant 0 : index
    %c0_108 = arith.constant 0 : index
    %255 = vector.load %arg10[%c1_106, %c0_107, %c0_108] : memref<4x1x32xf32, #tpu.memory_space<vmem>>, vector<1x1x32xf32>
    %256 = vector.shape_cast %255 : vector<1x1x32xf32> to vector<1x32xf32>
    %c1_109 = arith.constant 1 : index
    %c0_110 = arith.constant 0 : index
    %c0_111 = arith.constant 0 : index
    %257 = vector.load %arg11[%c1_109, %c0_110, %c0_111] : memref<4x1x32xf32, #tpu.memory_space<vmem>>, vector<1x1x32xf32>
    %258 = vector.shape_cast %257 : vector<1x1x32xf32> to vector<1x32xf32>
    %cst_112 = arith.constant dense<0.000000e+00> : vector<16xf32>
    %259 = vector.multi_reduction <add>, %254, %cst_112 [1] : vector<16x32xf32> to vector<16xf32>
    %260 = vector.shape_cast %259 : vector<16xf32> to vector<16x1xf32>
    %cst_113 = arith.constant 3.200000e+01 : f32
    %261 = vector.broadcast %cst_113 : f32 to vector<16x1xf32>
    %262 = arith.divf %260, %261 : vector<16x1xf32>
    %263 = vector.broadcast %262 : vector<16x1xf32> to vector<16x32xf32>
    %264 = arith.subf %254, %263 : vector<16x32xf32>
    %265 = arith.mulf %264, %264 : vector<16x32xf32>
    %cst_114 = arith.constant dense<0.000000e+00> : vector<16xf32>
    %266 = vector.multi_reduction <add>, %265, %cst_114 [1] : vector<16x32xf32> to vector<16xf32>
    %267 = vector.shape_cast %266 : vector<16xf32> to vector<16x1xf32>
    %cst_115 = arith.constant 3.200000e+01 : f32
    %268 = vector.broadcast %cst_115 : f32 to vector<16x1xf32>
    %269 = arith.divf %267, %268 : vector<16x1xf32>
    %270 = vector.broadcast %262 : vector<16x1xf32> to vector<16x32xf32>
    %271 = arith.subf %254, %270 : vector<16x32xf32>
    %cst_116 = arith.constant 9.99999996E-13 : f32
    %272 = vector.broadcast %cst_116 : f32 to vector<16x1xf32>
    %273 = arith.addf %269, %272 : vector<16x1xf32>
    %274 = math.rsqrt %273 : vector<16x1xf32>
    %275 = vector.broadcast %274 : vector<16x1xf32> to vector<16x32xf32>
    %276 = arith.mulf %271, %275 : vector<16x32xf32>
    %277 = vector.broadcast %256 : vector<1x32xf32> to vector<16x32xf32>
    %278 = arith.mulf %276, %277 : vector<16x32xf32>
    %279 = vector.broadcast %258 : vector<1x32xf32> to vector<16x32xf32>
    %280 = arith.addf %278, %279 : vector<16x32xf32>
    %281 = arith.truncf %280 : vector<16x32xf32> to vector<16x32xbf16>
    %c1_117 = arith.constant 1 : index
    %c0_118 = arith.constant 0 : index
    %c0_119 = arith.constant 0 : index
    %282 = vector.load %arg12[%c1_117, %c0_118, %c0_119] : memref<4x32x64xbf16, #tpu.memory_space<vmem>>, vector<1x32x64xbf16>
    %283 = vector.shape_cast %282 : vector<1x32x64xbf16> to vector<32x64xbf16>
    %cst_120 = arith.constant dense<0.000000e+00> : vector<16x64xf32>
    %284 = tpu.matmul %281, %283, %cst_120 {dimension_numbers = #tpu.dot_dimension_numbers<[1], [0], [0], [1], [0, 0, 1, 1], [], []>} : vector<16x32xbf16>, vector<32x64xbf16>, vector<16x64xf32> -> vector<16x64xf32>
    %c1_121 = arith.constant 1 : index
    %c0_122 = arith.constant 0 : index
    %c0_123 = arith.constant 0 : index
    %285 = vector.load %arg13[%c1_121, %c0_122, %c0_123] : memref<4x1x64xf32, #tpu.memory_space<vmem>>, vector<1x1x64xf32>
    %286 = vector.shape_cast %285 : vector<1x1x64xf32> to vector<1x64xf32>
    %287 = vector.broadcast %286 : vector<1x64xf32> to vector<16x64xf32>
    %288 = arith.addf %284, %287 : vector<16x64xf32>
    %cst_124 = arith.constant 5.000000e-01 : f32
    %289 = vector.broadcast %cst_124 : f32 to vector<16x64xf32>
    %290 = arith.mulf %289, %288 : vector<16x64xf32>
    %cst_125 = arith.constant 4.471500e-02 : f32
    %291 = vector.broadcast %cst_125 : f32 to vector<16x64xf32>
    %292 = arith.mulf %291, %288 : vector<16x64xf32>
    %293 = arith.mulf %292, %288 : vector<16x64xf32>
    %294 = arith.mulf %293, %288 : vector<16x64xf32>
    %295 = arith.addf %288, %294 : vector<16x64xf32>
    %cst_126 = arith.constant 0.797884583 : f32
    %296 = vector.broadcast %cst_126 : f32 to vector<16x64xf32>
    %297 = arith.mulf %296, %295 : vector<16x64xf32>
    %298 = math.tanh %297 : vector<16x64xf32>
    %cst_127 = arith.constant 1.000000e+00 : f32
    %299 = vector.broadcast %cst_127 : f32 to vector<16x64xf32>
    %300 = arith.addf %299, %298 : vector<16x64xf32>
    %301 = arith.mulf %290, %300 : vector<16x64xf32>
    %302 = arith.truncf %301 : vector<16x64xf32> to vector<16x64xbf16>
    %c1_128 = arith.constant 1 : index
    %c0_129 = arith.constant 0 : index
    %c0_130 = arith.constant 0 : index
    %303 = vector.load %arg14[%c1_128, %c0_129, %c0_130] : memref<4x64x32xbf16, #tpu.memory_space<vmem>>, vector<1x64x32xbf16>
    %304 = vector.shape_cast %303 : vector<1x64x32xbf16> to vector<64x32xbf16>
    %cst_131 = arith.constant dense<0.000000e+00> : vector<16x32xf32>
    %305 = tpu.matmul %302, %304, %cst_131 {dimension_numbers = #tpu.dot_dimension_numbers<[1], [0], [0], [1], [0, 0, 1, 1], [], []>} : vector<16x64xbf16>, vector<64x32xbf16>, vector<16x32xf32> -> vector<16x32xf32>
    %c1_132 = arith.constant 1 : index
    %c0_133 = arith.constant 0 : index
    %c0_134 = arith.constant 0 : index
    %306 = vector.load %arg15[%c1_132, %c0_133, %c0_134] : memref<4x1x32xf32, #tpu.memory_space<vmem>>, vector<1x1x32xf32>
    %307 = vector.shape_cast %306 : vector<1x1x32xf32> to vector<1x32xf32>
    %308 = vector.broadcast %307 : vector<1x32xf32> to vector<16x32xf32>
    %309 = arith.addf %305, %308 : vector<16x32xf32>
    %310 = arith.addf %280, %309 : vector<16x32xf32>
    %c1_135 = arith.constant 1 : index
    %c0_136 = arith.constant 0 : index
    %c0_137 = arith.constant 0 : index
    %311 = vector.load %arg16[%c1_135, %c0_136, %c0_137] : memref<4x1x32xf32, #tpu.memory_space<vmem>>, vector<1x1x32xf32>
    %312 = vector.shape_cast %311 : vector<1x1x32xf32> to vector<1x32xf32>
    %c1_138 = arith.constant 1 : index
    %c0_139 = arith.constant 0 : index
    %c0_140 = arith.constant 0 : index
    %313 = vector.load %arg17[%c1_138, %c0_139, %c0_140] : memref<4x1x32xf32, #tpu.memory_space<vmem>>, vector<1x1x32xf32>
    %314 = vector.shape_cast %313 : vector<1x1x32xf32> to vector<1x32xf32>
    %cst_141 = arith.constant dense<0.000000e+00> : vector<16xf32>
    %315 = vector.multi_reduction <add>, %310, %cst_141 [1] : vector<16x32xf32> to vector<16xf32>
    %316 = vector.shape_cast %315 : vector<16xf32> to vector<16x1xf32>
    %cst_142 = arith.constant 3.200000e+01 : f32
    %317 = vector.broadcast %cst_142 : f32 to vector<16x1xf32>
    %318 = arith.divf %316, %317 : vector<16x1xf32>
    %319 = vector.broadcast %318 : vector<16x1xf32> to vector<16x32xf32>
    %320 = arith.subf %310, %319 : vector<16x32xf32>
    %321 = arith.mulf %320, %320 : vector<16x32xf32>
    %cst_143 = arith.constant dense<0.000000e+00> : vector<16xf32>
    %322 = vector.multi_reduction <add>, %321, %cst_143 [1] : vector<16x32xf32> to vector<16xf32>
    %323 = vector.shape_cast %322 : vector<16xf32> to vector<16x1xf32>
    %cst_144 = arith.constant 3.200000e+01 : f32
    %324 = vector.broadcast %cst_144 : f32 to vector<16x1xf32>
    %325 = arith.divf %323, %324 : vector<16x1xf32>
    %326 = vector.broadcast %318 : vector<16x1xf32> to vector<16x32xf32>
    %327 = arith.subf %310, %326 : vector<16x32xf32>
    %cst_145 = arith.constant 9.99999996E-13 : f32
    %328 = vector.broadcast %cst_145 : f32 to vector<16x1xf32>
    %329 = arith.addf %325, %328 : vector<16x1xf32>
    %330 = math.rsqrt %329 : vector<16x1xf32>
    %331 = vector.broadcast %330 : vector<16x1xf32> to vector<16x32xf32>
    %332 = arith.mulf %327, %331 : vector<16x32xf32>
    %333 = vector.broadcast %312 : vector<1x32xf32> to vector<16x32xf32>
    %334 = arith.mulf %332, %333 : vector<16x32xf32>
    %335 = vector.broadcast %314 : vector<1x32xf32> to vector<16x32xf32>
    %336 = arith.addf %334, %335 : vector<16x32xf32>
    %337 = arith.truncf %336 : vector<16x32xf32> to vector<16x32xbf16>
    %c2 = arith.constant 2 : index
    %c0_146 = arith.constant 0 : index
    %c0_147 = arith.constant 0 : index
    %338 = vector.load %arg6[%c2, %c0_146, %c0_147] : memref<4x32x96xbf16, #tpu.memory_space<vmem>>, vector<1x32x96xbf16>
    %339 = vector.shape_cast %338 : vector<1x32x96xbf16> to vector<32x96xbf16>
    %cst_148 = arith.constant dense<0.000000e+00> : vector<16x96xf32>
    %340 = tpu.matmul %337, %339, %cst_148 {dimension_numbers = #tpu.dot_dimension_numbers<[1], [0], [0], [1], [0, 0, 1, 1], [], []>} : vector<16x32xbf16>, vector<32x96xbf16>, vector<16x96xf32> -> vector<16x96xf32>
    %c2_149 = arith.constant 2 : index
    %c0_150 = arith.constant 0 : index
    %c0_151 = arith.constant 0 : index
    %341 = vector.load %arg7[%c2_149, %c0_150, %c0_151] : memref<4x1x96xf32, #tpu.memory_space<vmem>>, vector<1x1x96xf32>
    %342 = vector.shape_cast %341 : vector<1x1x96xf32> to vector<1x96xf32>
    %343 = vector.broadcast %342 : vector<1x96xf32> to vector<16x96xf32>
    %344 = arith.addf %340, %343 : vector<16x96xf32>
    %345 = vector.shape_cast %344 : vector<16x96xf32> to vector<2x8x96xf32>
    %346 = vector.extract_strided_slice %345 {offsets = [0, 0, 0], sizes = [2, 8, 32], strides = [1, 1, 1]} : vector<2x8x96xf32> to vector<2x8x32xf32>
    %347 = vector.extract_strided_slice %345 {offsets = [0, 0, 32], sizes = [2, 8, 32], strides = [1, 1, 1]} : vector<2x8x96xf32> to vector<2x8x32xf32>
    %348 = vector.extract_strided_slice %345 {offsets = [0, 0, 64], sizes = [2, 8, 32], strides = [1, 1, 1]} : vector<2x8x96xf32> to vector<2x8x32xf32>
    %349 = vector.extract_strided_slice %346 {offsets = [0, 0, 0], sizes = [2, 8, 16], strides = [1, 1, 1]} : vector<2x8x32xf32> to vector<2x8x16xf32>
    %350 = arith.truncf %349 : vector<2x8x16xf32> to vector<2x8x16xbf16>
    %351 = vector.extract_strided_slice %347 {offsets = [0, 0, 0], sizes = [2, 8, 16], strides = [1, 1, 1]} : vector<2x8x32xf32> to vector<2x8x16xf32>
    %352 = arith.truncf %351 : vector<2x8x16xf32> to vector<2x8x16xbf16>
    %353 = vector.extract_strided_slice %348 {offsets = [0, 0, 0], sizes = [2, 8, 16], strides = [1, 1, 1]} : vector<2x8x32xf32> to vector<2x8x16xf32>
    %354 = arith.truncf %353 : vector<2x8x16xf32> to vector<2x8x16xbf16>
    "tpu.trace_start"() <{level = 10 : i32, message = "bqd,bkd->bqk"}> : () -> ()
    %cst_152 = arith.constant dense<0.000000e+00> : vector<2x8x8xf32>
    %355 = tpu.matmul %350, %352, %cst_152 {dimension_numbers = #tpu.dot_dimension_numbers<[2], [2], [1], [1], [0, 0, 0, 1, 1, 1], [0], [0]>} : vector<2x8x16xbf16>, vector<2x8x16xbf16>, vector<2x8x8xf32> -> vector<2x8x8xf32>
    "tpu.trace_stop"() : () -> ()
    %cst_153 = arith.constant 2.500000e-01 : f32
    %356 = vector.broadcast %cst_153 : f32 to vector<2x8x8xf32>
    %357 = arith.mulf %355, %356 : vector<2x8x8xf32>
    %358 = arith.addf %357, %38 : vector<2x8x8xf32>
    %cst_154 = arith.constant dense<0xFF800000> : vector<2x8xf32>
    %359 = vector.multi_reduction <maximumf>, %358, %cst_154 [2] : vector<2x8x8xf32> to vector<2x8xf32>
    %360 = vector.shape_cast %359 : vector<2x8xf32> to vector<2x8x1xf32>
    %361 = vector.broadcast %360 : vector<2x8x1xf32> to vector<2x8x8xf32>
    %362 = arith.subf %358, %361 : vector<2x8x8xf32>
    %363 = math.exp %362 : vector<2x8x8xf32>
    %cst_155 = arith.constant dense<0.000000e+00> : vector<2x8xf32>
    %364 = vector.multi_reduction <add>, %363, %cst_155 [2] : vector<2x8x8xf32> to vector<2x8xf32>
    %365 = vector.shape_cast %364 : vector<2x8xf32> to vector<2x8x1xf32>
    %366 = tpu.reciprocal %365 {approx = true} : vector<2x8x1xf32> -> vector<2x8x1xf32>
    %367 = vector.broadcast %366 : vector<2x8x1xf32> to vector<2x8x8xf32>
    %368 = arith.mulf %363, %367 : vector<2x8x8xf32>
    %369 = arith.truncf %368 : vector<2x8x8xf32> to vector<2x8x8xbf16>
    "tpu.trace_start"() <{level = 10 : i32, message = "bqk,bkd->bqd"}> : () -> ()
    %cst_156 = arith.constant dense<0.000000e+00> : vector<2x8x16xf32>
    %370 = tpu.matmul %369, %354, %cst_156 {dimension_numbers = #tpu.dot_dimension_numbers<[2], [1], [1], [2], [0, 0, 0, 1, 1, 2], [0], [0]>} : vector<2x8x8xbf16>, vector<2x8x16xbf16>, vector<2x8x16xf32> -> vector<2x8x16xf32>
    "tpu.trace_stop"() : () -> ()
    %371 = vector.extract_strided_slice %346 {offsets = [0, 0, 16], sizes = [2, 8, 16], strides = [1, 1, 1]} : vector<2x8x32xf32> to vector<2x8x16xf32>
    %372 = arith.truncf %371 : vector<2x8x16xf32> to vector<2x8x16xbf16>
    %373 = vector.extract_strided_slice %347 {offsets = [0, 0, 16], sizes = [2, 8, 16], strides = [1, 1, 1]} : vector<2x8x32xf32> to vector<2x8x16xf32>
    %374 = arith.truncf %373 : vector<2x8x16xf32> to vector<2x8x16xbf16>
    %375 = vector.extract_strided_slice %348 {offsets = [0, 0, 16], sizes = [2, 8, 16], strides = [1, 1, 1]} : vector<2x8x32xf32> to vector<2x8x16xf32>
    %376 = arith.truncf %375 : vector<2x8x16xf32> to vector<2x8x16xbf16>
    "tpu.trace_start"() <{level = 10 : i32, message = "bqd,bkd->bqk"}> : () -> ()
    %cst_157 = arith.constant dense<0.000000e+00> : vector<2x8x8xf32>
    %377 = tpu.matmul %372, %374, %cst_157 {dimension_numbers = #tpu.dot_dimension_numbers<[2], [2], [1], [1], [0, 0, 0, 1, 1, 1], [0], [0]>} : vector<2x8x16xbf16>, vector<2x8x16xbf16>, vector<2x8x8xf32> -> vector<2x8x8xf32>
    "tpu.trace_stop"() : () -> ()
    %cst_158 = arith.constant 2.500000e-01 : f32
    %378 = vector.broadcast %cst_158 : f32 to vector<2x8x8xf32>
    %379 = arith.mulf %377, %378 : vector<2x8x8xf32>
    %380 = arith.addf %379, %38 : vector<2x8x8xf32>
    %cst_159 = arith.constant dense<0xFF800000> : vector<2x8xf32>
    %381 = vector.multi_reduction <maximumf>, %380, %cst_159 [2] : vector<2x8x8xf32> to vector<2x8xf32>
    %382 = vector.shape_cast %381 : vector<2x8xf32> to vector<2x8x1xf32>
    %383 = vector.broadcast %382 : vector<2x8x1xf32> to vector<2x8x8xf32>
    %384 = arith.subf %380, %383 : vector<2x8x8xf32>
    %385 = math.exp %384 : vector<2x8x8xf32>
    %cst_160 = arith.constant dense<0.000000e+00> : vector<2x8xf32>
    %386 = vector.multi_reduction <add>, %385, %cst_160 [2] : vector<2x8x8xf32> to vector<2x8xf32>
    %387 = vector.shape_cast %386 : vector<2x8xf32> to vector<2x8x1xf32>
    %388 = tpu.reciprocal %387 {approx = true} : vector<2x8x1xf32> -> vector<2x8x1xf32>
    %389 = vector.broadcast %388 : vector<2x8x1xf32> to vector<2x8x8xf32>
    %390 = arith.mulf %385, %389 : vector<2x8x8xf32>
    %391 = arith.truncf %390 : vector<2x8x8xf32> to vector<2x8x8xbf16>
    "tpu.trace_start"() <{level = 10 : i32, message = "bqk,bkd->bqd"}> : () -> ()
    %cst_161 = arith.constant dense<0.000000e+00> : vector<2x8x16xf32>
    %392 = tpu.matmul %391, %376, %cst_161 {dimension_numbers = #tpu.dot_dimension_numbers<[2], [1], [1], [2], [0, 0, 0, 1, 1, 2], [0], [0]>} : vector<2x8x8xbf16>, vector<2x8x16xbf16>, vector<2x8x16xf32> -> vector<2x8x16xf32>
    "tpu.trace_stop"() : () -> ()
    %393 = tpu.concatenate %370, %392 in 2 : vector<2x8x16xf32>, vector<2x8x16xf32> -> vector<2x8x32xf32>
    %394 = vector.shape_cast %393 : vector<2x8x32xf32> to vector<16x32xf32>
    %395 = arith.truncf %394 : vector<16x32xf32> to vector<16x32xbf16>
    %c2_162 = arith.constant 2 : index
    %c0_163 = arith.constant 0 : index
    %c0_164 = arith.constant 0 : index
    %396 = vector.load %arg8[%c2_162, %c0_163, %c0_164] : memref<4x32x32xbf16, #tpu.memory_space<vmem>>, vector<1x32x32xbf16>
    %397 = vector.shape_cast %396 : vector<1x32x32xbf16> to vector<32x32xbf16>
    %cst_165 = arith.constant dense<0.000000e+00> : vector<16x32xf32>
    %398 = tpu.matmul %395, %397, %cst_165 {dimension_numbers = #tpu.dot_dimension_numbers<[1], [0], [0], [1], [0, 0, 1, 1], [], []>} : vector<16x32xbf16>, vector<32x32xbf16>, vector<16x32xf32> -> vector<16x32xf32>
    %c2_166 = arith.constant 2 : index
    %c0_167 = arith.constant 0 : index
    %c0_168 = arith.constant 0 : index
    %399 = vector.load %arg9[%c2_166, %c0_167, %c0_168] : memref<4x1x32xf32, #tpu.memory_space<vmem>>, vector<1x1x32xf32>
    %400 = vector.shape_cast %399 : vector<1x1x32xf32> to vector<1x32xf32>
    %401 = vector.broadcast %400 : vector<1x32xf32> to vector<16x32xf32>
    %402 = arith.addf %398, %401 : vector<16x32xf32>
    %403 = arith.addf %336, %402 : vector<16x32xf32>
    %c2_169 = arith.constant 2 : index
    %c0_170 = arith.constant 0 : index
    %c0_171 = arith.constant 0 : index
    %404 = vector.load %arg10[%c2_169, %c0_170, %c0_171] : memref<4x1x32xf32, #tpu.memory_space<vmem>>, vector<1x1x32xf32>
    %405 = vector.shape_cast %404 : vector<1x1x32xf32> to vector<1x32xf32>
    %c2_172 = arith.constant 2 : index
    %c0_173 = arith.constant 0 : index
    %c0_174 = arith.constant 0 : index
    %406 = vector.load %arg11[%c2_172, %c0_173, %c0_174] : memref<4x1x32xf32, #tpu.memory_space<vmem>>, vector<1x1x32xf32>
    %407 = vector.shape_cast %406 : vector<1x1x32xf32> to vector<1x32xf32>
    %cst_175 = arith.constant dense<0.000000e+00> : vector<16xf32>
    %408 = vector.multi_reduction <add>, %403, %cst_175 [1] : vector<16x32xf32> to vector<16xf32>
    %409 = vector.shape_cast %408 : vector<16xf32> to vector<16x1xf32>
    %cst_176 = arith.constant 3.200000e+01 : f32
    %410 = vector.broadcast %cst_176 : f32 to vector<16x1xf32>
    %411 = arith.divf %409, %410 : vector<16x1xf32>
    %412 = vector.broadcast %411 : vector<16x1xf32> to vector<16x32xf32>
    %413 = arith.subf %403, %412 : vector<16x32xf32>
    %414 = arith.mulf %413, %413 : vector<16x32xf32>
    %cst_177 = arith.constant dense<0.000000e+00> : vector<16xf32>
    %415 = vector.multi_reduction <add>, %414, %cst_177 [1] : vector<16x32xf32> to vector<16xf32>
    %416 = vector.shape_cast %415 : vector<16xf32> to vector<16x1xf32>
    %cst_178 = arith.constant 3.200000e+01 : f32
    %417 = vector.broadcast %cst_178 : f32 to vector<16x1xf32>
    %418 = arith.divf %416, %417 : vector<16x1xf32>
    %419 = vector.broadcast %411 : vector<16x1xf32> to vector<16x32xf32>
    %420 = arith.subf %403, %419 : vector<16x32xf32>
    %cst_179 = arith.constant 9.99999996E-13 : f32
    %421 = vector.broadcast %cst_179 : f32 to vector<16x1xf32>
    %422 = arith.addf %418, %421 : vector<16x1xf32>
    %423 = math.rsqrt %422 : vector<16x1xf32>
    %424 = vector.broadcast %423 : vector<16x1xf32> to vector<16x32xf32>
    %425 = arith.mulf %420, %424 : vector<16x32xf32>
    %426 = vector.broadcast %405 : vector<1x32xf32> to vector<16x32xf32>
    %427 = arith.mulf %425, %426 : vector<16x32xf32>
    %428 = vector.broadcast %407 : vector<1x32xf32> to vector<16x32xf32>
    %429 = arith.addf %427, %428 : vector<16x32xf32>
    %430 = arith.truncf %429 : vector<16x32xf32> to vector<16x32xbf16>
    %c2_180 = arith.constant 2 : index
    %c0_181 = arith.constant 0 : index
    %c0_182 = arith.constant 0 : index
    %431 = vector.load %arg12[%c2_180, %c0_181, %c0_182] : memref<4x32x64xbf16, #tpu.memory_space<vmem>>, vector<1x32x64xbf16>
    %432 = vector.shape_cast %431 : vector<1x32x64xbf16> to vector<32x64xbf16>
    %cst_183 = arith.constant dense<0.000000e+00> : vector<16x64xf32>
    %433 = tpu.matmul %430, %432, %cst_183 {dimension_numbers = #tpu.dot_dimension_numbers<[1], [0], [0], [1], [0, 0, 1, 1], [], []>} : vector<16x32xbf16>, vector<32x64xbf16>, vector<16x64xf32> -> vector<16x64xf32>
    %c2_184 = arith.constant 2 : index
    %c0_185 = arith.constant 0 : index
    %c0_186 = arith.constant 0 : index
    %434 = vector.load %arg13[%c2_184, %c0_185, %c0_186] : memref<4x1x64xf32, #tpu.memory_space<vmem>>, vector<1x1x64xf32>
    %435 = vector.shape_cast %434 : vector<1x1x64xf32> to vector<1x64xf32>
    %436 = vector.broadcast %435 : vector<1x64xf32> to vector<16x64xf32>
    %437 = arith.addf %433, %436 : vector<16x64xf32>
    %cst_187 = arith.constant 5.000000e-01 : f32
    %438 = vector.broadcast %cst_187 : f32 to vector<16x64xf32>
    %439 = arith.mulf %438, %437 : vector<16x64xf32>
    %cst_188 = arith.constant 4.471500e-02 : f32
    %440 = vector.broadcast %cst_188 : f32 to vector<16x64xf32>
    %441 = arith.mulf %440, %437 : vector<16x64xf32>
    %442 = arith.mulf %441, %437 : vector<16x64xf32>
    %443 = arith.mulf %442, %437 : vector<16x64xf32>
    %444 = arith.addf %437, %443 : vector<16x64xf32>
    %cst_189 = arith.constant 0.797884583 : f32
    %445 = vector.broadcast %cst_189 : f32 to vector<16x64xf32>
    %446 = arith.mulf %445, %444 : vector<16x64xf32>
    %447 = math.tanh %446 : vector<16x64xf32>
    %cst_190 = arith.constant 1.000000e+00 : f32
    %448 = vector.broadcast %cst_190 : f32 to vector<16x64xf32>
    %449 = arith.addf %448, %447 : vector<16x64xf32>
    %450 = arith.mulf %439, %449 : vector<16x64xf32>
    %451 = arith.truncf %450 : vector<16x64xf32> to vector<16x64xbf16>
    %c2_191 = arith.constant 2 : index
    %c0_192 = arith.constant 0 : index
    %c0_193 = arith.constant 0 : index
    %452 = vector.load %arg14[%c2_191, %c0_192, %c0_193] : memref<4x64x32xbf16, #tpu.memory_space<vmem>>, vector<1x64x32xbf16>
    %453 = vector.shape_cast %452 : vector<1x64x32xbf16> to vector<64x32xbf16>
    %cst_194 = arith.constant dense<0.000000e+00> : vector<16x32xf32>
    %454 = tpu.matmul %451, %453, %cst_194 {dimension_numbers = #tpu.dot_dimension_numbers<[1], [0], [0], [1], [0, 0, 1, 1], [], []>} : vector<16x64xbf16>, vector<64x32xbf16>, vector<16x32xf32> -> vector<16x32xf32>
    %c2_195 = arith.constant 2 : index
    %c0_196 = arith.constant 0 : index
    %c0_197 = arith.constant 0 : index
    %455 = vector.load %arg15[%c2_195, %c0_196, %c0_197] : memref<4x1x32xf32, #tpu.memory_space<vmem>>, vector<1x1x32xf32>
    %456 = vector.shape_cast %455 : vector<1x1x32xf32> to vector<1x32xf32>
    %457 = vector.broadcast %456 : vector<1x32xf32> to vector<16x32xf32>
    %458 = arith.addf %454, %457 : vector<16x32xf32>
    %459 = arith.addf %429, %458 : vector<16x32xf32>
    %c2_198 = arith.constant 2 : index
    %c0_199 = arith.constant 0 : index
    %c0_200 = arith.constant 0 : index
    %460 = vector.load %arg16[%c2_198, %c0_199, %c0_200] : memref<4x1x32xf32, #tpu.memory_space<vmem>>, vector<1x1x32xf32>
    %461 = vector.shape_cast %460 : vector<1x1x32xf32> to vector<1x32xf32>
    %c2_201 = arith.constant 2 : index
    %c0_202 = arith.constant 0 : index
    %c0_203 = arith.constant 0 : index
    %462 = vector.load %arg17[%c2_201, %c0_202, %c0_203] : memref<4x1x32xf32, #tpu.memory_space<vmem>>, vector<1x1x32xf32>
    %463 = vector.shape_cast %462 : vector<1x1x32xf32> to vector<1x32xf32>
    %cst_204 = arith.constant dense<0.000000e+00> : vector<16xf32>
    %464 = vector.multi_reduction <add>, %459, %cst_204 [1] : vector<16x32xf32> to vector<16xf32>
    %465 = vector.shape_cast %464 : vector<16xf32> to vector<16x1xf32>
    %cst_205 = arith.constant 3.200000e+01 : f32
    %466 = vector.broadcast %cst_205 : f32 to vector<16x1xf32>
    %467 = arith.divf %465, %466 : vector<16x1xf32>
    %468 = vector.broadcast %467 : vector<16x1xf32> to vector<16x32xf32>
    %469 = arith.subf %459, %468 : vector<16x32xf32>
    %470 = arith.mulf %469, %469 : vector<16x32xf32>
    %cst_206 = arith.constant dense<0.000000e+00> : vector<16xf32>
    %471 = vector.multi_reduction <add>, %470, %cst_206 [1] : vector<16x32xf32> to vector<16xf32>
    %472 = vector.shape_cast %471 : vector<16xf32> to vector<16x1xf32>
    %cst_207 = arith.constant 3.200000e+01 : f32
    %473 = vector.broadcast %cst_207 : f32 to vector<16x1xf32>
    %474 = arith.divf %472, %473 : vector<16x1xf32>
    %475 = vector.broadcast %467 : vector<16x1xf32> to vector<16x32xf32>
    %476 = arith.subf %459, %475 : vector<16x32xf32>
    %cst_208 = arith.constant 9.99999996E-13 : f32
    %477 = vector.broadcast %cst_208 : f32 to vector<16x1xf32>
    %478 = arith.addf %474, %477 : vector<16x1xf32>
    %479 = math.rsqrt %478 : vector<16x1xf32>
    %480 = vector.broadcast %479 : vector<16x1xf32> to vector<16x32xf32>
    %481 = arith.mulf %476, %480 : vector<16x32xf32>
    %482 = vector.broadcast %461 : vector<1x32xf32> to vector<16x32xf32>
    %483 = arith.mulf %481, %482 : vector<16x32xf32>
    %484 = vector.broadcast %463 : vector<1x32xf32> to vector<16x32xf32>
    %485 = arith.addf %483, %484 : vector<16x32xf32>
    %486 = arith.truncf %485 : vector<16x32xf32> to vector<16x32xbf16>
    %c3 = arith.constant 3 : index
    %c0_209 = arith.constant 0 : index
    %c0_210 = arith.constant 0 : index
    %487 = vector.load %arg6[%c3, %c0_209, %c0_210] : memref<4x32x96xbf16, #tpu.memory_space<vmem>>, vector<1x32x96xbf16>
    %488 = vector.shape_cast %487 : vector<1x32x96xbf16> to vector<32x96xbf16>
    %cst_211 = arith.constant dense<0.000000e+00> : vector<16x96xf32>
    %489 = tpu.matmul %486, %488, %cst_211 {dimension_numbers = #tpu.dot_dimension_numbers<[1], [0], [0], [1], [0, 0, 1, 1], [], []>} : vector<16x32xbf16>, vector<32x96xbf16>, vector<16x96xf32> -> vector<16x96xf32>
    %c3_212 = arith.constant 3 : index
    %c0_213 = arith.constant 0 : index
    %c0_214 = arith.constant 0 : index
    %490 = vector.load %arg7[%c3_212, %c0_213, %c0_214] : memref<4x1x96xf32, #tpu.memory_space<vmem>>, vector<1x1x96xf32>
    %491 = vector.shape_cast %490 : vector<1x1x96xf32> to vector<1x96xf32>
    %492 = vector.broadcast %491 : vector<1x96xf32> to vector<16x96xf32>
    %493 = arith.addf %489, %492 : vector<16x96xf32>
    %494 = vector.shape_cast %493 : vector<16x96xf32> to vector<2x8x96xf32>
    %495 = vector.extract_strided_slice %494 {offsets = [0, 0, 0], sizes = [2, 8, 32], strides = [1, 1, 1]} : vector<2x8x96xf32> to vector<2x8x32xf32>
    %496 = vector.extract_strided_slice %494 {offsets = [0, 0, 32], sizes = [2, 8, 32], strides = [1, 1, 1]} : vector<2x8x96xf32> to vector<2x8x32xf32>
    %497 = vector.extract_strided_slice %494 {offsets = [0, 0, 64], sizes = [2, 8, 32], strides = [1, 1, 1]} : vector<2x8x96xf32> to vector<2x8x32xf32>
    %498 = vector.extract_strided_slice %495 {offsets = [0, 0, 0], sizes = [2, 8, 16], strides = [1, 1, 1]} : vector<2x8x32xf32> to vector<2x8x16xf32>
    %499 = arith.truncf %498 : vector<2x8x16xf32> to vector<2x8x16xbf16>
    %500 = vector.extract_strided_slice %496 {offsets = [0, 0, 0], sizes = [2, 8, 16], strides = [1, 1, 1]} : vector<2x8x32xf32> to vector<2x8x16xf32>
    %501 = arith.truncf %500 : vector<2x8x16xf32> to vector<2x8x16xbf16>
    %502 = vector.extract_strided_slice %497 {offsets = [0, 0, 0], sizes = [2, 8, 16], strides = [1, 1, 1]} : vector<2x8x32xf32> to vector<2x8x16xf32>
    %503 = arith.truncf %502 : vector<2x8x16xf32> to vector<2x8x16xbf16>
    "tpu.trace_start"() <{level = 10 : i32, message = "bqd,bkd->bqk"}> : () -> ()
    %cst_215 = arith.constant dense<0.000000e+00> : vector<2x8x8xf32>
    %504 = tpu.matmul %499, %501, %cst_215 {dimension_numbers = #tpu.dot_dimension_numbers<[2], [2], [1], [1], [0, 0, 0, 1, 1, 1], [0], [0]>} : vector<2x8x16xbf16>, vector<2x8x16xbf16>, vector<2x8x8xf32> -> vector<2x8x8xf32>
    "tpu.trace_stop"() : () -> ()
    %cst_216 = arith.constant 2.500000e-01 : f32
    %505 = vector.broadcast %cst_216 : f32 to vector<2x8x8xf32>
    %506 = arith.mulf %504, %505 : vector<2x8x8xf32>
    %507 = arith.addf %506, %38 : vector<2x8x8xf32>
    %cst_217 = arith.constant dense<0xFF800000> : vector<2x8xf32>
    %508 = vector.multi_reduction <maximumf>, %507, %cst_217 [2] : vector<2x8x8xf32> to vector<2x8xf32>
    %509 = vector.shape_cast %508 : vector<2x8xf32> to vector<2x8x1xf32>
    %510 = vector.broadcast %509 : vector<2x8x1xf32> to vector<2x8x8xf32>
    %511 = arith.subf %507, %510 : vector<2x8x8xf32>
    %512 = math.exp %511 : vector<2x8x8xf32>
    %cst_218 = arith.constant dense<0.000000e+00> : vector<2x8xf32>
    %513 = vector.multi_reduction <add>, %512, %cst_218 [2] : vector<2x8x8xf32> to vector<2x8xf32>
    %514 = vector.shape_cast %513 : vector<2x8xf32> to vector<2x8x1xf32>
    %515 = tpu.reciprocal %514 {approx = true} : vector<2x8x1xf32> -> vector<2x8x1xf32>
    %516 = vector.broadcast %515 : vector<2x8x1xf32> to vector<2x8x8xf32>
    %517 = arith.mulf %512, %516 : vector<2x8x8xf32>
    %518 = arith.truncf %517 : vector<2x8x8xf32> to vector<2x8x8xbf16>
    "tpu.trace_start"() <{level = 10 : i32, message = "bqk,bkd->bqd"}> : () -> ()
    %cst_219 = arith.constant dense<0.000000e+00> : vector<2x8x16xf32>
    %519 = tpu.matmul %518, %503, %cst_219 {dimension_numbers = #tpu.dot_dimension_numbers<[2], [1], [1], [2], [0, 0, 0, 1, 1, 2], [0], [0]>} : vector<2x8x8xbf16>, vector<2x8x16xbf16>, vector<2x8x16xf32> -> vector<2x8x16xf32>
    "tpu.trace_stop"() : () -> ()
    %520 = vector.extract_strided_slice %495 {offsets = [0, 0, 16], sizes = [2, 8, 16], strides = [1, 1, 1]} : vector<2x8x32xf32> to vector<2x8x16xf32>
    %521 = arith.truncf %520 : vector<2x8x16xf32> to vector<2x8x16xbf16>
    %522 = vector.extract_strided_slice %496 {offsets = [0, 0, 16], sizes = [2, 8, 16], strides = [1, 1, 1]} : vector<2x8x32xf32> to vector<2x8x16xf32>
    %523 = arith.truncf %522 : vector<2x8x16xf32> to vector<2x8x16xbf16>
    %524 = vector.extract_strided_slice %497 {offsets = [0, 0, 16], sizes = [2, 8, 16], strides = [1, 1, 1]} : vector<2x8x32xf32> to vector<2x8x16xf32>
    %525 = arith.truncf %524 : vector<2x8x16xf32> to vector<2x8x16xbf16>
    "tpu.trace_start"() <{level = 10 : i32, message = "bqd,bkd->bqk"}> : () -> ()
    %cst_220 = arith.constant dense<0.000000e+00> : vector<2x8x8xf32>
    %526 = tpu.matmul %521, %523, %cst_220 {dimension_numbers = #tpu.dot_dimension_numbers<[2], [2], [1], [1], [0, 0, 0, 1, 1, 1], [0], [0]>} : vector<2x8x16xbf16>, vector<2x8x16xbf16>, vector<2x8x8xf32> -> vector<2x8x8xf32>
    "tpu.trace_stop"() : () -> ()
    %cst_221 = arith.constant 2.500000e-01 : f32
    %527 = vector.broadcast %cst_221 : f32 to vector<2x8x8xf32>
    %528 = arith.mulf %526, %527 : vector<2x8x8xf32>
    %529 = arith.addf %528, %38 : vector<2x8x8xf32>
    %cst_222 = arith.constant dense<0xFF800000> : vector<2x8xf32>
    %530 = vector.multi_reduction <maximumf>, %529, %cst_222 [2] : vector<2x8x8xf32> to vector<2x8xf32>
    %531 = vector.shape_cast %530 : vector<2x8xf32> to vector<2x8x1xf32>
    %532 = vector.broadcast %531 : vector<2x8x1xf32> to vector<2x8x8xf32>
    %533 = arith.subf %529, %532 : vector<2x8x8xf32>
    %534 = math.exp %533 : vector<2x8x8xf32>
    %cst_223 = arith.constant dense<0.000000e+00> : vector<2x8xf32>
    %535 = vector.multi_reduction <add>, %534, %cst_223 [2] : vector<2x8x8xf32> to vector<2x8xf32>
    %536 = vector.shape_cast %535 : vector<2x8xf32> to vector<2x8x1xf32>
    %537 = tpu.reciprocal %536 {approx = true} : vector<2x8x1xf32> -> vector<2x8x1xf32>
    %538 = vector.broadcast %537 : vector<2x8x1xf32> to vector<2x8x8xf32>
    %539 = arith.mulf %534, %538 : vector<2x8x8xf32>
    %540 = arith.truncf %539 : vector<2x8x8xf32> to vector<2x8x8xbf16>
    "tpu.trace_start"() <{level = 10 : i32, message = "bqk,bkd->bqd"}> : () -> ()
    %cst_224 = arith.constant dense<0.000000e+00> : vector<2x8x16xf32>
    %541 = tpu.matmul %540, %525, %cst_224 {dimension_numbers = #tpu.dot_dimension_numbers<[2], [1], [1], [2], [0, 0, 0, 1, 1, 2], [0], [0]>} : vector<2x8x8xbf16>, vector<2x8x16xbf16>, vector<2x8x16xf32> -> vector<2x8x16xf32>
    "tpu.trace_stop"() : () -> ()
    %542 = tpu.concatenate %519, %541 in 2 : vector<2x8x16xf32>, vector<2x8x16xf32> -> vector<2x8x32xf32>
    %543 = vector.shape_cast %542 : vector<2x8x32xf32> to vector<16x32xf32>
    %544 = arith.truncf %543 : vector<16x32xf32> to vector<16x32xbf16>
    %c3_225 = arith.constant 3 : index
    %c0_226 = arith.constant 0 : index
    %c0_227 = arith.constant 0 : index
    %545 = vector.load %arg8[%c3_225, %c0_226, %c0_227] : memref<4x32x32xbf16, #tpu.memory_space<vmem>>, vector<1x32x32xbf16>
    %546 = vector.shape_cast %545 : vector<1x32x32xbf16> to vector<32x32xbf16>
    %cst_228 = arith.constant dense<0.000000e+00> : vector<16x32xf32>
    %547 = tpu.matmul %544, %546, %cst_228 {dimension_numbers = #tpu.dot_dimension_numbers<[1], [0], [0], [1], [0, 0, 1, 1], [], []>} : vector<16x32xbf16>, vector<32x32xbf16>, vector<16x32xf32> -> vector<16x32xf32>
    %c3_229 = arith.constant 3 : index
    %c0_230 = arith.constant 0 : index
    %c0_231 = arith.constant 0 : index
    %548 = vector.load %arg9[%c3_229, %c0_230, %c0_231] : memref<4x1x32xf32, #tpu.memory_space<vmem>>, vector<1x1x32xf32>
    %549 = vector.shape_cast %548 : vector<1x1x32xf32> to vector<1x32xf32>
    %550 = vector.broadcast %549 : vector<1x32xf32> to vector<16x32xf32>
    %551 = arith.addf %547, %550 : vector<16x32xf32>
    %552 = arith.addf %485, %551 : vector<16x32xf32>
    %c3_232 = arith.constant 3 : index
    %c0_233 = arith.constant 0 : index
    %c0_234 = arith.constant 0 : index
    %553 = vector.load %arg10[%c3_232, %c0_233, %c0_234] : memref<4x1x32xf32, #tpu.memory_space<vmem>>, vector<1x1x32xf32>
    %554 = vector.shape_cast %553 : vector<1x1x32xf32> to vector<1x32xf32>
    %c3_235 = arith.constant 3 : index
    %c0_236 = arith.constant 0 : index
    %c0_237 = arith.constant 0 : index
    %555 = vector.load %arg11[%c3_235, %c0_236, %c0_237] : memref<4x1x32xf32, #tpu.memory_space<vmem>>, vector<1x1x32xf32>
    %556 = vector.shape_cast %555 : vector<1x1x32xf32> to vector<1x32xf32>
    %cst_238 = arith.constant dense<0.000000e+00> : vector<16xf32>
    %557 = vector.multi_reduction <add>, %552, %cst_238 [1] : vector<16x32xf32> to vector<16xf32>
    %558 = vector.shape_cast %557 : vector<16xf32> to vector<16x1xf32>
    %cst_239 = arith.constant 3.200000e+01 : f32
    %559 = vector.broadcast %cst_239 : f32 to vector<16x1xf32>
    %560 = arith.divf %558, %559 : vector<16x1xf32>
    %561 = vector.broadcast %560 : vector<16x1xf32> to vector<16x32xf32>
    %562 = arith.subf %552, %561 : vector<16x32xf32>
    %563 = arith.mulf %562, %562 : vector<16x32xf32>
    %cst_240 = arith.constant dense<0.000000e+00> : vector<16xf32>
    %564 = vector.multi_reduction <add>, %563, %cst_240 [1] : vector<16x32xf32> to vector<16xf32>
    %565 = vector.shape_cast %564 : vector<16xf32> to vector<16x1xf32>
    %cst_241 = arith.constant 3.200000e+01 : f32
    %566 = vector.broadcast %cst_241 : f32 to vector<16x1xf32>
    %567 = arith.divf %565, %566 : vector<16x1xf32>
    %568 = vector.broadcast %560 : vector<16x1xf32> to vector<16x32xf32>
    %569 = arith.subf %552, %568 : vector<16x32xf32>
    %cst_242 = arith.constant 9.99999996E-13 : f32
    %570 = vector.broadcast %cst_242 : f32 to vector<16x1xf32>
    %571 = arith.addf %567, %570 : vector<16x1xf32>
    %572 = math.rsqrt %571 : vector<16x1xf32>
    %573 = vector.broadcast %572 : vector<16x1xf32> to vector<16x32xf32>
    %574 = arith.mulf %569, %573 : vector<16x32xf32>
    %575 = vector.broadcast %554 : vector<1x32xf32> to vector<16x32xf32>
    %576 = arith.mulf %574, %575 : vector<16x32xf32>
    %577 = vector.broadcast %556 : vector<1x32xf32> to vector<16x32xf32>
    %578 = arith.addf %576, %577 : vector<16x32xf32>
    %579 = arith.truncf %578 : vector<16x32xf32> to vector<16x32xbf16>
    %c3_243 = arith.constant 3 : index
    %c0_244 = arith.constant 0 : index
    %c0_245 = arith.constant 0 : index
    %580 = vector.load %arg12[%c3_243, %c0_244, %c0_245] : memref<4x32x64xbf16, #tpu.memory_space<vmem>>, vector<1x32x64xbf16>
    %581 = vector.shape_cast %580 : vector<1x32x64xbf16> to vector<32x64xbf16>
    %cst_246 = arith.constant dense<0.000000e+00> : vector<16x64xf32>
    %582 = tpu.matmul %579, %581, %cst_246 {dimension_numbers = #tpu.dot_dimension_numbers<[1], [0], [0], [1], [0, 0, 1, 1], [], []>} : vector<16x32xbf16>, vector<32x64xbf16>, vector<16x64xf32> -> vector<16x64xf32>
    %c3_247 = arith.constant 3 : index
    %c0_248 = arith.constant 0 : index
    %c0_249 = arith.constant 0 : index
    %583 = vector.load %arg13[%c3_247, %c0_248, %c0_249] : memref<4x1x64xf32, #tpu.memory_space<vmem>>, vector<1x1x64xf32>
    %584 = vector.shape_cast %583 : vector<1x1x64xf32> to vector<1x64xf32>
    %585 = vector.broadcast %584 : vector<1x64xf32> to vector<16x64xf32>
    %586 = arith.addf %582, %585 : vector<16x64xf32>
    %cst_250 = arith.constant 5.000000e-01 : f32
    %587 = vector.broadcast %cst_250 : f32 to vector<16x64xf32>
    %588 = arith.mulf %587, %586 : vector<16x64xf32>
    %cst_251 = arith.constant 4.471500e-02 : f32
    %589 = vector.broadcast %cst_251 : f32 to vector<16x64xf32>
    %590 = arith.mulf %589, %586 : vector<16x64xf32>
    %591 = arith.mulf %590, %586 : vector<16x64xf32>
    %592 = arith.mulf %591, %586 : vector<16x64xf32>
    %593 = arith.addf %586, %592 : vector<16x64xf32>
    %cst_252 = arith.constant 0.797884583 : f32
    %594 = vector.broadcast %cst_252 : f32 to vector<16x64xf32>
    %595 = arith.mulf %594, %593 : vector<16x64xf32>
    %596 = math.tanh %595 : vector<16x64xf32>
    %cst_253 = arith.constant 1.000000e+00 : f32
    %597 = vector.broadcast %cst_253 : f32 to vector<16x64xf32>
    %598 = arith.addf %597, %596 : vector<16x64xf32>
    %599 = arith.mulf %588, %598 : vector<16x64xf32>
    %600 = arith.truncf %599 : vector<16x64xf32> to vector<16x64xbf16>
    %c3_254 = arith.constant 3 : index
    %c0_255 = arith.constant 0 : index
    %c0_256 = arith.constant 0 : index
    %601 = vector.load %arg14[%c3_254, %c0_255, %c0_256] : memref<4x64x32xbf16, #tpu.memory_space<vmem>>, vector<1x64x32xbf16>
    %602 = vector.shape_cast %601 : vector<1x64x32xbf16> to vector<64x32xbf16>
    %cst_257 = arith.constant dense<0.000000e+00> : vector<16x32xf32>
    %603 = tpu.matmul %600, %602, %cst_257 {dimension_numbers = #tpu.dot_dimension_numbers<[1], [0], [0], [1], [0, 0, 1, 1], [], []>} : vector<16x64xbf16>, vector<64x32xbf16>, vector<16x32xf32> -> vector<16x32xf32>
    %c3_258 = arith.constant 3 : index
    %c0_259 = arith.constant 0 : index
    %c0_260 = arith.constant 0 : index
    %604 = vector.load %arg15[%c3_258, %c0_259, %c0_260] : memref<4x1x32xf32, #tpu.memory_space<vmem>>, vector<1x1x32xf32>
    %605 = vector.shape_cast %604 : vector<1x1x32xf32> to vector<1x32xf32>
    %606 = vector.broadcast %605 : vector<1x32xf32> to vector<16x32xf32>
    %607 = arith.addf %603, %606 : vector<16x32xf32>
    %608 = arith.addf %578, %607 : vector<16x32xf32>
    %c3_261 = arith.constant 3 : index
    %c0_262 = arith.constant 0 : index
    %c0_263 = arith.constant 0 : index
    %609 = vector.load %arg16[%c3_261, %c0_262, %c0_263] : memref<4x1x32xf32, #tpu.memory_space<vmem>>, vector<1x1x32xf32>
    %610 = vector.shape_cast %609 : vector<1x1x32xf32> to vector<1x32xf32>
    %c3_264 = arith.constant 3 : index
    %c0_265 = arith.constant 0 : index
    %c0_266 = arith.constant 0 : index
    %611 = vector.load %arg17[%c3_264, %c0_265, %c0_266] : memref<4x1x32xf32, #tpu.memory_space<vmem>>, vector<1x1x32xf32>
    %612 = vector.shape_cast %611 : vector<1x1x32xf32> to vector<1x32xf32>
    %cst_267 = arith.constant dense<0.000000e+00> : vector<16xf32>
    %613 = vector.multi_reduction <add>, %608, %cst_267 [1] : vector<16x32xf32> to vector<16xf32>
    %614 = vector.shape_cast %613 : vector<16xf32> to vector<16x1xf32>
    %cst_268 = arith.constant 3.200000e+01 : f32
    %615 = vector.broadcast %cst_268 : f32 to vector<16x1xf32>
    %616 = arith.divf %614, %615 : vector<16x1xf32>
    %617 = vector.broadcast %616 : vector<16x1xf32> to vector<16x32xf32>
    %618 = arith.subf %608, %617 : vector<16x32xf32>
    %619 = arith.mulf %618, %618 : vector<16x32xf32>
    %cst_269 = arith.constant dense<0.000000e+00> : vector<16xf32>
    %620 = vector.multi_reduction <add>, %619, %cst_269 [1] : vector<16x32xf32> to vector<16xf32>
    %621 = vector.shape_cast %620 : vector<16xf32> to vector<16x1xf32>
    %cst_270 = arith.constant 3.200000e+01 : f32
    %622 = vector.broadcast %cst_270 : f32 to vector<16x1xf32>
    %623 = arith.divf %621, %622 : vector<16x1xf32>
    %624 = vector.broadcast %616 : vector<16x1xf32> to vector<16x32xf32>
    %625 = arith.subf %608, %624 : vector<16x32xf32>
    %cst_271 = arith.constant 9.99999996E-13 : f32
    %626 = vector.broadcast %cst_271 : f32 to vector<16x1xf32>
    %627 = arith.addf %623, %626 : vector<16x1xf32>
    %628 = math.rsqrt %627 : vector<16x1xf32>
    %629 = vector.broadcast %628 : vector<16x1xf32> to vector<16x32xf32>
    %630 = arith.mulf %625, %629 : vector<16x32xf32>
    %631 = vector.broadcast %610 : vector<1x32xf32> to vector<16x32xf32>
    %632 = arith.mulf %630, %631 : vector<16x32xf32>
    %633 = vector.broadcast %612 : vector<1x32xf32> to vector<16x32xf32>
    %634 = arith.addf %632, %633 : vector<16x32xf32>
    %635 = tpu.iota {dimensions = array<i32: 1>} : vector<2x16xi32>
    %636 = tpu.iota {dimensions = array<i32: 0>} : vector<2x16xi32>
    %c8_i32 = arith.constant 8 : i32
    %637 = vector.broadcast %c8_i32 : i32 to vector<2x16xi32>
    %638 = arith.muli %636, %637 : vector<2x16xi32>
    %639 = arith.cmpi eq, %635, %638 : vector<2x16xi32>
    %cst_272 = arith.constant 1.000000e+00 : f32
    %cst_273 = arith.constant 0.000000e+00 : f32
    %640 = vector.broadcast %cst_272 : f32 to vector<2x16xf32>
    %641 = vector.broadcast %cst_273 : f32 to vector<2x16xf32>
    %642 = arith.select %639, %640, %641 : vector<2x16xi1>, vector<2x16xf32>
    %643 = arith.truncf %642 : vector<2x16xf32> to vector<2x16xbf16>
    %644 = arith.truncf %634 : vector<16x32xf32> to vector<16x32xbf16>
    %cst_274 = arith.constant dense<0.000000e+00> : vector<2x32xf32>
    %645 = tpu.matmul %643, %644, %cst_274 {dimension_numbers = #tpu.dot_dimension_numbers<[1], [0], [0], [1], [0, 0, 1, 1], [], []>} : vector<2x16xbf16>, vector<16x32xbf16>, vector<2x32xf32> -> vector<2x32xf32>
    %646 = arith.truncf %645 : vector<2x32xf32> to vector<2x32xbf16>
    %c0_275 = arith.constant 0 : index
    %c0_276 = arith.constant 0 : index
    %647 = vector.load %arg18[%c0_275, %c0_276] : memref<32x128xbf16, #tpu.memory_space<vmem>>, vector<32x128xbf16>
    %cst_277 = arith.constant dense<0.000000e+00> : vector<2x128xf32>
    %648 = tpu.matmul %646, %647, %cst_277 {dimension_numbers = #tpu.dot_dimension_numbers<[1], [0], [0], [1], [0, 0, 1, 1], [], []>} : vector<2x32xbf16>, vector<32x128xbf16>, vector<2x128xf32> -> vector<2x128xf32>
    %c0_278 = arith.constant 0 : index
    %c0_279 = arith.constant 0 : index
    %649 = vector.load %arg19[%c0_278, %c0_279] : memref<1x128xf32, #tpu.memory_space<vmem>>, vector<1x128xf32>
    %650 = vector.broadcast %649 : vector<1x128xf32> to vector<2x128xf32>
    %651 = arith.addf %648, %650 : vector<2x128xf32>
    %c0_280 = arith.constant 0 : index
    %c0_281 = arith.constant 0 : index
    %652 = vector.load %arg20[%c0_280, %c0_281] : memref<2x128xf32, #tpu.memory_space<vmem>>, vector<2x128xf32>
    tpu.vector_store %arg20[%c0_280, %c0_281], %651 {strides = array<i32>} : memref<2x128xf32, #tpu.memory_space<vmem>>, vector<2x128xf32>,
    return
  }
}

</mosaic_0001>

<bundles_post_ra>
// kernel: text_embedding_forward.1
= control target key start
LH: loop header
LB: loop body
LE: loop exit
PB: predicated region body
PF: predicated region fallthrough
CT: control target
= control target key end

     0   :  { %s3998_s0 = inlined_call_operand.vmem [shape: s32[16,1], index: 0, kind: input, shape index: {}]   ;;  %s3999_s1 = inlined_call_operand.vmem [shape: f32[2,1,8], index: 1, kind: input, shape index: {}]   ;;  %s4000_s2 = inlined_call_operand.vmem [shape: f32[16,32], index: 2, kind: input, shape index: {}]   ;;  %s4001_s3 = inlined_call_operand.vmem [shape: bf16[100,32], index: 3, kind: input, shape index: {}]   ;;  %s4002_s4 = inlined_call_operand.hbm [shape: f32[1,32], index: 4, kind: input, shape index: {}]   ;;  %s4003_s5 = inlined_call_operand.hbm [shape: f32[1,32], index: 5, kind: input, shape index: {}]   ;;  %s4004_s6 = inlined_call_operand.vmem [shape: bf16[4,32,96], index: 6, kind: input, shape index: {}]   ;;  %s4005_s7 = inlined_call_operand.vmem [shape: f32[4,1,96], index: 7, kind: input, shape index: {}]   ;;  %s4006_s8 = inlined_call_operand.vmem [shape: bf16[4,32,32], index: 8, kind: input, shape index: {}]   ;;  %s4007_s9 = inlined_call_operand.vmem [shape: f32[4,1,32], index: 9, kind: input, shape index: {}]   ;;  %s4008_s10 = inlined_call_operand.vmem [shape: f32[4,1,32], index: 10, kind: input, shape index: {}]   ;;  %s4009_s11 = inlined_call_operand.vmem [shape: f32[4,1,32], index: 11, kind: input, shape index: {}]   ;;  %s4010_s12 = inlined_call_operand.vmem [shape: bf16[4,32,64], index: 12, kind: input, shape index: {}]   ;;  %s4011_s13 = inlined_call_operand.vmem [shape: f32[4,1,64], index: 13, kind: input, shape index: {}]   ;;  %s4012_s14 = inlined_call_operand.vmem [shape: bf16[4,64,32], index: 14, kind: input, shape index: {}]   ;;  %s4013_s15 = inlined_call_operand.vmem [shape: f32[4,1,32], index: 15, kind: input, shape index: {}]   ;;  %s4014_s16 = inlined_call_operand.vmem [shape: f32[4,1,32], index: 16, kind: input, shape index: {}]   ;;  %s4015_s17 = inlined_call_operand.vmem [shape: f32[4,1,32], index: 17, kind: input, shape index: {}]   ;;  %s4016_s18 = inlined_call_operand.vmem [shape: bf16[32,128], index: 18, kind: input, shape index: {}]   ;;  %s4017_s19 = inlined_call_operand.hbm [shape: f32[1,128], index: 19, kind: input, shape index: {}]   ;;  %s4018_s20 = inlined_call_operand.hbm [shape: f32[2,128], index: 20, kind: output, shape index: {}]  }
   0x1   :  { %4023 = sst [smem:[#allocation12_spill]] %s3998_s0 }
   0x2   :  { %4024 = sst [smem:[#allocation13_spill]] %s3999_s1 }
   0x3   :  { %4025 = sst [smem:[#allocation14_spill]] %s4000_s2 }
   0x4   :  { %4026 = sst [smem:[#allocation15_spill]] %s4001_s3 }
   0x5   :  { %4027 = sst [smem:[#allocation16_spill]] %s4002_s4 }
   0x6   :  { %25 = vsyncpa [#allocation3], 0 }
   0x7   :  { %26 = vsyncpa [#allocation6], 0  ;;  %s52_s23 = sshll.u32 %s4003_s5, 4  ;;  %s53_s23 = int_to_ptr.hbm [resolvable:$true] %s52_s23 }
   0x8   :  { %27 = vsyncpa [#allocation4], 0  ;;  %s3250_s24 = smov [#allocation5]   ;;  %s4028_s26 = sld [smem:[#allocation16_spill]] }
   0x9   :  { %s54_s2 = sshll.u32 %s3250_s24, 4  ;;  %s3251_s28 = smov [#allocation2]   ;;  %s55_s2 = int_to_ptr.vmem [resolvable:$true] %s54_s2 }
   0xa   :  { %57 = dma.hbm_to_vmem [thread:$0]  %s53_s23, 16, %s55_s2, [#allocation6]  }
   0xb   :  { %s43_s4 = sshll.u32 %s3251_s28, 4  ;;  %s89_s0 = sshll.u32 %s4017_s19, 4  ;;  %s44_s4 = int_to_ptr.vmem [resolvable:$true] %s43_s4  ;;  %s90_s0 = int_to_ptr.hbm [resolvable:$true] %s89_s0 }
   0xc   :  { %s3252_s5 = smov [#allocation7]  }
   0xd   :  { %s91_s21 = sshll.u32 %s3252_s5, 4  ;;  %s92_s21 = int_to_ptr.vmem [resolvable:$true] %s91_s21 }
   0xe   :  { %s41_s27 = sshll.u32 %s4028_s26, 4  ;;  %s42_s27 = int_to_ptr.hbm [resolvable:$true] %s41_s27 }
   0xf   :  { %46 = dma.hbm_to_vmem [thread:$0]  %s42_s27, 16, %s44_s4, [#allocation3]  }
  0x10   :  { %94 = dma.hbm_to_vmem [thread:$0]  %s90_s0, 16, %s92_s21, [#allocation6]  }
  0x11   :  { %3244 = dma.done.wait [#allocation3], 16  }
  0x12   :  { %3245 = vsyncadd [#allocation3], 4294967280 }
  0x13   :  { %3246 = dma.done.wait [#allocation6], 32  }
  0x14   :  { %3247 = vsyncadd [#allocation6], 4294967264  ;;  %v3253_v0 = vmov 0   ;;  %s4029_s23 = sld [smem:[#allocation12_spill]]  ;;  %vm181_vm0 = vcmask 1041408   ;;  %v110_v13 = vlaneseq  ;;  %v3254_v17 = vmov 0.0  }
  0x15   :  { %2970 = vset.pattern.permute.xlu0 %v3253_v0  ;;  %s4030_s19 = sld [smem:[#allocation15_spill]]  ;;  %vm177_vm3 = vcmask 818176   ;;  %vm201_vm4 = vcmask 261120   ;;  %v3255_v29 = vmov 32.0   ;;  %v2916_v46 = vld [vmem:[%s4004_s6 + $0x8] sm:$0xff]  ;;  %v2915_v48 = vld [vmem:[%s4004_s6] sm:$0xff] }
  0x16   :  { %v3405_v15 = vand.u32 127, %v110_v13  ;;  %3028 = vrcp.f32 %v3255_v29  ;;  %301 = vmatpush.bf16.msra.mxu1 %v2916_v46  ;;  %s3256_s0 = smov 96   ;;  %s3257_s5 = smov 80   ;;  %vm316_vm12 = vcmask 130048   ;;  %vm364_vm13 = vcmask 64512  }
  0x17   :  { %s3258_s21 = smov 112   ;;  %s3259_s24 = smov 64   ;;  %vm394_vm14 = vcmask 1043456  }
  0x18   :  { %s3260_s25 = smov 48   ;;  %s3261_s27 = smov 16  }
  0x19   :  { %s2571_s22 = sshll.u32 %s4018_s20, 4  ;;  %s2572_s22 = int_to_ptr.hbm [resolvable:$true] %s2571_s22 }
  0x1a   :  { %v108_v1 = vld [vmem:[%s4029_s23] sm:$0xff]  ;;  %v109_v5 = vld [vmem:[%s4029_s23 + $0x8] sm:$0xff]  ;;  %302 = vmatpush.bf16.msra.mxu1 %v2915_v48  ;;  %s4032_s23 = sld [smem:[#allocation13_spill]] }
  0x1b   :  { %v135_v2 = vld [vmem:[%s4030_s19 + $0x30] sm:$0x3]  ;;  %113 = vperm.xlu0 %2970, %v108_v1   ;;  %v2914_v7 = vld [vmem:[%s4030_s19 + $0x28] sm:$0xff]  ;;  %v2913_v8 = vld [vmem:[%s4030_s19 + $0x20] sm:$0xff] }
  0x1c   :  { %v163_v3 = vunpack.c.l.b16 %v135_v2  ;;  %v2912_v9 = vld [vmem:[%s4030_s19 + $0x18] sm:$0xff]  ;;  %v2911_v10 = vld [vmem:[%s4030_s19 + $0x10] sm:$0xff]  ;;  %v2910_v11 = vld [vmem:[%s4030_s19 + $0x8] sm:$0xff]  ;;  %v3029_v30 = vpop.eup %3028 }
  0x1d   :  { %v2909_v12 = vld [vmem:[%s4030_s19] sm:$0xff]  ;;  %s4031_s19 = sld [smem:[#allocation14_spill]]  ;;  %v209_v31 = vmul.f32 32.0, %v3029_v30  ;;  %vm213_vm5 = vweird.f32 %v3029_v30 }
  0x1e   :  { %v170_v4 = vpack.c.b16 %v163_v3, %v163_v3  ;;  %v2991_v3 = vld [vmem:[#allocation2] ss:$0 sm:$0xff] }
  0x1f   :  { %v210_v32 = vsub.f32 1.0, %v209_v31 }
  0x20   :  { %v183_v6 = vsel %vm181_vm0, %v170_v4, 0 }
  0x21   :  { %186 = vmatpush.bf16.msra.mxu0 %v183_v6  ;;  %v211_v33 = vmul.f32 %v3029_v30, %v210_v32 }
  0x23   :  { %116 = vperm.xlu0 %2970, %v109_v5   ;;  %v136_v21 = vld [vmem:[%s4031_s19] sm:$0xff]  ;;  %v137_v25 = vld [vmem:[%s4031_s19 + $0x8] sm:$0xff]  ;;  %v212_v34 = vadd.f32 %v3029_v30, %v211_v33 }
  0x25   :  { %187 = vmatpush.bf16.msra.mxu0 %v2914_v7  ;;  %v3419_v35 = vsel %vm213_vm5, %v3029_v30, %v212_v34 }
  0x29   :  { %188 = vmatpush.bf16.msra.mxu0 %v2913_v8  ;;  %v2992_v8 = vld [vmem:[#allocation5] ss:$0 sm:$0xff] }
  0x2d   :  { %189 = vmatpush.bf16.msra.mxu0 %v2912_v9 }
  0x31   :  { %190 = vmatpush.bf16.msra.mxu0 %v2911_v10 }
  0x35   :  { %191 = vmatpush.bf16.msra.mxu0 %v2910_v11 }
  0x39   :  { %192 = vmatpush.bf16.msra.mxu0 %v2909_v12 }
  0x8d   :  { %v114_v14 = vpop.permute.xlu0 %113 }
  0x8e   :  { %vm118_vm1 = vcmp.eq.s32.totalorder %v114_v14, %v3405_v15  ;;  %v2993_v14 = vld [vmem:[%s4005_s7] ss:$0 sm:$0xff] }
  0x8f   :  { %v120_v18 = vsel %vm118_vm1, 1.0, %v3254_v17 }
  0x95   :  { %v117_v16 = vpop.permute.xlu0 %116 }
  0x96   :  { %vm119_vm2 = vcmp.eq.s32.totalorder %v117_v16, %v3405_v15 }
  0x97   :  { %v121_v19 = vsel %vm119_vm2, 1.0, %v3254_v17 }
  0x98   :  { %v122_v20 = vpack.c.bf16 %v121_v19, %v120_v18 }
  0x9a   :  { %2606 = vmatmul.msk.bf16.vlgmr.msra.gmra.mxu0 %vm177_vm3, %v122_v20 }
 0x117   :  { %v194_v22 = vpop.f32.mrf.mxu0 }
 0x118   :  { %v195_v23 = vadd.f32 %v194_v22, %v136_v21 }
 0x11a   :  { %v202_v24 = vsel %vm201_vm4, %v195_v23, 0.0 }
 0x11b   :  { %203 = vadd.xlane.f32.xlu1 %v202_v24 }
 0x11f   :  { %v196_v26 = vpop.f32.mrf.mxu0 }
 0x120   :  { %v197_v27 = vadd.f32 %v196_v26, %v137_v25 }
 0x122   :  { %v205_v28 = vsel %vm201_vm4, %v197_v27, 0.0 }
 0x123   :  { %206 = vadd.xlane.f32.xlu1 %v205_v28 }
 0x18e   :  { %v204_v36 = vpop.xlane.xlu1 %203 }
 0x18f   :  { %v215_v37 = vmul.f32 %v3419_v35, %v204_v36  ;;  %v3465_v36 = vld [vmem:[%s4032_s23] ss:$0 sm:$0xff] }
 0x191   :  { %v217_v38 = vsub.f32 %v195_v23, %v215_v37 }
 0x193   :  { %v219_v39 = vmul.f32 %v217_v38, %v217_v38 }
 0x195   :  { %v221_v40 = vsel %vm201_vm4, %v219_v39, 0.0 }
 0x196   :  { %222 = vadd.xlane.f32.xlu2 %v221_v40  ;;  %v207_v41 = vpop.xlane.xlu1 %206 }
 0x197   :  { %v216_v42 = vmul.f32 %v3419_v35, %v207_v41 }
 0x199   :  { %v218_v43 = vsub.f32 %v197_v27, %v216_v42 }
 0x19b   :  { %v220_v44 = vmul.f32 %v218_v43, %v218_v43 }
 0x19d   :  { %v224_v45 = vsel %vm201_vm4, %v220_v44, 0.0 }
 0x19e   :  { %225 = vadd.xlane.f32.xlu2 %v224_v45 }
 0x209   :  { %v223_v47 = vpop.xlane.xlu2 %222 }
 0x20a   :  { %v227_v49 = vmul.f32 %v223_v47, %v3419_v35 }
 0x20c   :  { %v229_v50 = vadd.f32 1e-12, %v227_v49 }
 0x20e   :  { %3030 = vrsqrt.f32 %v229_v50  ;;  %vm237_vm7 = vweird.f32 %v229_v50 }
 0x211   :  { %v226_v51 = vpop.xlane.xlu2 %225 }
 0x212   :  { %v228_v52 = vmul.f32 %v226_v51, %v3419_v35 }
 0x214   :  { %v3031_v53 = vpop.eup %3030  ;;  %v230_v54 = vadd.f32 1e-12, %v228_v52 }
 0x215   :  { %v232_v55 = vmul.f32 %v3031_v53, %v229_v50  ;;  %vm238_vm6 = vweird.f32 %v3031_v53 }
 0x216   :  { %3032 = vrsqrt.f32 %v230_v54  ;;  %vm239_vm8 = vmor %vm237_vm7, %vm238_vm6  ;;  %vm247_vm10 = vweird.f32 %v230_v54  ;;  %vm747_vm6 = vcmask 523264  }
 0x217   :  { %v233_v56 = vmul.f32 %v3031_v53, %v232_v55 }
 0x219   :  { %v234_v57 = vmul.f32 0.5, %v233_v56 }
 0x21b   :  { %v235_v58 = vsub.f32 1.5, %v234_v57 }
 0x21c   :  { %v3033_v59 = vpop.eup %3032 }
 0x21d   :  { %v236_v60 = vmul.f32 %v3031_v53, %v235_v58  ;;  %v242_v61 = vmul.f32 %v3033_v59, %v230_v54  ;;  %vm248_vm9 = vweird.f32 %v3033_v59 }
 0x21e   :  { %vm249_vm11 = vmor %vm247_vm10, %vm248_vm9 }
 0x21f   :  { %v243_v62 = vmul.f32 %v3033_v59, %v242_v61  ;;  %v240_v63 = vsel %vm239_vm8, %v3031_v53, %v236_v60 }
 0x220   :  { %v251_v2 = vmul.f32 %v240_v63, %v217_v38 }
 0x221   :  { %v244_v0 = vmul.f32 0.5, %v243_v62 }
 0x222   :  { %v256_v7 = vmul.f32 %v2991_v3, %v251_v2 }
 0x223   :  { %v245_v1 = vsub.f32 1.5, %v244_v0 }
 0x224   :  { %v3433_v10 = vadd.f32 %v2992_v8, %v256_v7 }
 0x225   :  { %v246_v4 = vmul.f32 %v3033_v59, %v245_v1 }
 0x227   :  { %v250_v5 = vsel %vm249_vm11, %v3033_v59, %v246_v4 }
 0x228   :  { %v252_v6 = vmul.f32 %v250_v5, %v218_v43  ;;  %v3476_v43 = vld [vmem:[%s4032_s23 + $0x1] ss:$0 sm:$0xff] }
 0x22a   :  { %v257_v9 = vmul.f32 %v2991_v3, %v252_v6 }
 0x22c   :  { %v3435_v11 = vadd.f32 %v2992_v8, %v257_v9 }
 0x22e   :  { %v271_v12 = vpack.c.bf16 %v3435_v11, %v3433_v10 }
 0x230   :  { %2615 = vmatmul.msk.bf16.vlgmr.msra.gmra.mxu1 %vm201_vm4, %v271_v12 }
 0x2ad   :  { %v304_v16 = vpop.f32.mrf.mxu1 }
 0x2ae   :  { %v305_v18 = vadd.f32 %v2993_v14, %v304_v16 }
 0x2b0   :  { %v309_v19 = vpack.c.bf16 %v305_v18, %v305_v18 }
 0x2b2   :  { %v312_v20 = vunpack.c.l.b16 %v309_v19 }
 0x2b4   :  { %v3443_v21 = vpack.c.b16 %v312_v20, %v312_v20 }
 0x2b5   :  { %v306_v22 = vpop.f32.mrf.mxu1 }
 0x2b6   :  { %v307_v23 = vadd.f32 %v2993_v14, %v306_v22  ;;  %314 = vrot.lane.b32.xlu0 %v3443_v21, %s3256_s0 }
 0x2b8   :  { %v310_v24 = vpack.c.bf16 %v307_v23, %v307_v23 }
 0x2ba   :  { %v337_v25 = vunpack.c.l.b16 %v310_v24 }
 0x2bc   :  { %v3447_v26 = vpack.c.b16 %v337_v25, %v337_v25 }
 0x2be   :  { %339 = vrot.lane.b32.xlu2 %v3447_v26, %s3256_s0 }
 0x2c6   :  { %434 = vrot.lane.b32.xlu2 %v3443_v21, %s3257_s5 }
 0x2ce   :  { %457 = vrot.lane.b32.xlu2 %v3447_v26, %s3257_s5 }
 0x2d6   :  { %455 = vrot.lane.b32.xlu2 %v3447_v26, %s3258_s21 }
 0x318   :  { %v340_v27 = vpop.permute.xlu2 %339 }
 0x319   :  { %v345_v28 = vsel %vm316_vm12, %v340_v27, 0 }
 0x31a   :  { %354 = vmatpush.bf16.xpose.msra.mxu3 %v345_v28 }
 0x320   :  { %v435_v29 = vpop.permute.xlu2 %434 }
 0x321   :  { %2617 = vmatmul.msk.bf16.vlgmr.msra.gmra.mxu3 %vm316_vm12, %v310_v24  ;;  %v440_v30 = vsel %vm316_vm12, %v435_v29, 0 }
 0x322   :  { %449 = vmatpush.bf16.xpose.msrb.mxu3 %v440_v30 }
 0x328   :  { %v315_v31 = vpop.permute.xlu0 %314  ;;  %v458_v51 = vpop.permute.xlu2 %457 }
 0x329   :  { %v321_v32 = vsel %vm316_vm12, %v315_v31, 0  ;;  %v463_v54 = vsel %vm316_vm12, %v458_v51, 0 }
 0x32a   :  { %330 = vmatpush.bf16.xpose.msra.mxu2 %v321_v32 }
 0x330   :  { %v456_v1 = vpop.permute.xlu2 %455 }
 0x331   :  { %2616 = vmatmul.msk.bf16.vlgmr.msra.gmra.mxu2 %vm316_vm12, %v309_v19 }
 0x3a4   :  { %v356_v33 = vpop.f32.mrf.mxu3 }
 0x3a5   :  { %v361_v42 = vmul.f32 0.25, %v356_v33 }
 0x3a7   :  { %v363_v44 = vadd.f32 %v3476_v43, %v361_v42 }
 0x3a9   :  { %v368_v45 = vsel %vm364_vm13, %v363_v44, -inf }
 0x3ac   :  { %v358_v34 = vpop.f32.mrf.mxu3 }
 0x3b4   :  { %v332_v37 = vpop.f32.mrf.mxu2 }
 0x3b5   :  { %v360_v38 = vmul.f32 0.25, %v332_v37 }
 0x3b7   :  { %v362_v39 = vadd.f32 %v3465_v36, %v360_v38 }
 0x3b9   :  { %v365_v40 = vsel %vm364_vm13, %v362_v39, -inf }
 0x3ba   :  { %366 = vmax.xlane.f32.xlu1 %v365_v40 }
 0x3bc   :  { %v334_v41 = vpop.f32.mrf.mxu2 }
 0x3d3   :  { %389 = vrot.lane.b32.xlu1 %v3443_v21, %s3259_s24 }
 0x3db   :  { %432 = vrot.lane.b32.xlu1 %v3443_v21, %s3258_s21 }
 0x405   :  { %369 = vmax.xlane.f32.xlu1 %v368_v45 }
 0x42d   :  { %v367_v46 = vpop.xlane.xlu1 %366 }
 0x42e   :  { %v371_v47 = vsub.f32 %v362_v39, %v367_v46 }
 0x430   :  { %v373_v48 = vmul.f32 1.442695, %v371_v47 }
 0x432   :  { %3034 = vpow2.f32 %v373_v48 }
 0x438   :  { %v3035_v49 = vpop.eup %3034 }
 0x439   :  { %v377_v50 = vsel %vm364_vm13, %v3035_v49, 0.0 }
 0x43a   :  { %378 = vadd.xlane.f32.xlu0 %v377_v50 }
 0x445   :  { %v390_v52 = vpop.permute.xlu1 %389 }
 0x446   :  { %v396_v53 = vsel %vm394_vm14, %v390_v52, 0 }
 0x447   :  { %405 = vmatpush.bf16.msrb.mxu1 %v396_v53 }
 0x44b   :  { %472 = vmatpush.bf16.xpose.msra.mxu1 %v463_v54  ;;  %v2918_v54 = vld [vmem:[%s4006_s8 + $0x8] sm:$0xff] }
 0x44c   :  { %588 = vmatpush.bf16.msrb.mxu0 %v2918_v54 }
 0x44d   :  { %v433_v55 = vpop.permute.xlu1 %432 }
 0x44e   :  { %2620 = vmatmul.msk.bf16.vlgmr.msrb.gmra.mxu3 %vm316_vm12, %v433_v55 }
 0x478   :  { %v370_v56 = vpop.xlane.xlu1 %369 }
 0x479   :  { %v372_v57 = vsub.f32 %v363_v44, %v370_v56 }
 0x47b   :  { %v375_v58 = vmul.f32 1.442695, %v372_v57 }
 0x47d   :  { %3036 = vpow2.f32 %v375_v58  ;;  %v2917_v58 = vld [vmem:[%s4006_s8] sm:$0xff] }
 0x47e   :  { %589 = vmatpush.bf16.msrb.mxu0 %v2917_v58  ;;  %v2923_v58 = vld [vmem:[%s4012_s14 + $0x10] sm:$0xff] }
 0x483   :  { %v3037_v59 = vpop.eup %3036 }
 0x484   :  { %v380_v60 = vsel %vm364_vm13, %v3037_v59, 0.0 }
 0x485   :  { %381 = vadd.xlane.f32.xlu0 %v380_v60 }
 0x4ad   :  { %v379_v61 = vpop.xlane.xlu0 %378 }
 0x4ae   :  { %3038 = vrcp.f32 %v379_v61 }
 0x4b4   :  { %v3039_v62 = vpop.eup %3038 }
 0x4b5   :  { %v385_v63 = vmul.f32 %v3039_v62, %v3035_v49 }
 0x4b7   :  { %v387_v0 = vpack.c.bf16 %v385_v63, %v385_v63 }
 0x4b9   :  { %2618 = vmatmul.msk.bf16.vlgmr.msrb.gmra.mxu1 %vm364_vm13, %v387_v0 }
 0x4c9   :  { %2621 = vmatmul.msk.bf16.vlgmr.msra.gmra.mxu1 %vm316_vm12, %v456_v1  ;;  %v2996_v1 = vld [vmem:[%s4007_s9] ss:$0 sm:$0xff] }
 0x4d1   :  { %v451_v2 = vpop.f32.mrf.mxu3 }
 0x4d2   :  { %v478_v3 = vmul.f32 0.25, %v451_v2 }
 0x4d4   :  { %v480_v4 = vadd.f32 %v3465_v36, %v478_v3 }
 0x4d6   :  { %v482_v5 = vsel %vm364_vm13, %v480_v4, -inf }
 0x4d7   :  { %483 = vmax.xlane.f32.xlu2 %v482_v5 }
 0x4d9   :  { %v453_v6 = vpop.f32.mrf.mxu3 }
 0x4ef   :  { %506 = vrot.lane.b32.xlu2 %v3443_v21, %s3260_s25 }
 0x4f8   :  { %v382_v21 = vpop.xlane.xlu0 %381 }
 0x536   :  { %v3491_v7 = vpop.f32.mrf.mxu1 }
 0x53e   :  { %v409_v8 = vpop.f32.mrf.mxu1 }
 0x546   :  { %v474_v9 = vpop.f32.mrf.mxu1 }
 0x547   :  { %v479_v12 = vmul.f32 0.25, %v474_v9 }
 0x549   :  { %v481_v14 = vadd.f32 %v3476_v43, %v479_v12 }
 0x54a   :  { %v484_v16 = vpop.xlane.xlu2 %483 }
 0x54b   :  { %v488_v18 = vsub.f32 %v480_v4, %v484_v16  ;;  %v485_v19 = vsel %vm364_vm13, %v481_v14, -inf }
 0x54c   :  { %486 = vmax.xlane.f32.xlu0 %v485_v19 }
 0x54d   :  { %v490_v20 = vmul.f32 1.442695, %v488_v18 }
 0x54e   :  { %v476_v22 = vpop.f32.mrf.mxu1 }
 0x54f   :  { %3040 = vpow2.f32 %v490_v20 }
 0x552   :  { %v507_v33 = vpop.permute.xlu2 %506 }
 0x553   :  { %v512_v38 = vsel %vm394_vm14, %v507_v33, 0 }
 0x555   :  { %v3041_v23 = vpop.eup %3040 }
 0x556   :  { %v494_v24 = vsel %vm364_vm13, %v3041_v23, 0.0 }
 0x557   :  { %495 = vadd.xlane.f32.xlu1 %v494_v24 }
 0x560   :  { %411 = vrot.lane.b32.xlu0 %v3447_v26, %s3259_s24 }
 0x570   :  { %527 = vrot.lane.b32.xlu1 %v3447_v26, %s3260_s25 }
 0x5bf   :  { %v487_v25 = vpop.xlane.xlu0 %486 }
 0x5c0   :  { %v489_v27 = vsub.f32 %v481_v14, %v487_v25 }
 0x5c2   :  { %v492_v28 = vmul.f32 1.442695, %v489_v27  ;;  %v2919_v27 = vld [vmem:[%s4010_s12] sm:$0xff] }
 0x5c4   :  { %3042 = vpow2.f32 %v492_v28 }
 0x5c5   :  { %3044 = vrcp.f32 %v382_v21 }
 0x5ca   :  { %v3043_v29 = vpop.eup %3042  ;;  %v496_v26 = vpop.xlane.xlu1 %495 }
 0x5cb   :  { %v497_v30 = vsel %vm364_vm13, %v3043_v29, 0.0  ;;  %v3045_v31 = vpop.eup %3044  ;;  %3046 = vrcp.f32 %v496_v26 }
 0x5cc   :  { %498 = vadd.xlane.f32.xlu0 %v497_v30  ;;  %v386_v32 = vmul.f32 %v3045_v31, %v3037_v59 }
 0x5ce   :  { %v388_v39 = vpack.c.bf16 %v386_v32, %v386_v32 }
 0x5d1   :  { %v3047_v40 = vpop.eup %3046 }
 0x5d2   :  { %v412_v34 = vpop.permute.xlu0 %411  ;;  %v502_v41 = vmul.f32 %v3047_v40, %v3041_v23 }
 0x5d3   :  { %v417_v37 = vsel %vm394_vm14, %v412_v34, 0 }
 0x5d4   :  { %426 = vmatpush.bf16.msrb.mxu2 %v417_v37  ;;  %v504_v45 = vpack.c.bf16 %v502_v41, %v502_v41 }
 0x5d7   :  { %2619 = vmatmul.msk.bf16.vlgmr.msrb.gmra.mxu2 %vm364_vm13, %v388_v39 }
 0x5d8   :  { %521 = vmatpush.bf16.msra.mxu2 %v512_v38 }
 0x5e2   :  { %v528_v42 = vpop.permute.xlu1 %527 }
 0x5e3   :  { %v533_v44 = vsel %vm394_vm14, %v528_v42, 0 }
 0x5e4   :  { %542 = vmatpush.bf16.msra.mxu3 %v533_v44 }
 0x5e7   :  { %2622 = vmatmul.msk.bf16.vlgmr.msra.gmra.mxu2 %vm364_vm13, %v504_v45 }
 0x63f   :  { %v499_v46 = vpop.xlane.xlu0 %498 }
 0x640   :  { %3048 = vrcp.f32 %v499_v46  ;;  %v2997_v46 = vld [vmem:[%s4008_s10] ss:$0 sm:$0xff] }
 0x646   :  { %v3049_v47 = vpop.eup %3048 }
 0x647   :  { %v503_v48 = vmul.f32 %v3049_v47, %v3043_v29 }
 0x649   :  { %v505_v49 = vpack.c.bf16 %v503_v48, %v503_v48 }
 0x64b   :  { %2623 = vmatmul.msk.bf16.vlgmr.msra.gmra.mxu3 %vm364_vm13, %v505_v49 }
 0x65a   :  { %v428_v50 = vpop.f32.mrf.mxu2 }
 0x662   :  { %v430_v51 = vpop.f32.mrf.mxu2 }
 0x66a   :  { %v523_v52 = vpop.f32.mrf.mxu2 }
 0x672   :  { %v525_v53 = vpop.f32.mrf.mxu2 }
 0x6ce   :  { %v544_v55 = vpop.f32.mrf.mxu3 }
 0x6cf   :  { %v2971_v56 = vpack.i.bf16 %v544_v55, %v523_v52 }
 0x6d1   :  { %2972 = vrot.lane.b32.xlu2 %v2971_v56, %s3261_s27 }
 0x6d6   :  { %v546_v57 = vpop.f32.mrf.mxu3 }
 0x6d7   :  { %v2924_v57 = vld [vmem:[%s4012_s14 + $0x18] sm:$0xff] }
 0x6d8   :  { %755 = vmatpush.bf16.msrb.mxu2 %v2924_v57 }
 0x6dc   :  { %756 = vmatpush.bf16.msrb.mxu2 %v2923_v58 }
 0x72b   :  { %v2973_v59 = vpop.permute.xlu2 %2972 }
 0x72c   :  { %v2975_v60 = vunpack.i.h.bf16 %v2973_v59  ;;  %v2974_v61 = vunpack.i.l.bf16 %v2973_v59  ;;  %v2922_v59 = vld [vmem:[%s4012_s14 + $0x8] sm:$0xff] }
 0x72d   :  { %757 = vmatpush.bf16.msrb.mxu2 %v2922_v59 }
 0x72e   :  { %v557_v62 = vsel %vm316_vm12, %v428_v50, %v2975_v60  ;;  %v556_v63 = vsel %vm316_vm12, %v3491_v7, %v2974_v61  ;;  %v2998_v50 = vld [vmem:[%s4009_s11] ss:$0 sm:$0xff] }
 0x72f   :  { %v558_v0 = vpack.c.bf16 %v557_v62, %v556_v63  ;;  %v2921_v60 = vld [vmem:[%s4012_s14] sm:$0xff] }
 0x730   :  { %v2999_v61 = vld [vmem:[%s4011_s13] ss:$0 sm:$0xff] }
 0x731   :  { %2632 = vmatmul.msk.bf16.vlgmr.msrb.gmra.mxu0 %vm201_vm4, %v558_v0  ;;  %758 = vmatpush.bf16.msrb.mxu2 %v2921_v60 }
 0x7ae   :  { %v591_v2 = vpop.f32.mrf.mxu0 }
 0x7af   :  { %v592_v3 = vadd.f32 %v2996_v1, %v591_v2 }
 0x7b1   :  { %v596_v4 = vadd.f32 %v592_v3, %v3433_v10 }
 0x7b3   :  { %v600_v5 = vsel %vm201_vm4, %v596_v4, 0.0 }
 0x7b4   :  { %601 = vadd.xlane.f32.xlu1 %v600_v5 }
 0x7b6   :  { %v593_v6 = vpop.f32.mrf.mxu0 }
 0x7b7   :  { %v594_v8 = vadd.f32 %v2996_v1, %v593_v6 }
 0x7b9   :  { %v597_v9 = vadd.f32 %v594_v8, %v3435_v11  ;;  %v2920_v11 = vld [vmem:[%s4010_s12 + $0x8] sm:$0xff] }
 0x7ba   :  { %684 = vmatpush.bf16.msrb.mxu1 %v2920_v11 }
 0x7bb   :  { %v603_v7 = vsel %vm201_vm4, %v597_v9, 0.0 }
 0x7bc   :  { %604 = vadd.xlane.f32.xlu2 %v603_v7 }
 0x7be   :  { %685 = vmatpush.bf16.msrb.mxu1 %v2919_v27 }
 0x827   :  { %v602_v12 = vpop.xlane.xlu1 %601 }
 0x828   :  { %v606_v14 = vmul.f32 %v602_v12, %v3419_v35 }
 0x82a   :  { %v608_v16 = vsub.f32 %v596_v4, %v606_v14 }
 0x82c   :  { %v610_v18 = vmul.f32 %v608_v16, %v608_v16 }
 0x82e   :  { %v612_v19 = vsel %vm201_vm4, %v610_v18, 0.0 }
 0x82f   :  { %v605_v20 = vpop.xlane.xlu2 %604  ;;  %613 = vadd.xlane.f32.xlu0 %v612_v19 }
 0x830   :  { %v607_v10 = vmul.f32 %v605_v20, %v3419_v35 }
 0x832   :  { %v609_v22 = vsub.f32 %v597_v9, %v607_v10 }
 0x834   :  { %v611_v23 = vmul.f32 %v609_v22, %v609_v22 }
 0x836   :  { %v615_v24 = vsel %vm201_vm4, %v611_v23, 0.0 }
 0x837   :  { %616 = vadd.xlane.f32.xlu0 %v615_v24 }
 0x8a2   :  { %v614_v21 = vpop.xlane.xlu0 %613 }
 0x8a3   :  { %v618_v25 = vmul.f32 %v614_v21, %v3419_v35  ;;  %v3000_v21 = vld [vmem:[%s4013_s15] ss:$0 sm:$0xff] }
 0x8a5   :  { %v620_v28 = vadd.f32 1e-12, %v618_v25 }
 0x8a7   :  { %3050 = vrsqrt.f32 %v620_v28  ;;  %vm628_vm0 = vweird.f32 %v620_v28 }
 0x8aa   :  { %v617_v29 = vpop.xlane.xlu0 %616 }
 0x8ab   :  { %v619_v30 = vmul.f32 %v617_v29, %v3419_v35 }
 0x8ad   :  { %v3051_v31 = vpop.eup %3050  ;;  %v621_v32 = vadd.f32 1e-12, %v619_v30 }
 0x8ae   :  { %v623_v33 = vmul.f32 %v3051_v31, %v620_v28  ;;  %vm629_vm15 = vweird.f32 %v3051_v31 }
 0x8af   :  { %3052 = vrsqrt.f32 %v621_v32  ;;  %vm630_vm1 = vmor %vm628_vm0, %vm629_vm15  ;;  %vm638_vm3 = vweird.f32 %v621_v32 }
 0x8b0   :  { %v624_v34 = vmul.f32 %v3051_v31, %v623_v33 }
 0x8b2   :  { %v625_v37 = vmul.f32 0.5, %v624_v34 }
 0x8b4   :  { %v626_v38 = vsub.f32 1.5, %v625_v37 }
 0x8b5   :  { %v3053_v26 = vpop.eup %3052 }
 0x8b6   :  { %v627_v39 = vmul.f32 %v3051_v31, %v626_v38  ;;  %v633_v40 = vmul.f32 %v3053_v26, %v621_v32  ;;  %vm639_vm2 = vweird.f32 %v3053_v26 }
 0x8b7   :  { %vm640_vm5 = vmor %vm638_vm3, %vm639_vm2 }
 0x8b8   :  { %v634_v41 = vmul.f32 %v3053_v26, %v633_v40  ;;  %v631_v42 = vsel %vm630_vm1, %v3051_v31, %v627_v39 }
 0x8b9   :  { %v642_v47 = vmul.f32 %v631_v42, %v608_v16 }
 0x8ba   :  { %v635_v44 = vmul.f32 0.5, %v634_v41 }
 0x8bb   :  { %v647_v51 = vmul.f32 %v2997_v46, %v642_v47 }
 0x8bc   :  { %v636_v45 = vsub.f32 1.5, %v635_v44 }
 0x8bd   :  { %v652_v54 = vadd.f32 %v2998_v50, %v647_v51 }
 0x8be   :  { %v637_v48 = vmul.f32 %v3053_v26, %v636_v45 }
 0x8c0   :  { %v641_v49 = vsel %vm640_vm5, %v3053_v26, %v637_v48 }
 0x8c1   :  { %v643_v52 = vmul.f32 %v641_v49, %v609_v22  ;;  %v2925_v49 = vld [vmem:[%s4004_s6 + $0x10] sm:$0xff] }
 0x8c3   :  { %v648_v53 = vmul.f32 %v2997_v46, %v643_v52  ;;  %v2926_v46 = vld [vmem:[%s4004_s6 + $0x18] sm:$0xff] }
 0x8c4   :  { %855 = vmatpush.bf16.msrb.mxu3 %v2926_v46 }
 0x8c5   :  { %v653_v55 = vadd.f32 %v2998_v50, %v648_v53 }
 0x8c7   :  { %v654_v56 = vpack.c.bf16 %v653_v55, %v652_v54 }
 0x8c8   :  { %856 = vmatpush.bf16.msrb.mxu3 %v2925_v49 }
 0x8c9   :  { %2641 = vmatmul.msk.bf16.vlgmr.msrb.gmra.mxu1 %vm201_vm4, %v654_v56 }
 0x946   :  { %v687_v62 = vpop.f32.mrf.mxu1 }
 0x947   :  { %v688_v63 = vadd.f32 %v2999_v61, %v687_v62 }
 0x949   :  { %v694_v0 = vmul.f32 0.044715, %v688_v63  ;;  %v692_v20 = vmul.f32 0.5, %v688_v63 }
 0x94b   :  { %v696_v1 = vmul.f32 %v694_v0, %v688_v63 }
 0x94d   :  { %v698_v2 = vmul.f32 %v696_v1, %v688_v63 }
 0x94e   :  { %v689_v3 = vpop.f32.mrf.mxu1 }
 0x94f   :  { %v700_v4 = vadd.f32 %v698_v2, %v688_v63  ;;  %v690_v5 = vadd.f32 %v2999_v61, %v689_v3  ;;  %v3001_v2 = vld [vmem:[%s4014_s16] ss:$0 sm:$0xff] }
 0x951   :  { %v695_v6 = vmul.f32 0.044715, %v690_v5  ;;  %v702_v8 = vmul.f32 0.7978846, %v700_v4  ;;  %v693_v10 = vmul.f32 0.5, %v690_v5 }
 0x953   :  { %v697_v9 = vmul.f32 %v695_v6, %v690_v5  ;;  %3054 = vtanh.f32 %v702_v8  ;;  %v3002_v6 = vld [vmem:[%s4015_s17] ss:$0 sm:$0xff] }
 0x955   :  { %v699_v7 = vmul.f32 %v697_v9, %v690_v5 }
 0x957   :  { %v701_v12 = vadd.f32 %v699_v7, %v690_v5 }
 0x959   :  { %v703_v14 = vmul.f32 0.7978846, %v701_v12  ;;  %v3055_v16 = vpop.eup %3054 }
 0x95a   :  { %v706_v18 = vadd.f32 1.0, %v3055_v16 }
 0x95b   :  { %3056 = vtanh.f32 %v703_v14 }
 0x95c   :  { %v708_v23 = vmul.f32 %v706_v18, %v692_v20  ;;  %v3003_v18 = vld [vmem:[%s4005_s7 + $0x1] ss:$0 sm:$0xff] }
 0x961   :  { %v3057_v19 = vpop.eup %3056 }
 0x962   :  { %v707_v22 = vadd.f32 1.0, %v3057_v19 }
 0x964   :  { %v709_v24 = vmul.f32 %v707_v22, %v693_v10 }
 0x966   :  { %v710_v11 = vpack.c.bf16 %v709_v24, %v708_v23 }
 0x968   :  { %2658 = vmatmul.msk.bf16.vlgmr.msrb.gmra.mxu2 %vm747_vm6, %v710_v11 }
 0x9eb   :  { %v760_v25 = vpop.f32.mrf.mxu2 }
 0x9ec   :  { %v761_v27 = vadd.f32 %v3000_v21, %v760_v25 }
 0x9ee   :  { %v765_v28 = vadd.f32 %v761_v27, %v652_v54 }
 0x9f0   :  { %v769_v29 = vsel %vm201_vm4, %v765_v28, 0.0 }
 0x9f1   :  { %770 = vadd.xlane.f32.xlu0 %v769_v29 }
 0x9f3   :  { %v762_v30 = vpop.f32.mrf.mxu2 }
 0x9f4   :  { %v763_v31 = vadd.f32 %v3000_v21, %v762_v30 }
 0x9f6   :  { %v766_v32 = vadd.f32 %v763_v31, %v653_v55 }
 0x9f8   :  { %v772_v33 = vsel %vm201_vm4, %v766_v32, 0.0 }
 0x9f9   :  { %773 = vadd.xlane.f32.xlu0 %v772_v33 }
 0xa64   :  { %v771_v34 = vpop.xlane.xlu0 %770 }
 0xa65   :  { %v775_v37 = vmul.f32 %v771_v34, %v3419_v35 }
 0xa67   :  { %v777_v38 = vsub.f32 %v765_v28, %v775_v37 }
 0xa69   :  { %v779_v26 = vmul.f32 %v777_v38, %v777_v38 }
 0xa6b   :  { %v781_v39 = vsel %vm201_vm4, %v779_v26, 0.0 }
 0xa6c   :  { %782 = vadd.xlane.f32.xlu1 %v781_v39  ;;  %v774_v40 = vpop.xlane.xlu0 %773 }
 0xa6d   :  { %v776_v41 = vmul.f32 %v774_v40, %v3419_v35 }
 0xa6f   :  { %v778_v42 = vsub.f32 %v766_v32, %v776_v41 }
 0xa71   :  { %v780_v44 = vmul.f32 %v778_v42, %v778_v42 }
 0xa73   :  { %v784_v45 = vsel %vm201_vm4, %v780_v44, 0.0 }
 0xa74   :  { %785 = vadd.xlane.f32.xlu0 %v784_v45 }
 0xadf   :  { %v783_v47 = vpop.xlane.xlu1 %782 }
 0xae0   :  { %v787_v48 = vmul.f32 %v783_v47, %v3419_v35 }
 0xae2   :  { %v789_v50 = vadd.f32 1e-12, %v787_v48 }
 0xae4   :  { %3058 = vrsqrt.f32 %v789_v50  ;;  %vm797_vm8 = vweird.f32 %v789_v50 }
 0xae7   :  { %v786_v51 = vpop.xlane.xlu0 %785 }
 0xae8   :  { %v788_v52 = vmul.f32 %v786_v51, %v3419_v35 }
 0xaea   :  { %v3059_v53 = vpop.eup %3058  ;;  %v790_v54 = vadd.f32 1e-12, %v788_v52 }
 0xaeb   :  { %v792_v55 = vmul.f32 %v3059_v53, %v789_v50  ;;  %vm798_vm7 = vweird.f32 %v3059_v53 }
 0xaec   :  { %3060 = vrsqrt.f32 %v790_v54  ;;  %vm799_vm9 = vmor %vm797_vm8, %vm798_vm7  ;;  %vm807_vm11 = vweird.f32 %v790_v54 }
 0xaed   :  { %v793_v56 = vmul.f32 %v3059_v53, %v792_v55 }
 0xaef   :  { %v794_v57 = vmul.f32 0.5, %v793_v56 }
 0xaf1   :  { %v795_v58 = vsub.f32 1.5, %v794_v57 }
 0xaf2   :  { %v3061_v59 = vpop.eup %3060 }
 0xaf3   :  { %v796_v60 = vmul.f32 %v3059_v53, %v795_v58  ;;  %v802_v61 = vmul.f32 %v3061_v59, %v790_v54  ;;  %vm808_vm10 = vweird.f32 %v3061_v59 }
 0xaf4   :  { %vm809_vm15 = vmor %vm807_vm11, %vm808_vm10 }
 0xaf5   :  { %v803_v62 = vmul.f32 %v3061_v59, %v802_v61  ;;  %v800_v63 = vsel %vm799_vm9, %v3059_v53, %v796_v60 }
 0xaf6   :  { %v811_v3 = vmul.f32 %v800_v63, %v777_v38 }
 0xaf7   :  { %v804_v0 = vmul.f32 0.5, %v803_v62 }
 0xaf8   :  { %v816_v8 = vmul.f32 %v3001_v2, %v811_v3 }
 0xaf9   :  { %v805_v1 = vsub.f32 1.5, %v804_v0 }
 0xafa   :  { %v3583_v12 = vadd.f32 %v3002_v6, %v816_v8 }
 0xafb   :  { %v806_v4 = vmul.f32 %v3061_v59, %v805_v1 }
 0xafd   :  { %v810_v5 = vsel %vm809_vm15, %v3061_v59, %v806_v4 }
 0xafe   :  { %v812_v9 = vmul.f32 %v810_v5, %v778_v42 }
 0xb00   :  { %v817_v7 = vmul.f32 %v3001_v2, %v812_v9 }
 0xb02   :  { %v3585_v14 = vadd.f32 %v3002_v6, %v817_v7 }
 0xb04   :  { %v823_v16 = vpack.c.bf16 %v3585_v14, %v3583_v12 }
 0xb06   :  { %2672 = vmatmul.msk.bf16.vlgmr.msrb.gmra.mxu3 %vm201_vm4, %v823_v16 }
 0xb89   :  { %v858_v19 = vpop.f32.mrf.mxu3 }
 0xb8a   :  { %v859_v20 = vadd.f32 %v3003_v18, %v858_v19 }
 0xb8c   :  { %v863_v10 = vpack.c.bf16 %v859_v20, %v859_v20 }
 0xb8e   :  { %v866_v22 = vunpack.c.l.b16 %v863_v10 }
 0xb90   :  { %v3593_v23 = vpack.c.b16 %v866_v22, %v866_v22 }
 0xb91   :  { %v860_v24 = vpop.f32.mrf.mxu3 }
 0xb92   :  { %v861_v11 = vadd.f32 %v3003_v18, %v860_v24  ;;  %985 = vrot.lane.b32.xlu0 %v3593_v23, %s3257_s5  ;;  %868 = vrot.lane.b32.xlu2 %v3593_v23, %s3256_s0 }
 0xb94   :  { %v864_v21 = vpack.c.bf16 %v861_v11, %v861_v11 }
 0xb96   :  { %v890_v25 = vunpack.c.l.b16 %v864_v21 }
 0xb98   :  { %v891_v27 = vpack.c.b16 %v890_v25, %v890_v25 }
 0xb9a   :  { %892 = vrot.lane.b32.xlu1 %v891_v27, %s3256_s0  ;;  %983 = vrot.lane.b32.xlu0 %v3593_v23, %s3258_s21 }
 0xb9b   :  { %1008 = vrot.lane.b32.xlu2 %v891_v27, %s3257_s5 }
 0xba2   :  { %1006 = vrot.lane.b32.xlu1 %v891_v27, %s3258_s21 }
 0xbec   :  { %v869_v28 = vpop.permute.xlu2 %868 }
 0xbed   :  { %v874_v29 = vsel %vm316_vm12, %v869_v28, 0 }
 0xbee   :  { %883 = vmatpush.bf16.xpose.msra.mxu0 %v874_v29 }
 0xbf5   :  { %2673 = vmatmul.msk.bf16.vlgmr.msra.gmra.mxu0 %vm316_vm12, %v863_v10  ;;  %v1009_v32 = vpop.permute.xlu2 %1008 }
 0xbf6   :  { %v1014_v38 = vsel %vm316_vm12, %v1009_v32, 0 }
 0xc04   :  { %v986_v30 = vpop.permute.xlu0 %985 }
 0xc05   :  { %v991_v31 = vsel %vm316_vm12, %v986_v30, 0 }
 0xc06   :  { %1000 = vmatpush.bf16.xpose.msrb.mxu0 %v991_v31 }
 0xc0c   :  { %v893_v33 = vpop.permute.xlu1 %892  ;;  %v984_v34 = vpop.permute.xlu0 %983 }
 0xc0d   :  { %v898_v37 = vsel %vm316_vm12, %v893_v33, 0  ;;  %2677 = vmatmul.msk.bf16.vlgmr.msrb.gmra.mxu0 %vm316_vm12, %v984_v34 }
 0xc0e   :  { %907 = vmatpush.bf16.xpose.msra.mxu1 %v898_v37 }
 0xc14   :  { %v1007_v26 = vpop.permute.xlu1 %1006 }
 0xc15   :  { %2674 = vmatmul.msk.bf16.vlgmr.msra.gmra.mxu1 %vm316_vm12, %v864_v21 }
 0xc16   :  { %1023 = vmatpush.bf16.xpose.msrb.mxu1 %v1014_v38 }
 0xc25   :  { %2678 = vmatmul.msk.bf16.vlgmr.msrb.gmra.mxu1 %vm316_vm12, %v1007_v26 }
 0xc72   :  { %v885_v39 = vpop.f32.mrf.mxu0 }
 0xc73   :  { %v913_v40 = vmul.f32 0.25, %v885_v39 }
 0xc75   :  { %v915_v41 = vadd.f32 %v3465_v36, %v913_v40 }
 0xc77   :  { %v917_v42 = vsel %vm364_vm13, %v915_v41, -inf }
 0xc78   :  { %918 = vmax.xlane.f32.xlu2 %v917_v42 }
 0xc7a   :  { %v887_v44 = vpop.f32.mrf.mxu0 }
 0xc8a   :  { %v1002_v45 = vpop.f32.mrf.mxu0 }
 0xc8b   :  { %v1029_v46 = vmul.f32 0.25, %v1002_v45 }
 0xc8d   :  { %v1031_v47 = vadd.f32 %v3465_v36, %v1029_v46 }
 0xc8f   :  { %v1033_v48 = vsel %vm364_vm13, %v1031_v47, -inf }
 0xc90   :  { %1034 = vmax.xlane.f32.xlu1 %v1033_v48 }
 0xc92   :  { %v909_v49 = vpop.f32.mrf.mxu1  ;;  %v1004_v50 = vpop.f32.mrf.mxu0 }
 0xc93   :  { %v914_v51 = vmul.f32 0.25, %v909_v49  ;;  %v2928_v50 = vld [vmem:[%s4006_s8 + $0x18] sm:$0xff] }
 0xc94   :  { %1141 = vmatpush.bf16.msra.mxu0 %v2928_v50 }
 0xc95   :  { %v916_v52 = vadd.f32 %v3476_v43, %v914_v51 }
 0xc97   :  { %v920_v53 = vsel %vm364_vm13, %v916_v52, -inf }
 0xc98   :  { %921 = vmax.xlane.f32.xlu0 %v920_v53 }
 0xc9a   :  { %v911_v54 = vpop.f32.mrf.mxu1 }
 0xca2   :  { %v1025_v55 = vpop.f32.mrf.mxu1 }
 0xca3   :  { %v1030_v56 = vmul.f32 0.25, %v1025_v55 }
 0xca5   :  { %v1032_v57 = vadd.f32 %v3476_v43, %v1030_v56  ;;  %v2927_v56 = vld [vmem:[%s4006_s8 + $0x10] sm:$0xff] }
 0xca6   :  { %1142 = vmatpush.bf16.msra.mxu0 %v2927_v56  ;;  %v2931_v56 = vld [vmem:[%s4012_s14 + $0x20] sm:$0xff] }
 0xca7   :  { %v1036_v58 = vsel %vm364_vm13, %v1032_v57, -inf }
 0xca8   :  { %1037 = vmax.xlane.f32.xlu2 %v1036_v58 }
 0xcaa   :  { %v1027_v36 = vpop.f32.mrf.mxu1 }
 0xcac   :  { %962 = vrot.lane.b32.xlu0 %v891_v27, %s3259_s24 }
 0xcc0   :  { %941 = vrot.lane.b32.xlu2 %v3593_v23, %s3259_s24 }
 0xceb   :  { %v919_v59 = vpop.xlane.xlu2 %918 }
 0xcec   :  { %v923_v60 = vsub.f32 %v915_v41, %v919_v59 }
 0xcee   :  { %v925_v61 = vmul.f32 1.442695, %v923_v60 }
 0xcf0   :  { %3062 = vpow2.f32 %v925_v61 }
 0xcf6   :  { %v3063_v62 = vpop.eup %3062 }
 0xcf7   :  { %v929_v63 = vsel %vm364_vm13, %v3063_v62, 0.0 }
 0xcf8   :  { %930 = vadd.xlane.f32.xlu0 %v929_v63 }
 0xd03   :  { %v1035_v0 = vpop.xlane.xlu1 %1034 }
 0xd04   :  { %v1039_v2 = vsub.f32 %v1031_v47, %v1035_v0 }
 0xd06   :  { %v1041_v4 = vmul.f32 1.442695, %v1039_v2 }
 0xd0b   :  { %v922_v1 = vpop.xlane.xlu0 %921 }
 0xd0c   :  { %v924_v43 = vsub.f32 %v916_v52, %v922_v1  ;;  %1078 = vrot.lane.b32.xlu0 %v891_v27, %s3260_s25 }
 0xd0e   :  { %v927_v3 = vmul.f32 1.442695, %v924_v43 }
 0xd10   :  { %3064 = vpow2.f32 %v927_v3 }
 0xd11   :  { %3066 = vpow2.f32 %v1041_v4 }
 0xd16   :  { %v3065_v5 = vpop.eup %3064 }
 0xd17   :  { %v932_v6 = vsel %vm364_vm13, %v3065_v5, 0.0  ;;  %v3067_v9 = vpop.eup %3066 }
 0xd18   :  { %933 = vadd.xlane.f32.xlu1 %v932_v6  ;;  %v1045_v20 = vsel %vm364_vm13, %v3067_v9, 0.0 }
 0xd1b   :  { %v1038_v8 = vpop.xlane.xlu2 %1037 }
 0xd1c   :  { %v1040_v7 = vsub.f32 %v1032_v57, %v1038_v8 }
 0xd1e   :  { %v1043_v16 = vmul.f32 1.442695, %v1040_v7  ;;  %v963_v18 = vpop.permute.xlu0 %962 }
 0xd1f   :  { %v968_v19 = vsel %vm394_vm14, %v963_v18, 0 }
 0xd20   :  { %3068 = vpow2.f32 %v1043_v16  ;;  %977 = vmatpush.bf16.msra.mxu3 %v968_v19  ;;  %1046 = vadd.xlane.f32.xlu1 %v1045_v20 }
 0xd23   :  { %v942_v10 = vpop.permute.xlu2 %941 }
 0xd24   :  { %v947_v22 = vsel %vm394_vm14, %v942_v10, 0 }
 0xd25   :  { %956 = vmatpush.bf16.msra.mxu2 %v947_v22 }
 0xd26   :  { %v3069_v24 = vpop.eup %3068 }
 0xd27   :  { %v1048_v11 = vsel %vm364_vm13, %v3069_v24, 0.0 }
 0xd28   :  { %1049 = vadd.xlane.f32.xlu1 %v1048_v11 }
 0xd41   :  { %1057 = vrot.lane.b32.xlu1 %v3593_v23, %s3260_s25 }
 0xd6b   :  { %v931_v21 = vpop.xlane.xlu0 %930 }
 0xd6c   :  { %3070 = vrcp.f32 %v931_v21  ;;  %v2929_v21 = vld [vmem:[%s4010_s12 + $0x10] sm:$0xff] }
 0xd72   :  { %v3071_v25 = vpop.eup %3070 }
 0xd73   :  { %v937_v27 = vmul.f32 %v3071_v25, %v3063_v62  ;;  %v3004_v62 = vld [vmem:[%s4007_s9 + $0x1] ss:$0 sm:$0xff] }
 0xd75   :  { %v939_v28 = vpack.c.bf16 %v937_v27, %v937_v27 }
 0xd77   :  { %2675 = vmatmul.msk.bf16.vlgmr.msra.gmra.mxu2 %vm364_vm13, %v939_v28 }
 0xd7e   :  { %v1079_v29 = vpop.permute.xlu0 %1078 }
 0xd7f   :  { %v1084_v30 = vsel %vm394_vm14, %v1079_v29, 0 }
 0xd80   :  { %1093 = vmatpush.bf16.msrb.mxu3 %v1084_v30 }
 0xd8b   :  { %v934_v31 = vpop.xlane.xlu1 %933 }
 0xd8c   :  { %3072 = vrcp.f32 %v934_v31 }
 0xd92   :  { %v3073_v32 = vpop.eup %3072 }
 0xd93   :  { %v938_v33 = vmul.f32 %v3073_v32, %v3065_v5  ;;  %v1047_v34 = vpop.xlane.xlu1 %1046 }
 0xd95   :  { %v940_v37 = vpack.c.bf16 %v938_v33, %v938_v33 }
 0xd97   :  { %2676 = vmatmul.msk.bf16.vlgmr.msra.gmra.mxu3 %vm364_vm13, %v940_v37 }
 0xd9b   :  { %v1050_v23 = vpop.xlane.xlu1 %1049 }
 0xd9c   :  { %3074 = vrcp.f32 %v1050_v23 }
 0xd9d   :  { %3076 = vrcp.f32 %v1047_v34 }
 0xda2   :  { %v3075_v38 = vpop.eup %3074 }
 0xda3   :  { %v1054_v26 = vmul.f32 %v3075_v38, %v3069_v24  ;;  %v3077_v40 = vpop.eup %3076 }
 0xda4   :  { %v1053_v41 = vmul.f32 %v3077_v40, %v3067_v9 }
 0xda5   :  { %v1056_v39 = vpack.c.bf16 %v1054_v26, %v1054_v26 }
 0xda6   :  { %v1055_v45 = vpack.c.bf16 %v1053_v41, %v1053_v41  ;;  %v3005_v41 = vld [vmem:[%s4008_s10 + $0x1] ss:$0 sm:$0xff] }
 0xda7   :  { %2680 = vmatmul.msk.bf16.vlgmr.msrb.gmra.mxu3 %vm364_vm13, %v1056_v39 }
 0xdb3   :  { %v1058_v42 = vpop.permute.xlu1 %1057 }
 0xdb4   :  { %v1063_v44 = vsel %vm394_vm14, %v1058_v42, 0 }
 0xdb5   :  { %1072 = vmatpush.bf16.msrb.mxu2 %v1063_v44 }
 0xdb8   :  { %2679 = vmatmul.msk.bf16.vlgmr.msrb.gmra.mxu2 %vm364_vm13, %v1055_v45 }
 0xdfa   :  { %v958_v46 = vpop.f32.mrf.mxu2 }
 0xe02   :  { %v960_v47 = vpop.f32.mrf.mxu2 }
 0xe1a   :  { %v979_v48 = vpop.f32.mrf.mxu3 }
 0xe22   :  { %v981_v49 = vpop.f32.mrf.mxu3 }
 0xe2a   :  { %v1095_v51 = vpop.f32.mrf.mxu3 }
 0xe32   :  { %v1097_v52 = vpop.f32.mrf.mxu3 }
 0xe3b   :  { %v1074_v53 = vpop.f32.mrf.mxu2 }
 0xe3c   :  { %v2976_v54 = vpack.i.bf16 %v1095_v51, %v1074_v53  ;;  %v2934_v53 = vld [vmem:[%s4012_s14 + $0x38] sm:$0xff] }
 0xe3d   :  { %1313 = vmatpush.bf16.msra.mxu2 %v2934_v53 }
 0xe3e   :  { %2977 = vrot.lane.b32.xlu2 %v2976_v54, %s3261_s27  ;;  %v2933_v54 = vld [vmem:[%s4012_s14 + $0x30] sm:$0xff] }
 0xe41   :  { %1314 = vmatpush.bf16.msra.mxu2 %v2933_v54 }
 0xe43   :  { %v1076_v55 = vpop.f32.mrf.mxu2 }
 0xe44   :  { %v2932_v55 = vld [vmem:[%s4012_s14 + $0x28] sm:$0xff] }
 0xe45   :  { %1315 = vmatpush.bf16.msra.mxu2 %v2932_v55 }
 0xe49   :  { %1316 = vmatpush.bf16.msra.mxu2 %v2931_v56 }
 0xe98   :  { %v2978_v57 = vpop.permute.xlu2 %2977 }
 0xe99   :  { %v2980_v58 = vunpack.i.h.bf16 %v2978_v57  ;;  %v2979_v36 = vunpack.i.l.bf16 %v2978_v57  ;;  %v3007_v57 = vld [vmem:[%s4011_s13 + $0x1] ss:$0 sm:$0xff] }
 0xe9b   :  { %v1108_v59 = vsel %vm316_vm12, %v979_v48, %v2980_v58  ;;  %v1107_v60 = vsel %vm316_vm12, %v958_v46, %v2979_v36  ;;  %v3006_v46 = vld [vmem:[%s4009_s11 + $0x1] ss:$0 sm:$0xff] }
 0xe9c   :  { %v1109_v61 = vpack.c.bf16 %v1108_v59, %v1107_v60 }
 0xe9e   :  { %2694 = vmatmul.msk.bf16.vlgmr.msra.gmra.mxu0 %vm201_vm4, %v1109_v61 }
 0xf1b   :  { %v1144_v63 = vpop.f32.mrf.mxu0 }
 0xf1c   :  { %v1145_v0 = vadd.f32 %v3004_v62, %v1144_v63 }
 0xf1e   :  { %v1149_v1 = vadd.f32 %v1145_v0, %v3583_v12 }
 0xf20   :  { %v1155_v43 = vsel %vm201_vm4, %v1149_v1, 0.0 }
 0xf21   :  { %1156 = vadd.xlane.f32.xlu0 %v1155_v43 }
 0xf23   :  { %v1146_v2 = vpop.f32.mrf.mxu0 }
 0xf24   :  { %v1147_v3 = vadd.f32 %v3004_v62, %v1146_v2 }
 0xf26   :  { %v1150_v4 = vadd.f32 %v1147_v3, %v3585_v14  ;;  %v2930_v14 = vld [vmem:[%s4010_s12 + $0x18] sm:$0xff] }
 0xf27   :  { %1241 = vmatpush.bf16.msra.mxu1 %v2930_v14 }
 0xf28   :  { %v1158_v5 = vsel %vm201_vm4, %v1150_v4, 0.0 }
 0xf29   :  { %1159 = vadd.xlane.f32.xlu2 %v1158_v5 }
 0xf2b   :  { %1242 = vmatpush.bf16.msra.mxu1 %v2929_v21 }
 0xf94   :  { %v1157_v6 = vpop.xlane.xlu0 %1156 }
 0xf95   :  { %v1161_v8 = vmul.f32 %v1157_v6, %v3419_v35 }
 0xf97   :  { %v1163_v9 = vsub.f32 %v1149_v1, %v1161_v8 }
 0xf99   :  { %v1165_v7 = vmul.f32 %v1163_v9, %v1163_v9 }
 0xf9b   :  { %v1167_v16 = vsel %vm201_vm4, %v1165_v7, 0.0 }
 0xf9c   :  { %v1160_v18 = vpop.xlane.xlu2 %1159  ;;  %1168 = vadd.xlane.f32.xlu1 %v1167_v16 }
 0xf9d   :  { %v1162_v12 = vmul.f32 %v1160_v18, %v3419_v35 }
 0xf9f   :  { %v1164_v19 = vsub.f32 %v1150_v4, %v1162_v12 }
 0xfa1   :  { %v1166_v20 = vmul.f32 %v1164_v19, %v1164_v19 }
 0xfa3   :  { %v1170_v10 = vsel %vm201_vm4, %v1166_v20, 0.0 }
 0xfa4   :  { %1171 = vadd.xlane.f32.xlu0 %v1170_v10  ;;  %v3008_v10 = vld [vmem:[%s4013_s15 + $0x1] ss:$0 sm:$0xff] }
0x100f   :  { %v1169_v22 = vpop.xlane.xlu1 %1168 }
0x1010   :  { %v1173_v24 = vmul.f32 %v1169_v22, %v3419_v35 }
0x1012   :  { %v1175_v11 = vadd.f32 1e-12, %v1173_v24 }
0x1014   :  { %3078 = vrsqrt.f32 %v1175_v11  ;;  %vm1183_vm1 = vweird.f32 %v1175_v11 }
0x1017   :  { %v1172_v25 = vpop.xlane.xlu0 %1171 }
0x1018   :  { %v1174_v27 = vmul.f32 %v1172_v25, %v3419_v35 }
0x101a   :  { %v3079_v28 = vpop.eup %3078  ;;  %v1176_v29 = vadd.f32 1e-12, %v1174_v27 }
0x101b   :  { %v1178_v30 = vmul.f32 %v3079_v28, %v1175_v11  ;;  %vm1184_vm0 = vweird.f32 %v3079_v28 }
0x101c   :  { %3080 = vrsqrt.f32 %v1176_v29  ;;  %vm1185_vm2 = vmor %vm1183_vm1, %vm1184_vm0  ;;  %vm1193_vm5 = vweird.f32 %v1176_v29 }
0x101d   :  { %v1179_v31 = vmul.f32 %v3079_v28, %v1178_v30 }
0x101f   :  { %v1180_v32 = vmul.f32 0.5, %v1179_v31 }
0x1021   :  { %v1181_v33 = vsub.f32 1.5, %v1180_v32 }
0x1022   :  { %v3081_v34 = vpop.eup %3080 }
0x1023   :  { %v1182_v37 = vmul.f32 %v3079_v28, %v1181_v33  ;;  %v1188_v23 = vmul.f32 %v3081_v34, %v1176_v29  ;;  %vm1194_vm3 = vweird.f32 %v3081_v34 }
0x1024   :  { %vm1195_vm7 = vmor %vm1193_vm5, %vm1194_vm3 }
0x1025   :  { %v1189_v38 = vmul.f32 %v3081_v34, %v1188_v23  ;;  %v1186_v26 = vsel %vm1185_vm2, %v3079_v28, %v1182_v37 }
0x1026   :  { %v1197_v42 = vmul.f32 %v1186_v26, %v1163_v9 }
0x1027   :  { %v1190_v39 = vmul.f32 0.5, %v1189_v38 }
0x1028   :  { %v1202_v47 = vmul.f32 %v3005_v41, %v1197_v42 }
0x1029   :  { %v1191_v40 = vsub.f32 1.5, %v1190_v39  ;;  %v2936_v39 = vld [vmem:[%s4004_s6 + $0x28] sm:$0xff] }
0x102a   :  { %v1207_v50 = vadd.f32 %v3006_v46, %v1202_v47  ;;  %1415 = vmatpush.bf16.msra.mxu3 %v2936_v39 }
0x102b   :  { %v1192_v44 = vmul.f32 %v3081_v34, %v1191_v40 }
0x102d   :  { %v1196_v45 = vsel %vm1195_vm7, %v3081_v34, %v1192_v44  ;;  %v2935_v44 = vld [vmem:[%s4004_s6 + $0x20] sm:$0xff] }
0x102e   :  { %v1198_v48 = vmul.f32 %v1196_v45, %v1164_v19  ;;  %1416 = vmatpush.bf16.msra.mxu3 %v2935_v44 }
0x1030   :  { %v1203_v49 = vmul.f32 %v3005_v41, %v1198_v48 }
0x1032   :  { %v1208_v51 = vadd.f32 %v3006_v46, %v1203_v49 }
0x1034   :  { %v1209_v52 = vpack.c.bf16 %v1208_v51, %v1207_v50 }
0x1036   :  { %2710 = vmatmul.msk.bf16.vlgmr.msra.gmra.mxu1 %vm201_vm4, %v1209_v52 }
0x10b3   :  { %v1244_v58 = vpop.f32.mrf.mxu1 }
0x10b4   :  { %v1245_v36 = vadd.f32 %v3007_v57, %v1244_v58 }
0x10b6   :  { %v1251_v59 = vmul.f32 0.044715, %v1245_v36  ;;  %v1249_v7 = vmul.f32 0.5, %v1245_v36 }
0x10b8   :  { %v1253_v60 = vmul.f32 %v1251_v59, %v1245_v36  ;;  %v3009_v59 = vld [vmem:[%s4014_s16 + $0x1] ss:$0 sm:$0xff] }
0x10ba   :  { %v1255_v61 = vmul.f32 %v1253_v60, %v1245_v36 }
0x10bb   :  { %v1246_v62 = vpop.f32.mrf.mxu1 }
0x10bc   :  { %v1257_v63 = vadd.f32 %v1255_v61, %v1245_v36  ;;  %v1247_v0 = vadd.f32 %v3007_v57, %v1246_v62 }
0x10be   :  { %v1252_v1 = vmul.f32 0.044715, %v1247_v0  ;;  %v1259_v43 = vmul.f32 0.7978846, %v1257_v63  ;;  %v1250_v16 = vmul.f32 0.5, %v1247_v0 }
0x10bf   :  { %v3010_v63 = vld [vmem:[%s4015_s17 + $0x1] ss:$0 sm:$0xff] }
0x10c0   :  { %v1254_v2 = vmul.f32 %v1252_v1, %v1247_v0  ;;  %3082 = vtanh.f32 %v1259_v43 }
0x10c2   :  { %v1256_v3 = vmul.f32 %v1254_v2, %v1247_v0 }
0x10c4   :  { %v1258_v4 = vadd.f32 %v1256_v3, %v1247_v0 }
0x10c6   :  { %v1260_v5 = vmul.f32 0.7978846, %v1258_v4  ;;  %v3083_v6 = vpop.eup %3082 }
0x10c7   :  { %v1263_v8 = vadd.f32 1.0, %v3083_v6 }
0x10c8   :  { %3084 = vtanh.f32 %v1260_v5  ;;  %v3011_v5 = vld [vmem:[%s4005_s7 + $0x2] ss:$0 sm:$0xff] }
0x10c9   :  { %v1265_v12 = vmul.f32 %v1263_v8, %v1249_v7 }
0x10ce   :  { %v3085_v9 = vpop.eup %3084 }
0x10cf   :  { %v1264_v18 = vadd.f32 1.0, %v3085_v9 }
0x10d1   :  { %v1266_v19 = vmul.f32 %v1264_v18, %v1250_v16 }
0x10d3   :  { %v1267_v20 = vpack.c.bf16 %v1266_v19, %v1265_v12 }
0x10d5   :  { %2736 = vmatmul.msk.bf16.vlgmr.msra.gmra.mxu2 %vm747_vm6, %v1267_v20 }
0x1158   :  { %v1318_v14 = vpop.f32.mrf.mxu2 }
0x1159   :  { %v1319_v22 = vadd.f32 %v3008_v10, %v1318_v14 }
0x115b   :  { %v1323_v24 = vadd.f32 %v1319_v22, %v1207_v50 }
0x115d   :  { %v1329_v11 = vsel %vm201_vm4, %v1323_v24, 0.0 }
0x115e   :  { %1330 = vadd.xlane.f32.xlu2 %v1329_v11 }
0x1160   :  { %v1320_v21 = vpop.f32.mrf.mxu2 }
0x1161   :  { %v1321_v25 = vadd.f32 %v3008_v10, %v1320_v21 }
0x1163   :  { %v1324_v27 = vadd.f32 %v1321_v25, %v1208_v51 }
0x1165   :  { %v1332_v28 = vsel %vm201_vm4, %v1324_v27, 0.0 }
0x1166   :  { %1333 = vadd.xlane.f32.xlu0 %v1332_v28 }
0x11d1   :  { %v1331_v29 = vpop.xlane.xlu2 %1330 }
0x11d2   :  { %v1335_v30 = vmul.f32 %v1331_v29, %v3419_v35 }
0x11d4   :  { %v1337_v31 = vsub.f32 %v1323_v24, %v1335_v30 }
0x11d6   :  { %v1339_v32 = vmul.f32 %v1337_v31, %v1337_v31 }
0x11d8   :  { %v1341_v33 = vsel %vm201_vm4, %v1339_v32, 0.0 }
0x11d9   :  { %v1334_v34 = vpop.xlane.xlu0 %1333  ;;  %1342 = vadd.xlane.f32.xlu2 %v1341_v33  ;;  %v3750_v33 = vld [vmem:[%s4032_s23 + $0x1] ss:$0 sm:$0xff] }
0x11da   :  { %v1336_v37 = vmul.f32 %v1334_v34, %v3419_v35 }
0x11dc   :  { %v1338_v23 = vsub.f32 %v1324_v27, %v1336_v37 }
0x11de   :  { %v1340_v38 = vmul.f32 %v1338_v23, %v1338_v23 }
0x11e0   :  { %v1344_v26 = vsel %vm201_vm4, %v1340_v38, 0.0 }
0x11e1   :  { %1345 = vadd.xlane.f32.xlu0 %v1344_v26 }
0x124c   :  { %v1343_v40 = vpop.xlane.xlu2 %1342 }
0x124d   :  { %v1347_v41 = vmul.f32 %v1343_v40, %v3419_v35  ;;  %v3757_v40 = vld [vmem:[%s4032_s23] ss:$0 sm:$0xff] }
0x124f   :  { %v1349_v42 = vadd.f32 1e-12, %v1347_v41 }
0x1251   :  { %3086 = vrsqrt.f32 %v1349_v42  ;;  %vm1357_vm9 = vweird.f32 %v1349_v42 }
0x1254   :  { %v1346_v45 = vpop.xlane.xlu0 %1345 }
0x1255   :  { %v1348_v46 = vmul.f32 %v1346_v45, %v3419_v35 }
0x1257   :  { %v3087_v47 = vpop.eup %3086  ;;  %v1350_v48 = vadd.f32 1e-12, %v1348_v46 }
0x1258   :  { %v1352_v49 = vmul.f32 %v3087_v47, %v1349_v42  ;;  %vm1358_vm8 = vweird.f32 %v3087_v47 }
0x1259   :  { %3088 = vrsqrt.f32 %v1350_v48  ;;  %vm1359_vm10 = vmor %vm1357_vm9, %vm1358_vm8  ;;  %vm1367_vm15 = vweird.f32 %v1350_v48 }
0x125a   :  { %v1353_v50 = vmul.f32 %v3087_v47, %v1352_v49 }
0x125c   :  { %v1354_v51 = vmul.f32 0.5, %v1353_v50 }
0x125e   :  { %v1355_v52 = vsub.f32 1.5, %v1354_v51 }
0x125f   :  { %v3089_v53 = vpop.eup %3088 }
0x1260   :  { %v1356_v54 = vmul.f32 %v3087_v47, %v1355_v52  ;;  %v1362_v55 = vmul.f32 %v3089_v53, %v1350_v48  ;;  %vm1368_vm11 = vweird.f32 %v3089_v53 }
0x1261   :  { %vm1369_vm0 = vmor %vm1367_vm15, %vm1368_vm11 }
0x1262   :  { %v1363_v56 = vmul.f32 %v3089_v53, %v1362_v55  ;;  %v1360_v57 = vsel %vm1359_vm10, %v3087_v47, %v1356_v54 }
0x1263   :  { %v1371_v60 = vmul.f32 %v1360_v57, %v1337_v31 }
0x1264   :  { %v1364_v58 = vmul.f32 0.5, %v1363_v56 }
0x1265   :  { %v1376_v0 = vmul.f32 %v3009_v59, %v1371_v60 }
0x1266   :  { %v1365_v36 = vsub.f32 1.5, %v1364_v58 }
0x1267   :  { %v3713_v2 = vadd.f32 %v3010_v63, %v1376_v0 }
0x1268   :  { %v1366_v61 = vmul.f32 %v3089_v53, %v1365_v36 }
0x126a   :  { %v1370_v62 = vsel %vm1369_vm0, %v3089_v53, %v1366_v61 }
0x126b   :  { %v1372_v1 = vmul.f32 %v1370_v62, %v1338_v23 }
0x126d   :  { %v1377_v43 = vmul.f32 %v3009_v59, %v1372_v1 }
0x126f   :  { %v3715_v3 = vadd.f32 %v3010_v63, %v1377_v43 }
0x1271   :  { %v1383_v4 = vpack.c.bf16 %v3715_v3, %v3713_v2 }
0x1273   :  { %2752 = vmatmul.msk.bf16.vlgmr.msra.gmra.mxu3 %vm201_vm4, %v1383_v4 }
0x12f6   :  { %v1418_v6 = vpop.f32.mrf.mxu3 }
0x12f7   :  { %v1419_v8 = vadd.f32 %v3011_v5, %v1418_v6 }
0x12f9   :  { %v1423_v9 = vpack.c.bf16 %v1419_v8, %v1419_v8 }
0x12fb   :  { %v1426_v7 = vunpack.c.l.b16 %v1423_v9 }
0x12fd   :  { %v3723_v16 = vpack.c.b16 %v1426_v7, %v1426_v7 }
0x12fe   :  { %v1420_v18 = vpop.f32.mrf.mxu3 }
0x12ff   :  { %v1421_v12 = vadd.f32 %v3011_v5, %v1420_v18  ;;  %1545 = vrot.lane.b32.xlu0 %v3723_v16, %s3257_s5  ;;  %1428 = vrot.lane.b32.xlu1 %v3723_v16, %s3256_s0 }
0x1301   :  { %v1424_v19 = vpack.c.bf16 %v1421_v12, %v1421_v12 }
0x1303   :  { %v1450_v20 = vunpack.c.l.b16 %v1424_v19 }
0x1305   :  { %v3729_v10 = vpack.c.b16 %v1450_v20, %v1450_v20 }
0x1307   :  { %1452 = vrot.lane.b32.xlu2 %v3729_v10, %s3256_s0  ;;  %1566 = vrot.lane.b32.xlu0 %v3729_v10, %s3258_s21 }
0x1308   :  { %1543 = vrot.lane.b32.xlu1 %v3723_v16, %s3258_s21 }
0x130f   :  { %1568 = vrot.lane.b32.xlu2 %v3729_v10, %s3257_s5 }
0x1361   :  { %v1453_v14 = vpop.permute.xlu2 %1452 }
0x1362   :  { %v1458_v22 = vsel %vm316_vm12, %v1453_v14, 0 }
0x1363   :  { %1467 = vmatpush.bf16.xpose.msrb.mxu1 %v1458_v22 }
0x1369   :  { %v1569_v24 = vpop.permute.xlu2 %1568 }
0x136a   :  { %v1574_v11 = vsel %vm316_vm12, %v1569_v24, 0  ;;  %2754 = vmatmul.msk.bf16.vlgmr.msrb.gmra.mxu1 %vm316_vm12, %v1424_v19 }
0x136b   :  { %1583 = vmatpush.bf16.xpose.msra.mxu1 %v1574_v11 }
0x1371   :  { %v1546_v21 = vpop.permute.xlu0 %1545  ;;  %v1429_v25 = vpop.permute.xlu1 %1428 }
0x1372   :  { %v1551_v27 = vsel %vm316_vm12, %v1546_v21, 0  ;;  %v1434_v28 = vsel %vm316_vm12, %v1429_v25, 0 }
0x1373   :  { %1443 = vmatpush.bf16.xpose.msrb.mxu0 %v1434_v28 }
0x1379   :  { %v1567_v29 = vpop.permute.xlu0 %1566 }
0x137a   :  { %2753 = vmatmul.msk.bf16.vlgmr.msrb.gmra.mxu0 %vm316_vm12, %v1423_v9  ;;  %2758 = vmatmul.msk.bf16.vlgmr.msra.gmra.mxu1 %vm316_vm12, %v1567_v29  ;;  %v1544_v30 = vpop.permute.xlu1 %1543 }
0x137b   :  { %1560 = vmatpush.bf16.xpose.msra.mxu0 %v1551_v27 }
0x138a   :  { %2757 = vmatmul.msk.bf16.vlgmr.msra.gmra.mxu0 %vm316_vm12, %v1544_v30 }
0x13e7   :  { %v1469_v31 = vpop.f32.mrf.mxu1 }
0x13e8   :  { %v1474_v32 = vmul.f32 0.25, %v1469_v31 }
0x13ea   :  { %v1476_v34 = vadd.f32 %v3750_v33, %v1474_v32 }
0x13ec   :  { %v1480_v37 = vsel %vm364_vm13, %v1476_v34, -inf }
0x13ed   :  { %1481 = vmax.xlane.f32.xlu1 %v1480_v37 }
0x13ef   :  { %v1471_v23 = vpop.f32.mrf.mxu1 }
0x13f7   :  { %v1445_v38 = vpop.f32.mrf.mxu0  ;;  %v1585_v26 = vpop.f32.mrf.mxu1 }
0x13f8   :  { %v1473_v39 = vmul.f32 0.25, %v1445_v38  ;;  %v1590_v42 = vmul.f32 0.25, %v1585_v26 }
0x13fa   :  { %v1475_v41 = vadd.f32 %v3757_v40, %v1473_v39  ;;  %v1592_v47 = vadd.f32 %v3750_v33, %v1590_v42 }
0x13fc   :  { %v1477_v44 = vsel %vm364_vm13, %v1475_v41, -inf  ;;  %v1596_v48 = vsel %vm364_vm13, %v1592_v47, -inf }
0x13fd   :  { %1478 = vmax.xlane.f32.xlu2 %v1477_v44  ;;  %v2938_v44 = vld [vmem:[%s4006_s8 + $0x28] sm:$0xff] }
0x13fe   :  { %1701 = vmatpush.bf16.msrb.mxu0 %v2938_v44  ;;  %v3014_v44 = vld [vmem:[%s4009_s11 + $0x2] ss:$0 sm:$0xff] }
0x13ff   :  { %v1447_v45 = vpop.f32.mrf.mxu0  ;;  %v1587_v46 = vpop.f32.mrf.mxu1 }
0x1405   :  { %1597 = vmax.xlane.f32.xlu2 %v1596_v48 }
0x1407   :  { %v1562_v49 = vpop.f32.mrf.mxu0 }
0x1408   :  { %v1589_v50 = vmul.f32 0.25, %v1562_v49 }
0x140a   :  { %v1591_v51 = vadd.f32 %v3757_v40, %v1589_v50 }
0x140c   :  { %v1593_v52 = vsel %vm364_vm13, %v1591_v51, -inf }
0x140d   :  { %1594 = vmax.xlane.f32.xlu0 %v1593_v52  ;;  %v2937_v52 = vld [vmem:[%s4006_s8 + $0x20] sm:$0xff] }
0x140e   :  { %1702 = vmatpush.bf16.msrb.mxu0 %v2937_v52  ;;  %v2943_v52 = vld [vmem:[%s4012_s14 + $0x50] sm:$0xff] }
0x140f   :  { %v1564_v53 = vpop.f32.mrf.mxu0 }
0x141d   :  { %1501 = vrot.lane.b32.xlu2 %v3723_v16, %s3259_s24 }
0x1425   :  { %1638 = vrot.lane.b32.xlu2 %v3729_v10, %s3260_s25 }
0x1460   :  { %v1482_v54 = vpop.xlane.xlu1 %1481 }
0x1461   :  { %v1484_v55 = vsub.f32 %v1476_v34, %v1482_v54 }
0x1463   :  { %v1487_v56 = vmul.f32 1.442695, %v1484_v55 }
0x1465   :  { %3090 = vpow2.f32 %v1487_v56 }
0x146b   :  { %v3091_v57 = vpop.eup %3090 }
0x146c   :  { %v1492_v58 = vsel %vm364_vm13, %v3091_v57, 0.0 }
0x146d   :  { %1493 = vadd.xlane.f32.xlu0 %v1492_v58 }
0x1470   :  { %v1479_v36 = vpop.xlane.xlu2 %1478 }
0x1471   :  { %v1483_v59 = vsub.f32 %v1475_v41, %v1479_v36  ;;  %v3012_v36 = vld [vmem:[%s4007_s9 + $0x2] ss:$0 sm:$0xff] }
0x1473   :  { %v1485_v60 = vmul.f32 1.442695, %v1483_v59 }
0x1475   :  { %3092 = vpow2.f32 %v1485_v60 }
0x1478   :  { %v1598_v61 = vpop.xlane.xlu2 %1597 }
0x1479   :  { %v1600_v5 = vsub.f32 %v1592_v47, %v1598_v61 }
0x147b   :  { %v3093_v62 = vpop.eup %3092  ;;  %v1603_v8 = vmul.f32 1.442695, %v1600_v5 }
0x147c   :  { %v1489_v63 = vsel %vm364_vm13, %v3093_v62, 0.0 }
0x147d   :  { %1490 = vadd.xlane.f32.xlu1 %v1489_v63 }
0x1480   :  { %v1502_v0 = vpop.permute.xlu2 %1501  ;;  %v1595_v1 = vpop.xlane.xlu0 %1594 }
0x1481   :  { %v1507_v43 = vsel %vm394_vm14, %v1502_v0, 0  ;;  %v1599_v4 = vsub.f32 %v1591_v51, %v1595_v1 }
0x1482   :  { %1516 = vmatpush.bf16.msrb.mxu2 %v1507_v43 }
0x1483   :  { %v1601_v6 = vmul.f32 1.442695, %v1599_v4 }
0x1485   :  { %3094 = vpow2.f32 %v1601_v6 }
0x1486   :  { %3096 = vpow2.f32 %v1603_v8 }
0x1488   :  { %v1639_v25 = vpop.permute.xlu2 %1638 }
0x148b   :  { %v3095_v9 = vpop.eup %3094 }
0x148c   :  { %v1605_v7 = vsel %vm364_vm13, %v3095_v9, 0.0  ;;  %v3097_v18 = vpop.eup %3096 }
0x148d   :  { %1606 = vadd.xlane.f32.xlu0 %v1605_v7  ;;  %v1608_v12 = vsel %vm364_vm13, %v3097_v18, 0.0 }
0x1495   :  { %1609 = vadd.xlane.f32.xlu0 %v1608_v12 }
0x1496   :  { %1522 = vrot.lane.b32.xlu1 %v3729_v10, %s3259_s24  ;;  %v1644_v10 = vsel %vm394_vm14, %v1639_v25, 0 }
0x14a9   :  { %1617 = vrot.lane.b32.xlu0 %v3723_v16, %s3260_s25 }
0x14e0   :  { %v1494_v22 = vpop.xlane.xlu0 %1493 }
0x14f0   :  { %v1491_v19 = vpop.xlane.xlu1 %1490 }
0x14f1   :  { %3098 = vrcp.f32 %v1491_v19 }
0x14f2   :  { %3100 = vrcp.f32 %v1494_v22 }
0x14f7   :  { %v3099_v20 = vpop.eup %3098 }
0x14f8   :  { %v1497_v14 = vmul.f32 %v3099_v20, %v3093_v62  ;;  %v3101_v21 = vpop.eup %3100 }
0x14f9   :  { %v1498_v27 = vmul.f32 %v3101_v21, %v3091_v57 }
0x14fa   :  { %v1499_v24 = vpack.c.bf16 %v1497_v14, %v1497_v14 }
0x14fb   :  { %v1500_v16 = vpack.c.bf16 %v1498_v27, %v1498_v27 }
0x14fc   :  { %2755 = vmatmul.msk.bf16.vlgmr.msrb.gmra.mxu2 %vm364_vm13, %v1499_v24  ;;  %v2939_v24 = vld [vmem:[%s4010_s12 + $0x20] sm:$0xff] }
0x1500   :  { %v1607_v11 = vpop.xlane.xlu0 %1606 }
0x1508   :  { %v1523_v28 = vpop.permute.xlu1 %1522  ;;  %v1610_v30 = vpop.xlane.xlu0 %1609 }
0x1509   :  { %v1528_v29 = vsel %vm394_vm14, %v1523_v28, 0  ;;  %3102 = vrcp.f32 %v1610_v30 }
0x150a   :  { %1537 = vmatpush.bf16.msrb.mxu3 %v1528_v29  ;;  %3104 = vrcp.f32 %v1607_v11 }
0x150d   :  { %2756 = vmatmul.msk.bf16.vlgmr.msrb.gmra.mxu3 %vm364_vm13, %v1500_v16 }
0x150e   :  { %1653 = vmatpush.bf16.msra.mxu3 %v1644_v10 }
0x150f   :  { %v3103_v31 = vpop.eup %3102 }
0x1510   :  { %v3105_v32 = vpop.eup %3104  ;;  %v1614_v34 = vmul.f32 %v3103_v31, %v3097_v18 }
0x1511   :  { %v1613_v37 = vmul.f32 %v3105_v32, %v3095_v9 }
0x1512   :  { %v1616_v23 = vpack.c.bf16 %v1614_v34, %v1614_v34 }
0x1513   :  { %v1615_v39 = vpack.c.bf16 %v1613_v37, %v1613_v37 }
0x151b   :  { %v1618_v38 = vpop.permute.xlu0 %1617 }
0x151c   :  { %v1623_v26 = vsel %vm394_vm14, %v1618_v38, 0 }
0x151d   :  { %1632 = vmatpush.bf16.msra.mxu2 %v1623_v26  ;;  %2760 = vmatmul.msk.bf16.vlgmr.msra.gmra.mxu3 %vm364_vm13, %v1616_v23  ;;  %v3013_v26 = vld [vmem:[%s4008_s10 + $0x2] ss:$0 sm:$0xff] }
0x1520   :  { %2759 = vmatmul.msk.bf16.vlgmr.msra.gmra.mxu2 %vm364_vm13, %v1615_v39 }
0x157f   :  { %v1518_v41 = vpop.f32.mrf.mxu2 }
0x1587   :  { %v1520_v42 = vpop.f32.mrf.mxu2 }
0x1590   :  { %v1539_v45 = vpop.f32.mrf.mxu3 }
0x1598   :  { %v1541_v46 = vpop.f32.mrf.mxu3 }
0x15a0   :  { %v1655_v47 = vpop.f32.mrf.mxu3 }
0x15a3   :  { %v1634_v48 = vpop.f32.mrf.mxu2 }
0x15a4   :  { %v2981_v49 = vpack.i.bf16 %v1655_v47, %v1634_v48 }
0x15a6   :  { %2982 = vrot.lane.b32.xlu1 %v2981_v49, %s3261_s27 }
0x15a8   :  { %v1657_v50 = vpop.f32.mrf.mxu3 }
0x15ab   :  { %v1636_v51 = vpop.f32.mrf.mxu2 }
0x15ac   :  { %v2944_v51 = vld [vmem:[%s4012_s14 + $0x58] sm:$0xff] }
0x15ad   :  { %1873 = vmatpush.bf16.msrb.mxu2 %v2944_v51 }
0x15b1   :  { %1874 = vmatpush.bf16.msrb.mxu2 %v2943_v52 }
0x1618   :  { %v2983_v53 = vpop.permute.xlu1 %2982 }
0x1619   :  { %v2985_v54 = vunpack.i.h.bf16 %v2983_v53  ;;  %v2984_v55 = vunpack.i.l.bf16 %v2983_v53  ;;  %v2942_v53 = vld [vmem:[%s4012_s14 + $0x48] sm:$0xff] }
0x161a   :  { %1875 = vmatpush.bf16.msrb.mxu2 %v2942_v53 }
0x161b   :  { %v1668_v56 = vsel %vm316_vm12, %v1539_v45, %v2985_v54  ;;  %v1667_v57 = vsel %vm316_vm12, %v1518_v41, %v2984_v55  ;;  %v2941_v54 = vld [vmem:[%s4012_s14 + $0x40] sm:$0xff] }
0x161c   :  { %v1669_v58 = vpack.c.bf16 %v1668_v56, %v1667_v57  ;;  %v3015_v55 = vld [vmem:[%s4011_s13 + $0x2] ss:$0 sm:$0xff] }
0x161e   :  { %2774 = vmatmul.msk.bf16.vlgmr.msrb.gmra.mxu0 %vm201_vm4, %v1669_v58  ;;  %1876 = vmatpush.bf16.msrb.mxu2 %v2941_v54 }
0x169b   :  { %v1704_v59 = vpop.f32.mrf.mxu0 }
0x169c   :  { %v1705_v60 = vadd.f32 %v3012_v36, %v1704_v59 }
0x169e   :  { %v1709_v61 = vadd.f32 %v1705_v60, %v3713_v2 }
0x16a0   :  { %v1715_v62 = vsel %vm201_vm4, %v1709_v61, 0.0 }
0x16a1   :  { %1716 = vadd.xlane.f32.xlu2 %v1715_v62 }
0x16a3   :  { %v1706_v63 = vpop.f32.mrf.mxu0 }
0x16a4   :  { %v1707_v0 = vadd.f32 %v3012_v36, %v1706_v63 }
0x16a6   :  { %v1710_v1 = vadd.f32 %v1707_v0, %v3715_v3  ;;  %v2940_v3 = vld [vmem:[%s4010_s12 + $0x28] sm:$0xff] }
0x16a7   :  { %1801 = vmatpush.bf16.msrb.mxu1 %v2940_v3 }
0x16a8   :  { %v1718_v43 = vsel %vm201_vm4, %v1710_v1, 0.0 }
0x16a9   :  { %1719 = vadd.xlane.f32.xlu1 %v1718_v43 }
0x16ab   :  { %1802 = vmatpush.bf16.msrb.mxu1 %v2939_v24 }
0x1714   :  { %v1717_v4 = vpop.xlane.xlu2 %1716 }
0x1715   :  { %v1721_v5 = vmul.f32 %v1717_v4, %v3419_v35 }
0x1717   :  { %v1723_v6 = vsub.f32 %v1709_v61, %v1721_v5 }
0x1719   :  { %v1725_v8 = vmul.f32 %v1723_v6, %v1723_v6 }
0x171b   :  { %v1727_v9 = vsel %vm201_vm4, %v1725_v8, 0.0 }
0x171c   :  { %v1720_v7 = vpop.xlane.xlu1 %1719  ;;  %1728 = vadd.xlane.f32.xlu0 %v1727_v9 }
0x171d   :  { %v1722_v2 = vmul.f32 %v1720_v7, %v3419_v35 }
0x171f   :  { %v1724_v18 = vsub.f32 %v1710_v1, %v1722_v2 }
0x1721   :  { %v1726_v12 = vmul.f32 %v1724_v18, %v1724_v18 }
0x1723   :  { %v1730_v19 = vsel %vm201_vm4, %v1726_v12, 0.0 }
0x1724   :  { %1731 = vadd.xlane.f32.xlu2 %v1730_v19 }
0x178f   :  { %v1729_v20 = vpop.xlane.xlu0 %1728 }
0x1790   :  { %v1733_v14 = vmul.f32 %v1729_v20, %v3419_v35  ;;  %v3016_v20 = vld [vmem:[%s4013_s15 + $0x2] ss:$0 sm:$0xff] }
0x1792   :  { %v1735_v22 = vadd.f32 1e-12, %v1733_v14 }
0x1794   :  { %3106 = vrsqrt.f32 %v1735_v22  ;;  %vm1743_vm2 = vweird.f32 %v1735_v22 }
0x1797   :  { %v1732_v11 = vpop.xlane.xlu2 %1731 }
0x1798   :  { %v1734_v21 = vmul.f32 %v1732_v11, %v3419_v35 }
0x179a   :  { %v3107_v25 = vpop.eup %3106  ;;  %v1736_v27 = vadd.f32 1e-12, %v1734_v21 }
0x179b   :  { %v1738_v28 = vmul.f32 %v3107_v25, %v1735_v22  ;;  %vm1744_vm1 = vweird.f32 %v3107_v25 }
0x179c   :  { %3108 = vrsqrt.f32 %v1736_v27  ;;  %vm1745_vm3 = vmor %vm1743_vm2, %vm1744_vm1  ;;  %vm1753_vm7 = vweird.f32 %v1736_v27 }
0x179d   :  { %v1739_v29 = vmul.f32 %v3107_v25, %v1738_v28 }
0x179f   :  { %v1740_v10 = vmul.f32 0.5, %v1739_v29 }
0x17a1   :  { %v1741_v16 = vsub.f32 1.5, %v1740_v10 }
0x17a2   :  { %v3109_v30 = vpop.eup %3108 }
0x17a3   :  { %v1742_v31 = vmul.f32 %v3107_v25, %v1741_v16  ;;  %v1748_v32 = vmul.f32 %v3109_v30, %v1736_v27  ;;  %vm1754_vm5 = vweird.f32 %v3109_v30 }
0x17a4   :  { %vm1755_vm8 = vmor %vm1753_vm7, %vm1754_vm5 }
0x17a5   :  { %v1749_v34 = vmul.f32 %v3109_v30, %v1748_v32  ;;  %v1746_v37 = vsel %vm1745_vm3, %v3107_v25, %v1742_v31 }
0x17a6   :  { %v1757_v39 = vmul.f32 %v1746_v37, %v1723_v6 }
0x17a7   :  { %v1750_v23 = vmul.f32 0.5, %v1749_v34 }
0x17a8   :  { %v1762_v45 = vmul.f32 %v3013_v26, %v1757_v39 }
0x17a9   :  { %v1751_v38 = vsub.f32 1.5, %v1750_v23 }
0x17aa   :  { %v1767_v48 = vadd.f32 %v3014_v44, %v1762_v45 }
0x17ab   :  { %v1752_v41 = vmul.f32 %v3109_v30, %v1751_v38 }
0x17ad   :  { %v1756_v42 = vsel %vm1755_vm8, %v3109_v30, %v1752_v41 }
0x17ae   :  { %v1758_v46 = vmul.f32 %v1756_v42, %v1724_v18 }
0x17b0   :  { %v1763_v47 = vmul.f32 %v3013_v26, %v1758_v46  ;;  %v2946_v26 = vld [vmem:[%s4004_s6 + $0x38] sm:$0xff] }
0x17b1   :  { %1975 = vmatpush.bf16.msrb.mxu3 %v2946_v26 }
0x17b2   :  { %v1768_v49 = vadd.f32 %v3014_v44, %v1763_v47  ;;  %v2945_v44 = vld [vmem:[%s4004_s6 + $0x30] sm:$0xff] }
0x17b4   :  { %v1769_v50 = vpack.c.bf16 %v1768_v49, %v1767_v48 }
0x17b5   :  { %1976 = vmatpush.bf16.msrb.mxu3 %v2945_v44 }
0x17b6   :  { %2790 = vmatmul.msk.bf16.vlgmr.msrb.gmra.mxu1 %vm201_vm4, %v1769_v50 }
0x1833   :  { %v1804_v56 = vpop.f32.mrf.mxu1 }
0x1834   :  { %v1805_v57 = vadd.f32 %v3015_v55, %v1804_v56 }
0x1836   :  { %v1811_v58 = vmul.f32 0.044715, %v1805_v57  ;;  %v1809_v7 = vmul.f32 0.5, %v1805_v57 }
0x1838   :  { %v1813_v36 = vmul.f32 %v1811_v58, %v1805_v57 }
0x183a   :  { %v1815_v59 = vmul.f32 %v1813_v36, %v1805_v57 }
0x183b   :  { %v1806_v60 = vpop.f32.mrf.mxu1 }
0x183c   :  { %v1817_v61 = vadd.f32 %v1815_v59, %v1805_v57  ;;  %v1807_v62 = vadd.f32 %v3015_v55, %v1806_v60  ;;  %v3017_v59 = vld [vmem:[%s4014_s16 + $0x2] ss:$0 sm:$0xff] }
0x183e   :  { %v1812_v63 = vmul.f32 0.044715, %v1807_v62  ;;  %v1819_v0 = vmul.f32 0.7978846, %v1817_v61  ;;  %v1810_v2 = vmul.f32 0.5, %v1807_v62 }
0x1840   :  { %v1814_v1 = vmul.f32 %v1812_v63, %v1807_v62  ;;  %3110 = vtanh.f32 %v1819_v0  ;;  %v3018_v63 = vld [vmem:[%s4015_s17 + $0x2] ss:$0 sm:$0xff] }
0x1842   :  { %v1816_v43 = vmul.f32 %v1814_v1, %v1807_v62 }
0x1844   :  { %v1818_v4 = vadd.f32 %v1816_v43, %v1807_v62 }
0x1846   :  { %v1820_v5 = vmul.f32 0.7978846, %v1818_v4  ;;  %v3111_v6 = vpop.eup %3110 }
0x1847   :  { %v1823_v8 = vadd.f32 1.0, %v3111_v6 }
0x1848   :  { %3112 = vtanh.f32 %v1820_v5 }
0x1849   :  { %v1825_v12 = vmul.f32 %v1823_v8, %v1809_v7  ;;  %v3019_v8 = vld [vmem:[%s4005_s7 + $0x3] ss:$0 sm:$0xff] }
0x184e   :  { %v3113_v9 = vpop.eup %3112 }
0x184f   :  { %v1824_v18 = vadd.f32 1.0, %v3113_v9 }
0x1851   :  { %v1826_v19 = vmul.f32 %v1824_v18, %v1810_v2 }
0x1853   :  { %v1827_v3 = vpack.c.bf16 %v1826_v19, %v1825_v12 }
0x1855   :  { %2816 = vmatmul.msk.bf16.vlgmr.msrb.gmra.mxu2 %vm747_vm6, %v1827_v3 }
0x18d8   :  { %v1878_v14 = vpop.f32.mrf.mxu2 }
0x18d9   :  { %v1879_v22 = vadd.f32 %v3016_v20, %v1878_v14 }
0x18db   :  { %v1883_v24 = vadd.f32 %v1879_v22, %v1767_v48 }
0x18dd   :  { %v1889_v11 = vsel %vm201_vm4, %v1883_v24, 0.0 }
0x18de   :  { %1890 = vadd.xlane.f32.xlu1 %v1889_v11 }
0x18e0   :  { %v1880_v21 = vpop.f32.mrf.mxu2 }
0x18e1   :  { %v1881_v25 = vadd.f32 %v3016_v20, %v1880_v21 }
0x18e3   :  { %v1884_v27 = vadd.f32 %v1881_v25, %v1768_v49 }
0x18e5   :  { %v1892_v28 = vsel %vm201_vm4, %v1884_v27, 0.0 }
0x18e6   :  { %1893 = vadd.xlane.f32.xlu2 %v1892_v28 }
0x1951   :  { %v1891_v29 = vpop.xlane.xlu1 %1890 }
0x1952   :  { %v1895_v10 = vmul.f32 %v1891_v29, %v3419_v35 }
0x1954   :  { %v1897_v16 = vsub.f32 %v1883_v24, %v1895_v10 }
0x1956   :  { %v1899_v30 = vmul.f32 %v1897_v16, %v1897_v16 }
0x1958   :  { %v1901_v31 = vsel %vm201_vm4, %v1899_v30, 0.0 }
0x1959   :  { %v1894_v32 = vpop.xlane.xlu2 %1893  ;;  %1902 = vadd.xlane.f32.xlu0 %v1901_v31 }
0x195a   :  { %v1896_v34 = vmul.f32 %v1894_v32, %v3419_v35 }
0x195c   :  { %v1898_v37 = vsub.f32 %v1884_v27, %v1896_v34 }
0x195e   :  { %v1900_v23 = vmul.f32 %v1898_v37, %v1898_v37 }
0x1960   :  { %v1904_v38 = vsel %vm201_vm4, %v1900_v23, 0.0 }
0x1961   :  { %1905 = vadd.xlane.f32.xlu1 %v1904_v38 }
0x19cc   :  { %v1903_v39 = vpop.xlane.xlu0 %1902 }
0x19cd   :  { %v1907_v41 = vmul.f32 %v1903_v39, %v3419_v35 }
0x19cf   :  { %v1909_v42 = vadd.f32 1e-12, %v1907_v41 }
0x19d1   :  { %3114 = vrsqrt.f32 %v1909_v42  ;;  %vm1917_vm10 = vweird.f32 %v1909_v42 }
0x19d4   :  { %v1906_v45 = vpop.xlane.xlu1 %1905 }
0x19d5   :  { %v1908_v46 = vmul.f32 %v1906_v45, %v3419_v35 }
0x19d7   :  { %v3115_v47 = vpop.eup %3114  ;;  %v1910_v48 = vadd.f32 1e-12, %v1908_v46 }
0x19d8   :  { %v1912_v49 = vmul.f32 %v3115_v47, %v1909_v42  ;;  %vm1918_vm9 = vweird.f32 %v3115_v47 }
0x19d9   :  { %3116 = vrsqrt.f32 %v1910_v48  ;;  %vm1919_vm11 = vmor %vm1917_vm10, %vm1918_vm9  ;;  %vm1927_vm0 = vweird.f32 %v1910_v48 }
0x19da   :  { %v1913_v50 = vmul.f32 %v3115_v47, %v1912_v49 }
0x19dc   :  { %v1914_v51 = vmul.f32 0.5, %v1913_v50 }
0x19de   :  { %v1915_v52 = vsub.f32 1.5, %v1914_v51 }
0x19df   :  { %v3117_v53 = vpop.eup %3116 }
0x19e0   :  { %v1916_v54 = vmul.f32 %v3115_v47, %v1915_v52  ;;  %v1922_v55 = vmul.f32 %v3117_v53, %v1910_v48  ;;  %vm1928_vm15 = vweird.f32 %v3117_v53 }
0x19e1   :  { %vm1929_vm1 = vmor %vm1927_vm0, %vm1928_vm15 }
0x19e2   :  { %v1923_v56 = vmul.f32 %v3117_v53, %v1922_v55  ;;  %v1920_v57 = vsel %vm1919_vm11, %v3115_v47, %v1916_v54 }
0x19e3   :  { %v1931_v60 = vmul.f32 %v1920_v57, %v1897_v16 }
0x19e4   :  { %v1924_v58 = vmul.f32 0.5, %v1923_v56 }
0x19e5   :  { %v1936_v0 = vmul.f32 %v3017_v59, %v1931_v60 }
0x19e6   :  { %v1925_v36 = vsub.f32 1.5, %v1924_v58 }
0x19e7   :  { %v3860_v4 = vadd.f32 %v3018_v63, %v1936_v0 }
0x19e8   :  { %v1926_v61 = vmul.f32 %v3117_v53, %v1925_v36 }
0x19ea   :  { %v1930_v62 = vsel %vm1929_vm1, %v3117_v53, %v1926_v61 }
0x19eb   :  { %v1932_v1 = vmul.f32 %v1930_v62, %v1898_v37 }
0x19ed   :  { %v1937_v43 = vmul.f32 %v3017_v59, %v1932_v1 }
0x19ef   :  { %v3862_v5 = vadd.f32 %v3018_v63, %v1937_v43 }
0x19f1   :  { %v1943_v6 = vpack.c.bf16 %v3862_v5, %v3860_v4 }
0x19f3   :  { %2832 = vmatmul.msk.bf16.vlgmr.msrb.gmra.mxu3 %vm201_vm4, %v1943_v6 }
0x1a76   :  { %v1978_v9 = vpop.f32.mrf.mxu3 }
0x1a77   :  { %v1979_v7 = vadd.f32 %v3019_v8, %v1978_v9 }
0x1a79   :  { %v1983_v2 = vpack.c.bf16 %v1979_v7, %v1979_v7 }
0x1a7b   :  { %v1986_v18 = vunpack.c.l.b16 %v1983_v2 }
0x1a7d   :  { %v1987_v12 = vpack.c.b16 %v1986_v18, %v1986_v18 }
0x1a7e   :  { %v1980_v19 = vpop.f32.mrf.mxu3 }
0x1a7f   :  { %v1981_v3 = vadd.f32 %v3019_v8, %v1980_v19  ;;  %2105 = vrot.lane.b32.xlu1 %v1987_v12, %s3257_s5  ;;  %1988 = vrot.lane.b32.xlu2 %v1987_v12, %s3256_s0 }
0x1a81   :  { %v1984_v20 = vpack.c.bf16 %v1981_v3, %v1981_v3 }
0x1a83   :  { %v2010_v14 = vunpack.c.l.b16 %v1984_v20 }
0x1a85   :  { %v3872_v22 = vpack.c.b16 %v2010_v14, %v2010_v14 }
0x1a87   :  { %2012 = vrot.lane.b32.xlu0 %v3872_v22, %s3256_s0  ;;  %2126 = vrot.lane.b32.xlu1 %v3872_v22, %s3258_s21 }
0x1a88   :  { %2103 = vrot.lane.b32.xlu2 %v1987_v12, %s3258_s21 }
0x1a8f   :  { %2128 = vrot.lane.b32.xlu0 %v3872_v22, %s3257_s5 }
0x1ad9   :  { %v1989_v24 = vpop.permute.xlu2 %1988 }
0x1ada   :  { %v1994_v11 = vsel %vm316_vm12, %v1989_v24, 0 }
0x1adb   :  { %2003 = vmatpush.bf16.xpose.msra.mxu0 %v1994_v11 }
0x1ae2   :  { %2833 = vmatmul.msk.bf16.vlgmr.msra.gmra.mxu0 %vm316_vm12, %v1983_v2  ;;  %v2104_v27 = vpop.permute.xlu2 %2103 }
0x1af1   :  { %v2106_v21 = vpop.permute.xlu1 %2105 }
0x1af2   :  { %v2111_v25 = vsel %vm316_vm12, %v2106_v21, 0 }
0x1af3   :  { %2120 = vmatpush.bf16.xpose.msrb.mxu0 %v2111_v25 }
0x1af9   :  { %v2013_v28 = vpop.permute.xlu0 %2012  ;;  %v2127_v30 = vpop.permute.xlu1 %2126 }
0x1afa   :  { %v2018_v29 = vsel %vm316_vm12, %v2013_v28, 0  ;;  %2837 = vmatmul.msk.bf16.vlgmr.msrb.gmra.mxu0 %vm316_vm12, %v2104_v27 }
0x1afb   :  { %2027 = vmatpush.bf16.xpose.msra.mxu1 %v2018_v29 }
0x1b01   :  { %v2129_v10 = vpop.permute.xlu0 %2128 }
0x1b02   :  { %v2134_v16 = vsel %vm316_vm12, %v2129_v10, 0  ;;  %2834 = vmatmul.msk.bf16.vlgmr.msra.gmra.mxu1 %vm316_vm12, %v1984_v20 }
0x1b03   :  { %2143 = vmatpush.bf16.xpose.msrb.mxu1 %v2134_v16 }
0x1b12   :  { %2838 = vmatmul.msk.bf16.vlgmr.msrb.gmra.mxu1 %vm316_vm12, %v2127_v30 }
0x1b5f   :  { %v2005_v31 = vpop.f32.mrf.mxu0 }
0x1b60   :  { %v2033_v32 = vmul.f32 0.25, %v2005_v31 }
0x1b62   :  { %v2035_v34 = vadd.f32 %v3757_v40, %v2033_v32 }
0x1b64   :  { %v2037_v37 = vsel %vm364_vm13, %v2035_v34, -inf }
0x1b65   :  { %2038 = vmax.xlane.f32.xlu0 %v2037_v37 }
0x1b67   :  { %v2007_v23 = vpop.f32.mrf.mxu0 }
0x1b77   :  { %v2122_v38 = vpop.f32.mrf.mxu0 }
0x1b78   :  { %v2149_v26 = vmul.f32 0.25, %v2122_v38 }
0x1b7a   :  { %v2151_v39 = vadd.f32 %v3757_v40, %v2149_v26 }
0x1b7c   :  { %v2153_v41 = vsel %vm364_vm13, %v2151_v39, -inf }
0x1b7d   :  { %2154 = vmax.xlane.f32.xlu1 %v2153_v41 }
0x1b7f   :  { %v2029_v42 = vpop.f32.mrf.mxu1  ;;  %v2124_v44 = vpop.f32.mrf.mxu0 }
0x1b80   :  { %v2034_v45 = vmul.f32 0.25, %v2029_v42 }
0x1b82   :  { %v2036_v46 = vadd.f32 %v3750_v33, %v2034_v45  ;;  %v2948_v45 = vld [vmem:[%s4006_s8 + $0x38] sm:$0xff] }
0x1b83   :  { %2261 = vmatpush.bf16.msra.mxu0 %v2948_v45 }
0x1b84   :  { %v2040_v47 = vsel %vm364_vm13, %v2036_v46, -inf }
0x1b85   :  { %2041 = vmax.xlane.f32.xlu2 %v2040_v47 }
0x1b87   :  { %v2031_v48 = vpop.f32.mrf.mxu1 }
0x1b8f   :  { %v2145_v49 = vpop.f32.mrf.mxu1 }
0x1b90   :  { %v2150_v50 = vmul.f32 0.25, %v2145_v49 }
0x1b92   :  { %v2152_v51 = vadd.f32 %v3750_v33, %v2150_v50  ;;  %v2947_v50 = vld [vmem:[%s4006_s8 + $0x30] sm:$0xff] }
0x1b93   :  { %2262 = vmatpush.bf16.msra.mxu0 %v2947_v50  ;;  %v3023_v50 = vld [vmem:[%s4011_s13 + $0x3] ss:$0 sm:$0xff] }
0x1b94   :  { %v2156_v52 = vsel %vm364_vm13, %v2152_v51, -inf }
0x1b95   :  { %2157 = vmax.xlane.f32.xlu0 %v2156_v52 }
0x1b97   :  { %v2147_v40 = vpop.f32.mrf.mxu1 }
0x1ba9   :  { %2061 = vrot.lane.b32.xlu0 %v1987_v12, %s3259_s24 }
0x1bb1   :  { %2177 = vrot.lane.b32.xlu0 %v1987_v12, %s3260_s25 }
0x1bd8   :  { %v2039_v53 = vpop.xlane.xlu0 %2038 }
0x1bd9   :  { %v2043_v54 = vsub.f32 %v2035_v34, %v2039_v53 }
0x1bdb   :  { %v2045_v55 = vmul.f32 1.442695, %v2043_v54 }
0x1bdd   :  { %3118 = vpow2.f32 %v2045_v55 }
0x1be3   :  { %v3119_v56 = vpop.eup %3118 }
0x1be4   :  { %v2049_v57 = vsel %vm364_vm13, %v3119_v56, 0.0 }
0x1be5   :  { %2050 = vadd.xlane.f32.xlu2 %v2049_v57 }
0x1bf0   :  { %v2155_v58 = vpop.xlane.xlu1 %2154 }
0x1bf1   :  { %v2159_v33 = vsub.f32 %v2151_v39, %v2155_v58 }
0x1bf3   :  { %v2161_v61 = vmul.f32 1.442695, %v2159_v33 }
0x1bf8   :  { %v2042_v36 = vpop.xlane.xlu2 %2041 }
0x1bf9   :  { %v2044_v59 = vsub.f32 %v2036_v46, %v2042_v36 }
0x1bfb   :  { %v2047_v60 = vmul.f32 1.442695, %v2044_v59 }
0x1bfd   :  { %3120 = vpow2.f32 %v2047_v60  ;;  %2082 = vrot.lane.b32.xlu2 %v3872_v22, %s3259_s24 }
0x1bfe   :  { %3122 = vpow2.f32 %v2161_v61 }
0x1c03   :  { %v3121_v62 = vpop.eup %3120 }
0x1c04   :  { %v2052_v63 = vsel %vm364_vm13, %v3121_v62, 0.0  ;;  %v3123_v1 = vpop.eup %3122 }
0x1c05   :  { %2053 = vadd.xlane.f32.xlu1 %v2052_v63  ;;  %v2165_v8 = vsel %vm364_vm13, %v3123_v1, 0.0 }
0x1c08   :  { %v2158_v0 = vpop.xlane.xlu0 %2157 }
0x1c09   :  { %v2160_v43 = vsub.f32 %v2152_v51, %v2158_v0 }
0x1c0b   :  { %v2163_v6 = vmul.f32 1.442695, %v2160_v43 }
0x1c0d   :  { %3124 = vpow2.f32 %v2163_v6  ;;  %2166 = vadd.xlane.f32.xlu1 %v2165_v8 }
0x1c13   :  { %v3125_v9 = vpop.eup %3124 }
0x1c14   :  { %v2168_v7 = vsel %vm364_vm13, %v3125_v9, 0.0 }
0x1c15   :  { %2169 = vadd.xlane.f32.xlu1 %v2168_v7 }
0x1c1b   :  { %v2062_v2 = vpop.permute.xlu0 %2061 }
0x1c1c   :  { %v2067_v18 = vsel %vm394_vm14, %v2062_v2, 0 }
0x1c1d   :  { %2076 = vmatpush.bf16.msra.mxu2 %v2067_v18 }
0x1c23   :  { %v2178_v12 = vpop.permute.xlu0 %2177 }
0x1c24   :  { %v2183_v19 = vsel %vm394_vm14, %v2178_v12, 0 }
0x1c25   :  { %2192 = vmatpush.bf16.msrb.mxu2 %v2183_v19 }
0x1c2e   :  { %2198 = vrot.lane.b32.xlu1 %v3872_v22, %s3260_s25 }
0x1c58   :  { %v2051_v3 = vpop.xlane.xlu2 %2050 }
0x1c59   :  { %3126 = vrcp.f32 %v2051_v3  ;;  %v2949_v3 = vld [vmem:[%s4010_s12 + $0x30] sm:$0xff] }
0x1c5f   :  { %v3127_v20 = vpop.eup %3126 }
0x1c60   :  { %v2057_v14 = vmul.f32 %v3127_v20, %v3119_v56  ;;  %v2083_v24 = vpop.permute.xlu2 %2082  ;;  %v3020_v56 = vld [vmem:[%s4007_s9 + $0x3] ss:$0 sm:$0xff] }
0x1c61   :  { %v2088_v11 = vsel %vm394_vm14, %v2083_v24, 0 }
0x1c62   :  { %v2059_v21 = vpack.c.bf16 %v2057_v14, %v2057_v14  ;;  %2097 = vmatpush.bf16.msra.mxu3 %v2088_v11 }
0x1c64   :  { %2835 = vmatmul.msk.bf16.vlgmr.msra.gmra.mxu2 %vm364_vm13, %v2059_v21 }
0x1c78   :  { %v2054_v25 = vpop.xlane.xlu1 %2053 }
0x1c79   :  { %3128 = vrcp.f32 %v2054_v25 }
0x1c7f   :  { %v3129_v27 = vpop.eup %3128 }
0x1c80   :  { %v2058_v28 = vmul.f32 %v3129_v27, %v3121_v62  ;;  %v2167_v29 = vpop.xlane.xlu1 %2166 }
0x1c81   :  { %3130 = vrcp.f32 %v2167_v29 }
0x1c82   :  { %v2060_v10 = vpack.c.bf16 %v2058_v28, %v2058_v28 }
0x1c84   :  { %2836 = vmatmul.msk.bf16.vlgmr.msra.gmra.mxu3 %vm364_vm13, %v2060_v10 }
0x1c87   :  { %v3131_v22 = vpop.eup %3130 }
0x1c88   :  { %v2173_v16 = vmul.f32 %v3131_v22, %v3123_v1  ;;  %v2170_v31 = vpop.xlane.xlu1 %2169 }
0x1c89   :  { %3132 = vrcp.f32 %v2170_v31 }
0x1c8a   :  { %v2175_v30 = vpack.c.bf16 %v2173_v16, %v2173_v16 }
0x1c8c   :  { %2839 = vmatmul.msk.bf16.vlgmr.msrb.gmra.mxu2 %vm364_vm13, %v2175_v30 }
0x1c8f   :  { %v3133_v32 = vpop.eup %3132 }
0x1c90   :  { %v2174_v34 = vmul.f32 %v3133_v32, %v3125_v9 }
0x1c92   :  { %v2176_v38 = vpack.c.bf16 %v2174_v34, %v2174_v34  ;;  %v3021_v34 = vld [vmem:[%s4008_s10 + $0x3] ss:$0 sm:$0xff] }
0x1ca0   :  { %v2199_v37 = vpop.permute.xlu1 %2198 }
0x1ca1   :  { %v2204_v23 = vsel %vm394_vm14, %v2199_v37, 0 }
0x1ca2   :  { %2213 = vmatpush.bf16.msrb.mxu3 %v2204_v23 }
0x1ca5   :  { %2840 = vmatmul.msk.bf16.vlgmr.msrb.gmra.mxu3 %vm364_vm13, %v2176_v38 }
0x1ce7   :  { %v2078_v26 = vpop.f32.mrf.mxu2 }
0x1cef   :  { %v2080_v39 = vpop.f32.mrf.mxu2 }
0x1d07   :  { %v2099_v41 = vpop.f32.mrf.mxu3 }
0x1d0f   :  { %v2101_v42 = vpop.f32.mrf.mxu3  ;;  %v2194_v44 = vpop.f32.mrf.mxu2 }
0x1d17   :  { %v2196_v46 = vpop.f32.mrf.mxu2 }
0x1d28   :  { %v2215_v47 = vpop.f32.mrf.mxu3 }
0x1d29   :  { %v2986_v48 = vpack.i.bf16 %v2215_v47, %v2194_v44  ;;  %v2954_v47 = vld [vmem:[%s4012_s14 + $0x78] sm:$0xff] }
0x1d2a   :  { %2433 = vmatpush.bf16.msra.mxu2 %v2954_v47 }
0x1d2b   :  { %2987 = vrot.lane.b32.xlu2 %v2986_v48, %s3261_s27  ;;  %v2953_v48 = vld [vmem:[%s4012_s14 + $0x70] sm:$0xff] }
0x1d2e   :  { %2434 = vmatpush.bf16.msra.mxu2 %v2953_v48 }
0x1d30   :  { %v2217_v49 = vpop.f32.mrf.mxu3 }
0x1d31   :  { %v2952_v49 = vld [vmem:[%s4012_s14 + $0x68] sm:$0xff] }
0x1d32   :  { %2435 = vmatpush.bf16.msra.mxu2 %v2952_v49 }
0x1d85   :  { %v2988_v51 = vpop.permute.xlu2 %2987 }
0x1d86   :  { %v2990_v52 = vunpack.i.h.bf16 %v2988_v51  ;;  %v2989_v40 = vunpack.i.l.bf16 %v2988_v51  ;;  %v2951_v51 = vld [vmem:[%s4012_s14 + $0x60] sm:$0xff] }
0x1d87   :  { %2436 = vmatpush.bf16.msra.mxu2 %v2951_v51 }
0x1d88   :  { %v2228_v53 = vsel %vm316_vm12, %v2099_v41, %v2990_v52  ;;  %v2227_v54 = vsel %vm316_vm12, %v2078_v26, %v2989_v40  ;;  %v3022_v26 = vld [vmem:[%s4009_s11 + $0x3] ss:$0 sm:$0xff] }
0x1d89   :  { %v2229_v55 = vpack.c.bf16 %v2228_v53, %v2227_v54 }
0x1d8b   :  { %2854 = vmatmul.msk.bf16.vlgmr.msra.gmra.mxu0 %vm201_vm4, %v2229_v55 }
0x1e08   :  { %v2264_v57 = vpop.f32.mrf.mxu0 }
0x1e09   :  { %v2265_v58 = vadd.f32 %v3020_v56, %v2264_v57 }
0x1e0b   :  { %v2269_v36 = vadd.f32 %v2265_v58, %v3860_v4 }
0x1e0d   :  { %v2275_v59 = vsel %vm201_vm4, %v2269_v36, 0.0 }
0x1e0e   :  { %2276 = vadd.xlane.f32.xlu0 %v2275_v59 }
0x1e10   :  { %v2266_v33 = vpop.f32.mrf.mxu0 }
0x1e11   :  { %v2267_v60 = vadd.f32 %v3020_v56, %v2266_v33 }
0x1e13   :  { %v2270_v61 = vadd.f32 %v2267_v60, %v3862_v5  ;;  %v2950_v5 = vld [vmem:[%s4010_s12 + $0x38] sm:$0xff] }
0x1e14   :  { %2361 = vmatpush.bf16.msra.mxu1 %v2950_v5 }
0x1e15   :  { %v2278_v62 = vsel %vm201_vm4, %v2270_v61, 0.0 }
0x1e16   :  { %2279 = vadd.xlane.f32.xlu2 %v2278_v62 }
0x1e18   :  { %2362 = vmatpush.bf16.msra.mxu1 %v2949_v3 }
0x1e81   :  { %v2277_v63 = vpop.xlane.xlu0 %2276 }
0x1e82   :  { %v2281_v0 = vmul.f32 %v2277_v63, %v3419_v35 }
0x1e84   :  { %v2283_v1 = vsub.f32 %v2269_v36, %v2281_v0 }
0x1e86   :  { %v2285_v43 = vmul.f32 %v2283_v1, %v2283_v1 }
0x1e88   :  { %v2287_v6 = vsel %vm201_vm4, %v2285_v43, 0.0 }
0x1e89   :  { %v2280_v8 = vpop.xlane.xlu2 %2279  ;;  %2288 = vadd.xlane.f32.xlu1 %v2287_v6 }
0x1e8a   :  { %v2282_v4 = vmul.f32 %v2280_v8, %v3419_v35 }
0x1e8c   :  { %v2284_v9 = vsub.f32 %v2270_v61, %v2282_v4 }
0x1e8e   :  { %v2286_v7 = vmul.f32 %v2284_v9, %v2284_v9 }
0x1e90   :  { %v2290_v2 = vsel %vm201_vm4, %v2286_v7, 0.0 }
0x1e91   :  { %2291 = vadd.xlane.f32.xlu0 %v2290_v2  ;;  %v3024_v2 = vld [vmem:[%s4013_s15 + $0x3] ss:$0 sm:$0xff] }
0x1efc   :  { %v2289_v18 = vpop.xlane.xlu1 %2288 }
0x1efd   :  { %v2293_v12 = vmul.f32 %v2289_v18, %v3419_v35 }
0x1eff   :  { %v2295_v19 = vadd.f32 1e-12, %v2293_v12 }
0x1f01   :  { %3134 = vrsqrt.f32 %v2295_v19  ;;  %vm2303_vm14 = vweird.f32 %v2295_v19 }
0x1f04   :  { %v2292_v20 = vpop.xlane.xlu0 %2291 }
0x1f05   :  { %v2294_v14 = vmul.f32 %v2292_v20, %v3419_v35 }
0x1f07   :  { %v3135_v24 = vpop.eup %3134  ;;  %v2296_v11 = vadd.f32 1e-12, %v2294_v14 }
0x1f08   :  { %v2298_v21 = vmul.f32 %v3135_v24, %v2295_v19  ;;  %vm2304_vm13 = vweird.f32 %v3135_v24 }
0x1f09   :  { %3136 = vrsqrt.f32 %v2296_v11  ;;  %vm2305_vm2 = vmor %vm2303_vm14, %vm2304_vm13  ;;  %vm2313_vm5 = vweird.f32 %v2296_v11 }
0x1f0a   :  { %v2299_v25 = vmul.f32 %v3135_v24, %v2298_v21 }
0x1f0c   :  { %v2300_v27 = vmul.f32 0.5, %v2299_v25 }
0x1f0e   :  { %v2301_v28 = vsub.f32 1.5, %v2300_v27 }
0x1f0f   :  { %v3137_v29 = vpop.eup %3136 }
0x1f10   :  { %v2302_v10 = vmul.f32 %v3135_v24, %v2301_v28  ;;  %v2308_v22 = vmul.f32 %v3137_v29, %v2296_v11  ;;  %vm2314_vm3 = vweird.f32 %v3137_v29 }
0x1f11   :  { %vm2315_vm7 = vmor %vm2313_vm5, %vm2314_vm3 }
0x1f12   :  { %v2309_v16 = vmul.f32 %v3137_v29, %v2308_v22  ;;  %v2306_v30 = vsel %vm2305_vm2, %v3135_v24, %v2302_v10 }
0x1f13   :  { %v2317_v37 = vmul.f32 %v2306_v30, %v2283_v1 }
0x1f14   :  { %v2310_v31 = vmul.f32 0.5, %v2309_v16 }
0x1f15   :  { %v2322_v39 = vmul.f32 %v3021_v34, %v2317_v37 }
0x1f16   :  { %v2311_v32 = vsub.f32 1.5, %v2310_v31 }
0x1f17   :  { %v2327_v44 = vadd.f32 %v3022_v26, %v2322_v39 }
0x1f18   :  { %v2312_v23 = vmul.f32 %v3137_v29, %v2311_v32 }
0x1f1a   :  { %v2316_v38 = vsel %vm2315_vm7, %v3137_v29, %v2312_v23 }
0x1f1b   :  { %v2318_v41 = vmul.f32 %v2316_v38, %v2284_v9  ;;  %v2956_v38 = vld [vmem:[%s4016_s18 + $0x8] sm:$0xff] }
0x1f1c   :  { %2556 = vmatpush.bf16.msrb.mxu0 %v2956_v38 }
0x1f1d   :  { %v2323_v42 = vmul.f32 %v3021_v34, %v2318_v41 }
0x1f1f   :  { %v2328_v45 = vadd.f32 %v3022_v26, %v2323_v42 }
0x1f21   :  { %v2329_v46 = vpack.c.bf16 %v2328_v45, %v2327_v44 }
0x1f23   :  { %2870 = vmatmul.msk.bf16.vlgmr.msra.gmra.mxu1 %vm201_vm4, %v2329_v46 }
0x1fa0   :  { %v2364_v52 = vpop.f32.mrf.mxu1 }
0x1fa1   :  { %v2365_v40 = vadd.f32 %v3023_v50, %v2364_v52 }
0x1fa3   :  { %v2371_v53 = vmul.f32 0.044715, %v2365_v40  ;;  %v2369_v43 = vmul.f32 0.5, %v2365_v40 }
0x1fa5   :  { %v2373_v54 = vmul.f32 %v2371_v53, %v2365_v40  ;;  %v3025_v53 = vld [vmem:[%s4014_s16 + $0x3] ss:$0 sm:$0xff] }
0x1fa7   :  { %v2375_v55 = vmul.f32 %v2373_v54, %v2365_v40 }
0x1fa8   :  { %v2366_v56 = vpop.f32.mrf.mxu1 }
0x1fa9   :  { %v2377_v57 = vadd.f32 %v2375_v55, %v2365_v40  ;;  %v2367_v58 = vadd.f32 %v3023_v50, %v2366_v56 }
0x1fab   :  { %v2372_v36 = vmul.f32 0.044715, %v2367_v58  ;;  %v2379_v59 = vmul.f32 0.7978846, %v2377_v57  ;;  %v2370_v6 = vmul.f32 0.5, %v2367_v58 }
0x1fad   :  { %v2374_v33 = vmul.f32 %v2372_v36, %v2367_v58  ;;  %3138 = vtanh.f32 %v2379_v59 }
0x1faf   :  { %v2376_v60 = vmul.f32 %v2374_v33, %v2367_v58 }
0x1fb1   :  { %v2378_v61 = vadd.f32 %v2376_v60, %v2367_v58 }
0x1fb3   :  { %v2380_v62 = vmul.f32 0.7978846, %v2378_v61  ;;  %v3139_v63 = vpop.eup %3138 }
0x1fb4   :  { %v2383_v0 = vadd.f32 1.0, %v3139_v63  ;;  %v2955_v63 = vld [vmem:[%s4016_s18] sm:$0xff] }
0x1fb5   :  { %3140 = vtanh.f32 %v2380_v62  ;;  %2557 = vmatpush.bf16.msrb.mxu0 %v2955_v63 }
0x1fb6   :  { %v2385_v4 = vmul.f32 %v2383_v0, %v2369_v43  ;;  %v3027_v43 = vld [vmem:[#allocation7] ss:$0 sm:$0xff] }
0x1fbb   :  { %v3141_v1 = vpop.eup %3140 }
0x1fbc   :  { %v2384_v8 = vadd.f32 1.0, %v3141_v1 }
0x1fbe   :  { %v2386_v9 = vmul.f32 %v2384_v8, %v2370_v6 }
0x1fc0   :  { %v2387_v7 = vpack.c.bf16 %v2386_v9, %v2385_v4 }
0x1fc2   :  { %2896 = vmatmul.msk.bf16.vlgmr.msra.gmra.mxu2 %vm747_vm6, %v2387_v7 }
0x2045   :  { %v2438_v5 = vpop.f32.mrf.mxu2 }
0x2046   :  { %v2439_v18 = vadd.f32 %v3024_v2, %v2438_v5 }
0x2048   :  { %v2443_v12 = vadd.f32 %v2439_v18, %v2327_v44 }
0x204a   :  { %v2449_v19 = vsel %vm201_vm4, %v2443_v12, 0.0 }
0x204b   :  { %2450 = vadd.xlane.f32.xlu2 %v2449_v19 }
0x204d   :  { %v2440_v3 = vpop.f32.mrf.mxu2 }
0x204e   :  { %v2441_v20 = vadd.f32 %v3024_v2, %v2440_v3 }
0x2050   :  { %v2444_v14 = vadd.f32 %v2441_v20, %v2328_v45 }
0x2052   :  { %v2452_v24 = vsel %vm201_vm4, %v2444_v14, 0.0 }
0x2053   :  { %2453 = vadd.xlane.f32.xlu0 %v2452_v24 }
0x20be   :  { %v2451_v11 = vpop.xlane.xlu2 %2450 }
0x20bf   :  { %v2455_v21 = vmul.f32 %v2451_v11, %v3419_v35 }
0x20c1   :  { %v2457_v25 = vsub.f32 %v2443_v12, %v2455_v21 }
0x20c3   :  { %v2459_v27 = vmul.f32 %v2457_v25, %v2457_v25 }
0x20c5   :  { %v2461_v28 = vsel %vm201_vm4, %v2459_v27, 0.0 }
0x20c6   :  { %v2454_v29 = vpop.xlane.xlu0 %2453  ;;  %2462 = vadd.xlane.f32.xlu2 %v2461_v28 }
0x20c7   :  { %v2456_v10 = vmul.f32 %v2454_v29, %v3419_v35 }
0x20c9   :  { %v2458_v22 = vsub.f32 %v2444_v14, %v2456_v10 }
0x20cb   :  { %v2460_v16 = vmul.f32 %v2458_v22, %v2458_v22 }
0x20cd   :  { %v2464_v30 = vsel %vm201_vm4, %v2460_v16, 0.0 }
0x20ce   :  { %2465 = vadd.xlane.f32.xlu0 %v2464_v30 }
0x2139   :  { %v2463_v31 = vpop.xlane.xlu2 %2462 }
0x213a   :  { %v2467_v32 = vmul.f32 %v2463_v31, %v3419_v35 }
0x213c   :  { %v2469_v34 = vadd.f32 1e-12, %v2467_v32 }
0x213e   :  { %3142 = vrsqrt.f32 %v2469_v34  ;;  %vm2477_vm8 = vweird.f32 %v2469_v34 }
0x2141   :  { %v2466_v37 = vpop.xlane.xlu0 %2465 }
0x2142   :  { %v2468_v23 = vmul.f32 %v2466_v37, %v3419_v35  ;;  %v2504_v35 = vshrl.u32 %v110_v13, 7  ;;  %v3026_v13 = vld [vmem:[%s4015_s17 + $0x3] ss:$0 sm:$0xff]  ;;  %s3262_s17 = smov [#allocation8]  }
0x2143   :  { %s2569_s8 = sshll.u32 %s3262_s17, 4  ;;  %s2570_s8 = int_to_ptr.vmem [resolvable:$true] %s2569_s8 }
0x2144   :  { %v3143_v26 = vpop.eup %3142  ;;  %v2470_v39 = vadd.f32 1e-12, %v2468_v23  ;;  %v2505_v54 = vmul.u32 8, %v2504_v35 }
0x2145   :  { %v2472_v41 = vmul.f32 %v3143_v26, %v2469_v34  ;;  %vm2478_vm6 = vweird.f32 %v3143_v26 }
0x2146   :  { %3144 = vrsqrt.f32 %v2470_v39  ;;  %vm2479_vm9 = vmor %vm2477_vm8, %vm2478_vm6  ;;  %vm2487_vm11 = vweird.f32 %v2470_v39  ;;  %vm2506_vm0 = vcmp.eq.s32.totalorder %v3405_v15, %v2505_v54 }
0x2147   :  { %v2473_v42 = vmul.f32 %v3143_v26, %v2472_v41  ;;  %v2507_v59 = vsel %vm2506_vm0, 1.0, %v3254_v17 }
0x2148   :  { %v2508_v62 = vpack.c.bf16 %v2507_v59, %v2507_v59 }
0x2149   :  { %v2474_v44 = vmul.f32 0.5, %v2473_v42 }
0x214b   :  { %v2475_v45 = vsub.f32 1.5, %v2474_v44 }
0x214c   :  { %v3145_v46 = vpop.eup %3144 }
0x214d   :  { %v2476_v47 = vmul.f32 %v3143_v26, %v2475_v45  ;;  %v2482_v48 = vmul.f32 %v3145_v46, %v2470_v39  ;;  %vm2488_vm10 = vweird.f32 %v3145_v46 }
0x214e   :  { %vm2489_vm15 = vmor %vm2487_vm11, %vm2488_vm10 }
0x214f   :  { %v2483_v49 = vmul.f32 %v3145_v46, %v2482_v48  ;;  %v2480_v50 = vsel %vm2479_vm9, %v3143_v26, %v2476_v47 }
0x2150   :  { %v2491_v40 = vmul.f32 %v2480_v50, %v2457_v25 }
0x2151   :  { %v2484_v51 = vmul.f32 0.5, %v2483_v49 }
0x2152   :  { %v2496_v58 = vmul.f32 %v3025_v53, %v2491_v40 }
0x2153   :  { %v2485_v52 = vsub.f32 1.5, %v2484_v51 }
0x2154   :  { %v2501_v33 = vadd.f32 %v3026_v13, %v2496_v58 }
0x2155   :  { %v2486_v55 = vmul.f32 %v3145_v46, %v2485_v52 }
0x2157   :  { %v2490_v56 = vsel %vm2489_vm15, %v3145_v46, %v2486_v55 }
0x2158   :  { %v2492_v57 = vmul.f32 %v2490_v56, %v2458_v22 }
0x215a   :  { %v2497_v36 = vmul.f32 %v3025_v53, %v2492_v57 }
0x215c   :  { %v2502_v60 = vadd.f32 %v3026_v13, %v2497_v36 }
0x215e   :  { %v2509_v61 = vpack.c.bf16 %v2502_v60, %v2501_v33 }
0x2160   :  { %2520 = vmatpush.bf16.msra.mxu3 %v2509_v61 }
0x2163   :  { %2899 = vmatmul.msk.bf16.vlgmr.msra.gmra.mxu3 %vm316_vm12, %v2508_v62 }
0x21e6   :  { %v2522_v0 = vpop.f32.mrf.mxu3 }
0x21e7   :  { %v2526_v1 = vpack.c.bf16 %v2522_v0, %v2522_v0 }
0x21e9   :  { %2908 = vmatmul.msk.bf16.vlgmr.msrb.gmra.mxu0 %vm201_vm4, %v2526_v1 }
0x21ee   :  { %v2524_v15 = vpop.f32.mrf.mxu3 }
0x2266   :  { %v2559_v17 = vpop.f32.mrf.mxu0 }
0x2267   :  { %v2560_v6 = vadd.f32 %v3027_v43, %v2559_v17 }
0x2269   :  { %2563 = vst [vmem:[#allocation8] sm:$0x3] %v2560_v6 }
0x226a   :  { %2574 = dma.vmem_to_hbm [thread:$0]  %s2570_s8, 32, %s2572_s22, [#allocation4]  }
0x226e   :  { %v2561_v8 = vpop.f32.mrf.mxu0 }
0x226f   :  { %3248 = dma.done.wait [#allocation4], 32  }
0x2270   :  { %3249 = vsyncadd [#allocation4], 4294967264 }
0x2271   :  { %2579 = vsyncpa [#allocation3], 1 }
0x2272   :  { %2580 = vsyncpa [#allocation6], 1 }
0x2273   :  { %2581 = vsyncpa [#allocation4], 1 }

</bundles_post_ra>
